<compile_context>
chip_gen: v5e
topology: v5e:2x2
jax: 0.10.0
libtpu: 0.0.40
codegen_flags: <defaults>
</compile_context>

<pallas_src>
import jax
import jax.numpy as jnp
from jax.experimental import pallas as pl
from jax.experimental.pallas import tpu as pltpu

HIDDEN = 512


def _round_up(n, m):
    return ((n + m - 1) // m) * m


def _physical_vmem_bytes():
    """Per-TensorCore VMEM capacity; conservative default if query fails."""
    try:
        return int(pltpu.get_tpu_info().vmem_capacity_bytes)
    except Exception:
        return 64 * 1024 * 1024  # smallest across v5e / v6e / v7x


def ae_kernel(x_ref, w1_ref, b1_ref, w2_ref, b2_ref,
              w3_ref, b3_ref, w4_ref, b4_ref,
              enc_ref, dec_ref):
    cdt = w1_ref.dtype  # compute (MXU-operand) dtype, e.g. bf16

    # x arrives in its original dtype; cast on-chip (free VPU slots under MXU).
    x = x_ref[...].astype(cdt)

    # ---- encoder ----
    h1 = jnp.dot(x, w1_ref[...], preferred_element_type=jnp.float32)
    h1 = jnp.maximum(h1 + b1_ref[...], 0.0).astype(cdt)

    enc = jnp.dot(h1, w2_ref[...], preferred_element_type=jnp.float32) + b2_ref[...]
    enc_ref[...] = enc.astype(enc_ref.dtype)

    # ---- decoder ----
    h2 = jnp.dot(enc.astype(cdt), w3_ref[...], preferred_element_type=jnp.float32)
    h2 = jnp.maximum(h2 + b3_ref[...], 0.0).astype(cdt)

    dec = jnp.dot(h2, w4_ref[...], preferred_element_type=jnp.float32) + b4_ref[...]
    dec_ref[...] = dec.astype(dec_ref.dtype)


def prepare_params(params, *, compute_dtype=jnp.bfloat16):
    """One-time weight/bias padding + bf16 cast (hoisted out of the forward).

    Weights are (in, out).  Feature dims are zero-padded to multiples of 128
    lanes so all four matmuls and both output stores are lane-dense; padding
    is mathematically exact (padded rows/cols and bias entries are zero)."""
    w1, b1, w2, b2, w3, b3, w4, b4 = params
    D, H = w1.shape
    E = w2.shape[1]
    assert H == HIDDEN

    Dp = _round_up(D, 128)
    Ep = _round_up(E, 128)

    def pad2(a, r, c):
        return jnp.pad(a, ((0, r - a.shape[0]), (0, c - a.shape[1])))

    w1p = pad2(w1, Dp, H).astype(compute_dtype)
    w2p = pad2(w2, H, Ep).astype(compute_dtype)
    w3p = pad2(w3, Ep, H).astype(compute_dtype)
    w4p = pad2(w4, H, Dp).astype(compute_dtype)

    # Biases stay f32 (added post-MXU on the f32 datapath).
    b1r = b1.reshape(1, H).astype(jnp.float32)
    b2r = jnp.pad(b2, (0, Ep - E)).reshape(1, Ep).astype(jnp.float32)
    b3r = b3.reshape(1, H).astype(jnp.float32)
    b4r = jnp.pad(b4, (0, Dp - D)).reshape(1, Dp).astype(jnp.float32)

    return {
        "ops": (w1p, b1r, w2p, b2r, w3p, b3r, w4p, b4r),
        "D": D, "E": E, "H": H, "Dp": Dp, "Ep": Ep,
        "compute_dtype": compute_dtype,
    }


def autoencoder_forward(x, prepared, *, batch_tile=None):
    """Run the autoencoder forward pass. Returns (encoded, decoded)."""
    B, D = x.shape
    assert D == prepared["D"], "x feature dim does not match prepared params"
    E, H = prepared["E"], prepared["H"]
    Dp, Ep = prepared["Dp"], prepared["Ep"]
    cdt = prepared["compute_dtype"]
    out_dtype = x.dtype

    # ---- batch tiling ----
    # 16-row granularity (bf16 sublane packing, satisfies the (8,128) block
    # constraint); >= 2 tiles whenever B > 16 so v7x's two TensorCores both
    # get work under dimension_semantics=("parallel",).
    if batch_tile is None:
        n_target = max(2, pl.cdiv(B, 256)) if B > 16 else 1
        tb = min(256, _round_up(pl.cdiv(B, n_target), 16))
    else:
        tb = max(16, _round_up(int(batch_tile), 16))  # sanitize explicit tile
    Bp = _round_up(B, tb)
    n_tiles = Bp // tb

    # x stays in its original dtype; pad only when the shape requires it.
    xp = x if (Bp, Dp) == (B, D) else jnp.pad(x, ((0, Bp - B), (0, Dp - D)))

    # ---- VMEM budget (weights single-buffered, I/O double-buffered) ----
    it_c = jnp.dtype(cdt).itemsize
    it_x = jnp.dtype(x.dtype).itemsize
    it_o = jnp.dtype(out_dtype).itemsize
    weight_bytes = (Dp * H + H * Ep + Ep * H + H * Dp) * it_c + (2 * H + Ep + Dp) * 4
    io_bytes = tb * Dp * it_x + tb * (Ep + Dp) * it_o
    est_vmem = weight_bytes + 2 * io_bytes

    cp_kwargs = {"dimension_semantics": ("parallel",)}
    if est_vmem > 16 * 1024 * 1024:  # v5e default scoped limit is 16 MiB
        cap = int(0.9 * _physical_vmem_bytes())
        cp_kwargs["vmem_limit_bytes"] = int(
            min(max(est_vmem * 5 // 4, 32 * 1024 * 1024), cap))
    compiler_params = pltpu.CompilerParams(**cp_kwargs)

    batch_map = lambda i: (i, 0)
    full_map = lambda i: (0, 0)  # weights / biases replicated across batch tiles

    def run(single_buffer_weights):
        spec_kwargs = (
            {"pipeline_mode": pl.Buffered(1)} if single_buffer_weights else {})

        def const_spec(shape):
            return pl.BlockSpec(shape, full_map, **spec_kwargs)

        grid_spec = pltpu.PrefetchScalarGridSpec(
            num_scalar_prefetch=0,
            grid=(n_tiles,),
            in_specs=[
                pl.BlockSpec((tb, Dp), batch_map),  # x
                const_spec((Dp, H)),                # w1
                const_spec((1, H)),                 # b1
                const_spec((H, Ep)),                # w2
                const_spec((1, Ep)),                # b2
                const_spec((Ep, H)),                # w3
                const_spec((1, H)),                 # b3
                const_spec((H, Dp)),                # w4
                const_spec((1, Dp)),                # b4
            ],
            out_specs=[
                pl.BlockSpec((tb, Ep), batch_map),  # encoded (lane-dense)
                pl.BlockSpec((tb, Dp), batch_map),  # decoded (lane-dense)
            ],
        )
        return pl.pallas_call(
            ae_kernel,
            out_shape=(
                jax.ShapeDtypeStruct((Bp, Ep), out_dtype),
                jax.ShapeDtypeStruct((Bp, Dp), out_dtype),
            ),
            grid_spec=grid_spec,
            compiler_params=compiler_params,
        )(xp, *prepared["ops"])

    try:
        enc_p, dec_p = run(True)
    except Exception:
        # Fallback: if this jax build rejects pipeline_mode=Buffered(1) on the
        # grid-invariant operands, default double-buffering is still correct
        # (just uses more VMEM for the weights).
        enc_p, dec_p = run(False)

    return enc_p[:B, :E], dec_p[:B, :D]


def init_params(key, input_dim, encoding_dim):
    """Deterministic synthetic init (uniform, PyTorch-Linear-like bounds).

    Weights are returned already transposed to (in, out)."""
    ks = jax.random.split(key, 8)

    def lin(kw, kb, fan_in, fan_out):
        bound = 1.0 / jnp.sqrt(fan_in)
        w = jax.random.uniform(kw, (fan_in, fan_out), jnp.float32, -bound, bound)
        b = jax.random.uniform(kb, (fan_out,), jnp.float32, -bound, bound)
        return w, b

    w1, b1 = lin(ks[0], ks[1], input_dim, HIDDEN)
    w2, b2 = lin(ks[2], ks[3], HIDDEN, encoding_dim)
    w3, b3 = lin(ks[4], ks[5], encoding_dim, HIDDEN)
    w4, b4 = lin(ks[6], ks[7], HIDDEN, input_dim)
    return (w1, b1, w2, b2, w3, b3, w4, b4)


def reference_forward(x, params):
    w1, b1, w2, b2, w3, b3, w4, b4 = params
    h1 = jnp.maximum(x @ w1 + b1, 0.0)
    enc = h1 @ w2 + b2
    h2 = jnp.maximum(enc @ w3 + b3, 0.0)
    dec = h2 @ w4 + b4
    return enc, dec


if __name__ == "__main__":
    key = jax.random.PRNGKey(0)
    k_x, k_p = jax.random.split(key)

    batch = 8
    input_dim = 256
    encoding_dim = 32

    x = jax.random.normal(k_x, (batch, input_dim), jnp.float32)
    params = init_params(k_p, input_dim, encoding_dim)

    prepared = prepare_params(params)          # one-time pad + bf16 cast
    enc, dec = autoencoder_forward(x, prepared)
    jax.block_until_ready((enc, dec))

    assert enc.shape == (batch, encoding_dim)
    assert dec.shape == (batch, input_dim)

    # Reference is pure f32; kernel uses bf16 MXU operands with f32 accumulate,
    # so compare with bf16-appropriate tolerances.
    enc_ref, dec_ref = reference_forward(x, params)
    assert jnp.allclose(enc, enc_ref, atol=5e-2, rtol=5e-2)
    assert jnp.allclose(dec, dec_ref, atol=5e-2, rtol=5e-2)

    print("KERNEL_OK")
</pallas_src>

<mosaic_0001>
module attributes {stable_mosaic.version = 11 : i64} {
  func.func @ae_kernel(%arg0: i32, %arg1: memref<16x256xf32, #tpu.memory_space<vmem>>, %arg2: memref<256x512xbf16, #tpu.memory_space<vmem>>, %arg3: memref<1x512xf32, #tpu.memory_space<vmem>>, %arg4: memref<512x128xbf16, #tpu.memory_space<vmem>>, %arg5: memref<1x128xf32, #tpu.memory_space<vmem>>, %arg6: memref<128x512xbf16, #tpu.memory_space<vmem>>, %arg7: memref<1x512xf32, #tpu.memory_space<vmem>>, %arg8: memref<512x256xbf16, #tpu.memory_space<vmem>>, %arg9: memref<1x256xf32, #tpu.memory_space<vmem>>, %arg10: memref<16x128xf32, #tpu.memory_space<vmem>>, %arg11: memref<16x256xf32, #tpu.memory_space<vmem>>) attributes {dimension_semantics = [#tpu.dimension_semantics<parallel>], iteration_bounds = array<i64: 1>, scalar_prefetch = 0 : i64, scratch_operands = 0 : i64, tpu.core_type = #tpu.core_type<tc>, window_params = [{transform_indices = @transform_0, window_bounds = array<i64: 16, 256>}, {pipeline_mode = #tpu.pipeline_mode<synchronous>, transform_indices = @transform_1, window_bounds = array<i64: 256, 512>}, {pipeline_mode = #tpu.pipeline_mode<synchronous>, transform_indices = @transform_2, window_bounds = array<i64: 1, 512>}, {pipeline_mode = #tpu.pipeline_mode<synchronous>, transform_indices = @transform_3, window_bounds = array<i64: 512, 128>}, {pipeline_mode = #tpu.pipeline_mode<synchronous>, transform_indices = @transform_4, window_bounds = array<i64: 1, 128>}, {pipeline_mode = #tpu.pipeline_mode<synchronous>, transform_indices = @transform_5, window_bounds = array<i64: 128, 512>}, {pipeline_mode = #tpu.pipeline_mode<synchronous>, transform_indices = @transform_6, window_bounds = array<i64: 1, 512>}, {pipeline_mode = #tpu.pipeline_mode<synchronous>, transform_indices = @transform_7, window_bounds = array<i64: 512, 256>}, {pipeline_mode = #tpu.pipeline_mode<synchronous>, transform_indices = @transform_8, window_bounds = array<i64: 1, 256>}, {transform_indices = @transform_9, window_bounds = array<i64: 16, 128>}, {transform_indices = @transform_10, window_bounds = array<i64: 16, 256>}]} {
    %c0 = arith.constant 0 : index
    %c0_0 = arith.constant 0 : index
    %0 = vector.load %arg1[%c0, %c0_0] : memref<16x256xf32, #tpu.memory_space<vmem>>, vector<16x256xf32>
    %1 = arith.truncf %0 : vector<16x256xf32> to vector<16x256xbf16>
    %c0_1 = arith.constant 0 : index
    %c0_2 = arith.constant 0 : index
    %2 = vector.load %arg2[%c0_1, %c0_2] : memref<256x512xbf16, #tpu.memory_space<vmem>>, vector<256x512xbf16>
    %cst = arith.constant dense<0.000000e+00> : vector<16x512xf32>
    %3 = tpu.matmul %1, %2, %cst {dimension_numbers = #tpu.dot_dimension_numbers<[1], [0], [0], [1], [0, 0, 1, 1], [], []>} : vector<16x256xbf16>, vector<256x512xbf16>, vector<16x512xf32> -> vector<16x512xf32>
    %c0_3 = arith.constant 0 : index
    %c0_4 = arith.constant 0 : index
    %4 = vector.load %arg3[%c0_3, %c0_4] : memref<1x512xf32, #tpu.memory_space<vmem>>, vector<1x512xf32>
    %5 = vector.broadcast %4 : vector<1x512xf32> to vector<16x512xf32>
    %6 = arith.addf %3, %5 : vector<16x512xf32>
    %cst_5 = arith.constant 0.000000e+00 : f32
    %7 = vector.broadcast %cst_5 : f32 to vector<16x512xf32>
    %8 = arith.maximumf %6, %7 : vector<16x512xf32>
    %9 = arith.truncf %8 : vector<16x512xf32> to vector<16x512xbf16>
    %c0_6 = arith.constant 0 : index
    %c0_7 = arith.constant 0 : index
    %10 = vector.load %arg4[%c0_6, %c0_7] : memref<512x128xbf16, #tpu.memory_space<vmem>>, vector<512x128xbf16>
    %cst_8 = arith.constant dense<0.000000e+00> : vector<16x128xf32>
    %11 = tpu.matmul %9, %10, %cst_8 {dimension_numbers = #tpu.dot_dimension_numbers<[1], [0], [0], [1], [0, 0, 1, 1], [], []>} : vector<16x512xbf16>, vector<512x128xbf16>, vector<16x128xf32> -> vector<16x128xf32>
    %c0_9 = arith.constant 0 : index
    %c0_10 = arith.constant 0 : index
    %12 = vector.load %arg5[%c0_9, %c0_10] : memref<1x128xf32, #tpu.memory_space<vmem>>, vector<1x128xf32>
    %13 = vector.broadcast %12 : vector<1x128xf32> to vector<16x128xf32>
    %14 = arith.addf %11, %13 : vector<16x128xf32>
    %c0_11 = arith.constant 0 : index
    %c0_12 = arith.constant 0 : index
    %15 = vector.load %arg10[%c0_11, %c0_12] : memref<16x128xf32, #tpu.memory_space<vmem>>, vector<16x128xf32>
    tpu.vector_store %arg10[%c0_11, %c0_12], %14 {strides = array<i32>} : memref<16x128xf32, #tpu.memory_space<vmem>>, vector<16x128xf32>,
    %16 = arith.truncf %14 : vector<16x128xf32> to vector<16x128xbf16>
    %c0_13 = arith.constant 0 : index
    %c0_14 = arith.constant 0 : index
    %17 = vector.load %arg6[%c0_13, %c0_14] : memref<128x512xbf16, #tpu.memory_space<vmem>>, vector<128x512xbf16>
    %cst_15 = arith.constant dense<0.000000e+00> : vector<16x512xf32>
    %18 = tpu.matmul %16, %17, %cst_15 {dimension_numbers = #tpu.dot_dimension_numbers<[1], [0], [0], [1], [0, 0, 1, 1], [], []>} : vector<16x128xbf16>, vector<128x512xbf16>, vector<16x512xf32> -> vector<16x512xf32>
    %c0_16 = arith.constant 0 : index
    %c0_17 = arith.constant 0 : index
    %19 = vector.load %arg7[%c0_16, %c0_17] : memref<1x512xf32, #tpu.memory_space<vmem>>, vector<1x512xf32>
    %20 = vector.broadcast %19 : vector<1x512xf32> to vector<16x512xf32>
    %21 = arith.addf %18, %20 : vector<16x512xf32>
    %cst_18 = arith.constant 0.000000e+00 : f32
    %22 = vector.broadcast %cst_18 : f32 to vector<16x512xf32>
    %23 = arith.maximumf %21, %22 : vector<16x512xf32>
    %24 = arith.truncf %23 : vector<16x512xf32> to vector<16x512xbf16>
    %c0_19 = arith.constant 0 : index
    %c0_20 = arith.constant 0 : index
    %25 = vector.load %arg8[%c0_19, %c0_20] : memref<512x256xbf16, #tpu.memory_space<vmem>>, vector<512x256xbf16>
    %cst_21 = arith.constant dense<0.000000e+00> : vector<16x256xf32>
    %26 = tpu.matmul %24, %25, %cst_21 {dimension_numbers = #tpu.dot_dimension_numbers<[1], [0], [0], [1], [0, 0, 1, 1], [], []>} : vector<16x512xbf16>, vector<512x256xbf16>, vector<16x256xf32> -> vector<16x256xf32>
    %c0_22 = arith.constant 0 : index
    %c0_23 = arith.constant 0 : index
    %27 = vector.load %arg9[%c0_22, %c0_23] : memref<1x256xf32, #tpu.memory_space<vmem>>, vector<1x256xf32>
    %28 = vector.broadcast %27 : vector<1x256xf32> to vector<16x256xf32>
    %29 = arith.addf %26, %28 : vector<16x256xf32>
    %c0_24 = arith.constant 0 : index
    %c0_25 = arith.constant 0 : index
    %30 = vector.load %arg11[%c0_24, %c0_25] : memref<16x256xf32, #tpu.memory_space<vmem>>, vector<16x256xf32>
    tpu.vector_store %arg11[%c0_24, %c0_25], %29 {strides = array<i32>} : memref<16x256xf32, #tpu.memory_space<vmem>>, vector<16x256xf32>,
    return
  }
  func.func @transform_0(%arg0: i32) -> (i32, i32) {
    %c0_i32 = arith.constant 0 : i32
    %c0_i32_0 = arith.constant 0 : i32
    return %arg0, %c0_i32 : i32, i32
  }
  func.func @transform_1(%arg0: i32) -> (i32, i32) {
    %c0_i32 = arith.constant 0 : i32
    %c0_i32_0 = arith.constant 0 : i32
    %c0_i32_1 = arith.constant 0 : i32
    return %c0_i32, %c0_i32_0 : i32, i32
  }
  func.func @transform_2(%arg0: i32) -> (i32, i32) {
    %c0_i32 = arith.constant 0 : i32
    %c0_i32_0 = arith.constant 0 : i32
    %c0_i32_1 = arith.constant 0 : i32
    return %c0_i32, %c0_i32_0 : i32, i32
  }
  func.func @transform_3(%arg0: i32) -> (i32, i32) {
    %c0_i32 = arith.constant 0 : i32
    %c0_i32_0 = arith.constant 0 : i32
    %c0_i32_1 = arith.constant 0 : i32
    return %c0_i32, %c0_i32_0 : i32, i32
  }
  func.func @transform_4(%arg0: i32) -> (i32, i32) {
    %c0_i32 = arith.constant 0 : i32
    %c0_i32_0 = arith.constant 0 : i32
    %c0_i32_1 = arith.constant 0 : i32
    return %c0_i32, %c0_i32_0 : i32, i32
  }
  func.func @transform_5(%arg0: i32) -> (i32, i32) {
    %c0_i32 = arith.constant 0 : i32
    %c0_i32_0 = arith.constant 0 : i32
    %c0_i32_1 = arith.constant 0 : i32
    return %c0_i32, %c0_i32_0 : i32, i32
  }
  func.func @transform_6(%arg0: i32) -> (i32, i32) {
    %c0_i32 = arith.constant 0 : i32
    %c0_i32_0 = arith.constant 0 : i32
    %c0_i32_1 = arith.constant 0 : i32
    return %c0_i32, %c0_i32_0 : i32, i32
  }
  func.func @transform_7(%arg0: i32) -> (i32, i32) {
    %c0_i32 = arith.constant 0 : i32
    %c0_i32_0 = arith.constant 0 : i32
    %c0_i32_1 = arith.constant 0 : i32
    return %c0_i32, %c0_i32_0 : i32, i32
  }
  func.func @transform_8(%arg0: i32) -> (i32, i32) {
    %c0_i32 = arith.constant 0 : i32
    %c0_i32_0 = arith.constant 0 : i32
    %c0_i32_1 = arith.constant 0 : i32
    return %c0_i32, %c0_i32_0 : i32, i32
  }
  func.func @transform_9(%arg0: i32) -> (i32, i32) {
    %c0_i32 = arith.constant 0 : i32
    %c0_i32_0 = arith.constant 0 : i32
    return %arg0, %c0_i32 : i32, i32
  }
  func.func @transform_10(%arg0: i32) -> (i32, i32) {
    %c0_i32 = arith.constant 0 : i32
    %c0_i32_0 = arith.constant 0 : i32
    return %arg0, %c0_i32 : i32, i32
  }
}

module attributes {stable_mosaic.version = 11 : i64} {
  func.func @ae_kernel(%arg0: i32, %arg1: memref<16x256xf32, #tpu.memory_space<vmem>>, %arg2: memref<256x512xbf16, #tpu.memory_space<vmem>>, %arg3: memref<1x512xf32, #tpu.memory_space<vmem>>, %arg4: memref<512x128xbf16, #tpu.memory_space<vmem>>, %arg5: memref<1x128xf32, #tpu.memory_space<vmem>>, %arg6: memref<128x512xbf16, #tpu.memory_space<vmem>>, %arg7: memref<1x512xf32, #tpu.memory_space<vmem>>, %arg8: memref<512x256xbf16, #tpu.memory_space<vmem>>, %arg9: memref<1x256xf32, #tpu.memory_space<vmem>>, %arg10: memref<16x128xf32, #tpu.memory_space<vmem>>, %arg11: memref<16x256xf32, #tpu.memory_space<vmem>>) attributes {dimension_semantics = [#tpu.dimension_semantics<parallel>], iteration_bounds = array<i64: 1>, scalar_prefetch = 0 : i64, scratch_operands = 0 : i64, tpu.core_type = #tpu.core_type<tc>, window_params = [{transform_indices = @transform_0, window_bounds = array<i64: 16, 256>}, {pipeline_mode = #tpu.pipeline_mode<synchronous>, transform_indices = @transform_1, window_bounds = array<i64: 256, 512>}, {pipeline_mode = #tpu.pipeline_mode<synchronous>, transform_indices = @transform_2, window_bounds = array<i64: 1, 512>}, {pipeline_mode = #tpu.pipeline_mode<synchronous>, transform_indices = @transform_3, window_bounds = array<i64: 512, 128>}, {pipeline_mode = #tpu.pipeline_mode<synchronous>, transform_indices = @transform_4, window_bounds = array<i64: 1, 128>}, {pipeline_mode = #tpu.pipeline_mode<synchronous>, transform_indices = @transform_5, window_bounds = array<i64: 128, 512>}, {pipeline_mode = #tpu.pipeline_mode<synchronous>, transform_indices = @transform_6, window_bounds = array<i64: 1, 512>}, {pipeline_mode = #tpu.pipeline_mode<synchronous>, transform_indices = @transform_7, window_bounds = array<i64: 512, 256>}, {pipeline_mode = #tpu.pipeline_mode<synchronous>, transform_indices = @transform_8, window_bounds = array<i64: 1, 256>}, {transform_indices = @transform_9, window_bounds = array<i64: 16, 128>}, {transform_indices = @transform_10, window_bounds = array<i64: 16, 256>}]} {
    %c0 = arith.constant 0 : index
    %c0_0 = arith.constant 0 : index
    %0 = vector.load %arg1[%c0, %c0_0] : memref<16x256xf32, #tpu.memory_space<vmem>>, vector<16x256xf32>
    %1 = arith.truncf %0 : vector<16x256xf32> to vector<16x256xbf16>
    %c0_1 = arith.constant 0 : index
    %c0_2 = arith.constant 0 : index
    %2 = vector.load %arg2[%c0_1, %c0_2] : memref<256x512xbf16, #tpu.memory_space<vmem>>, vector<256x512xbf16>
    %cst = arith.constant dense<0.000000e+00> : vector<16x512xf32>
    %3 = tpu.matmul %1, %2, %cst {dimension_numbers = #tpu.dot_dimension_numbers<[1], [0], [0], [1], [0, 0, 1, 1], [], []>} : vector<16x256xbf16>, vector<256x512xbf16>, vector<16x512xf32> -> vector<16x512xf32>
    %c0_3 = arith.constant 0 : index
    %c0_4 = arith.constant 0 : index
    %4 = vector.load %arg3[%c0_3, %c0_4] : memref<1x512xf32, #tpu.memory_space<vmem>>, vector<1x512xf32>
    %5 = vector.broadcast %4 : vector<1x512xf32> to vector<16x512xf32>
    %6 = arith.addf %3, %5 : vector<16x512xf32>
    %cst_5 = arith.constant 0.000000e+00 : f32
    %7 = vector.broadcast %cst_5 : f32 to vector<16x512xf32>
    %8 = arith.maximumf %6, %7 : vector<16x512xf32>
    %9 = arith.truncf %8 : vector<16x512xf32> to vector<16x512xbf16>
    %c0_6 = arith.constant 0 : index
    %c0_7 = arith.constant 0 : index
    %10 = vector.load %arg4[%c0_6, %c0_7] : memref<512x128xbf16, #tpu.memory_space<vmem>>, vector<512x128xbf16>
    %cst_8 = arith.constant dense<0.000000e+00> : vector<16x128xf32>
    %11 = tpu.matmul %9, %10, %cst_8 {dimension_numbers = #tpu.dot_dimension_numbers<[1], [0], [0], [1], [0, 0, 1, 1], [], []>} : vector<16x512xbf16>, vector<512x128xbf16>, vector<16x128xf32> -> vector<16x128xf32>
    %c0_9 = arith.constant 0 : index
    %c0_10 = arith.constant 0 : index
    %12 = vector.load %arg5[%c0_9, %c0_10] : memref<1x128xf32, #tpu.memory_space<vmem>>, vector<1x128xf32>
    %13 = vector.broadcast %12 : vector<1x128xf32> to vector<16x128xf32>
    %14 = arith.addf %11, %13 : vector<16x128xf32>
    %c0_11 = arith.constant 0 : index
    %c0_12 = arith.constant 0 : index
    %15 = vector.load %arg10[%c0_11, %c0_12] : memref<16x128xf32, #tpu.memory_space<vmem>>, vector<16x128xf32>
    tpu.vector_store %arg10[%c0_11, %c0_12], %14 {strides = array<i32>} : memref<16x128xf32, #tpu.memory_space<vmem>>, vector<16x128xf32>,
    %16 = arith.truncf %14 : vector<16x128xf32> to vector<16x128xbf16>
    %c0_13 = arith.constant 0 : index
    %c0_14 = arith.constant 0 : index
    %17 = vector.load %arg6[%c0_13, %c0_14] : memref<128x512xbf16, #tpu.memory_space<vmem>>, vector<128x512xbf16>
    %cst_15 = arith.constant dense<0.000000e+00> : vector<16x512xf32>
    %18 = tpu.matmul %16, %17, %cst_15 {dimension_numbers = #tpu.dot_dimension_numbers<[1], [0], [0], [1], [0, 0, 1, 1], [], []>} : vector<16x128xbf16>, vector<128x512xbf16>, vector<16x512xf32> -> vector<16x512xf32>
    %c0_16 = arith.constant 0 : index
    %c0_17 = arith.constant 0 : index
    %19 = vector.load %arg7[%c0_16, %c0_17] : memref<1x512xf32, #tpu.memory_space<vmem>>, vector<1x512xf32>
    %20 = vector.broadcast %19 : vector<1x512xf32> to vector<16x512xf32>
    %21 = arith.addf %18, %20 : vector<16x512xf32>
    %cst_18 = arith.constant 0.000000e+00 : f32
    %22 = vector.broadcast %cst_18 : f32 to vector<16x512xf32>
    %23 = arith.maximumf %21, %22 : vector<16x512xf32>
    %24 = arith.truncf %23 : vector<16x512xf32> to vector<16x512xbf16>
    %c0_19 = arith.constant 0 : index
    %c0_20 = arith.constant 0 : index
    %25 = vector.load %arg8[%c0_19, %c0_20] : memref<512x256xbf16, #tpu.memory_space<vmem>>, vector<512x256xbf16>
    %cst_21 = arith.constant dense<0.000000e+00> : vector<16x256xf32>
    %26 = tpu.matmul %24, %25, %cst_21 {dimension_numbers = #tpu.dot_dimension_numbers<[1], [0], [0], [1], [0, 0, 1, 1], [], []>} : vector<16x512xbf16>, vector<512x256xbf16>, vector<16x256xf32> -> vector<16x256xf32>
    %c0_22 = arith.constant 0 : index
    %c0_23 = arith.constant 0 : index
    %27 = vector.load %arg9[%c0_22, %c0_23] : memref<1x256xf32, #tpu.memory_space<vmem>>, vector<1x256xf32>
    %28 = vector.broadcast %27 : vector<1x256xf32> to vector<16x256xf32>
    %29 = arith.addf %26, %28 : vector<16x256xf32>
    %c0_24 = arith.constant 0 : index
    %c0_25 = arith.constant 0 : index
    %30 = vector.load %arg11[%c0_24, %c0_25] : memref<16x256xf32, #tpu.memory_space<vmem>>, vector<16x256xf32>
    tpu.vector_store %arg11[%c0_24, %c0_25], %29 {strides = array<i32>} : memref<16x256xf32, #tpu.memory_space<vmem>>, vector<16x256xf32>,
    return
  }
  func.func @transform_0(%arg0: i32) -> (i32, i32) {
    %c0_i32 = arith.constant 0 : i32
    %c0_i32_0 = arith.constant 0 : i32
    return %arg0, %c0_i32 : i32, i32
  }
  func.func @transform_1(%arg0: i32) -> (i32, i32) {
    %c0_i32 = arith.constant 0 : i32
    %c0_i32_0 = arith.constant 0 : i32
    %c0_i32_1 = arith.constant 0 : i32
    return %c0_i32, %c0_i32_0 : i32, i32
  }
  func.func @transform_2(%arg0: i32) -> (i32, i32) {
    %c0_i32 = arith.constant 0 : i32
    %c0_i32_0 = arith.constant 0 : i32
    %c0_i32_1 = arith.constant 0 : i32
    return %c0_i32, %c0_i32_0 : i32, i32
  }
  func.func @transform_3(%arg0: i32) -> (i32, i32) {
    %c0_i32 = arith.constant 0 : i32
    %c0_i32_0 = arith.constant 0 : i32
    %c0_i32_1 = arith.constant 0 : i32
    return %c0_i32, %c0_i32_0 : i32, i32
  }
  func.func @transform_4(%arg0: i32) -> (i32, i32) {
    %c0_i32 = arith.constant 0 : i32
    %c0_i32_0 = arith.constant 0 : i32
    %c0_i32_1 = arith.constant 0 : i32
    return %c0_i32, %c0_i32_0 : i32, i32
  }
  func.func @transform_5(%arg0: i32) -> (i32, i32) {
    %c0_i32 = arith.constant 0 : i32
    %c0_i32_0 = arith.constant 0 : i32
    %c0_i32_1 = arith.constant 0 : i32
    return %c0_i32, %c0_i32_0 : i32, i32
  }
  func.func @transform_6(%arg0: i32) -> (i32, i32) {
    %c0_i32 = arith.constant 0 : i32
    %c0_i32_0 = arith.constant 0 : i32
    %c0_i32_1 = arith.constant 0 : i32
    return %c0_i32, %c0_i32_0 : i32, i32
  }
  func.func @transform_7(%arg0: i32) -> (i32, i32) {
    %c0_i32 = arith.constant 0 : i32
    %c0_i32_0 = arith.constant 0 : i32
    %c0_i32_1 = arith.constant 0 : i32
    return %c0_i32, %c0_i32_0 : i32, i32
  }
  func.func @transform_8(%arg0: i32) -> (i32, i32) {
    %c0_i32 = arith.constant 0 : i32
    %c0_i32_0 = arith.constant 0 : i32
    %c0_i32_1 = arith.constant 0 : i32
    return %c0_i32, %c0_i32_0 : i32, i32
  }
  func.func @transform_9(%arg0: i32) -> (i32, i32) {
    %c0_i32 = arith.constant 0 : i32
    %c0_i32_0 = arith.constant 0 : i32
    return %arg0, %c0_i32 : i32, i32
  }
  func.func @transform_10(%arg0: i32) -> (i32, i32) {
    %c0_i32 = arith.constant 0 : i32
    %c0_i32_0 = arith.constant 0 : i32
    return %arg0, %c0_i32 : i32, i32
  }
}

</mosaic_0001>

<bundles_post_ra>
// kernel: tpu_custom_call.1
= control target key start
LH: loop header
LB: loop body
LE: loop exit
PB: predicated region body
PF: predicated region fallthrough
CT: control target
= control target key end

     0   :  { %16 = vsyncpa [#allocation3], 0  ;;  %s3147_s0 = inlined_call_operand.hbm [shape: f32[16,256], index: 0, kind: input, shape index: {}]   ;;  %s3148_s1 = inlined_call_operand.hbm [shape: bf16[256,512], index: 1, kind: input, shape index: {}]   ;;  %s3149_s2 = inlined_call_operand.hbm [shape: f32[1,512], index: 2, kind: input, shape index: {}]   ;;  %s3150_s3 = inlined_call_operand.hbm [shape: bf16[512,128], index: 3, kind: input, shape index: {}]   ;;  %s3151_s4 = inlined_call_operand.hbm [shape: f32[1,128], index: 4, kind: input, shape index: {}]   ;;  %s3152_s5 = inlined_call_operand.hbm [shape: bf16[128,512], index: 5, kind: input, shape index: {}]   ;;  %s3153_s6 = inlined_call_operand.vmem [shape: f32[1,512], index: 6, kind: input, shape index: {}]   ;;  %s3154_s7 = inlined_call_operand.hbm [shape: bf16[512,256], index: 7, kind: input, shape index: {}]   ;;  %s3155_s8 = inlined_call_operand.vmem [shape: f32[1,256], index: 8, kind: input, shape index: {}]   ;;  %s3156_s9 = inlined_call_operand.hbm [shape: f32[16,128], index: 9, kind: output, shape index: {0}]   ;;  %s3157_s10 = inlined_call_operand.hbm [shape: f32[16,256], index: 10, kind: output, shape index: {1}]  }
   0x1   :  { %17 = vsyncpa [#allocation6], 0 }
   0x2   :  { %18 = vsyncpa [#allocation9], 0 }
   0x3   :  { %19 = vsyncpa [#allocation12], 0 }
   0x4   :  { %20 = vsyncpa [#allocation4], 0 }
   0x5   :  { %21 = vsyncpa [#allocation16], 0  ;;  %s39_s15 = sshll.u32 %s3148_s1, 4  ;;  %s3004_s16 = smov [#allocation5]   ;;  %s40_s15 = int_to_ptr.hbm [resolvable:$true] %s39_s15 }
   0x6   :  { %s41_s17 = sshll.u32 %s3004_s16, 4  ;;  %s63_s20 = sshll.u32 %s3150_s3, 4  ;;  %s42_s17 = int_to_ptr.vmem [resolvable:$true] %s41_s17  ;;  %s64_s20 = int_to_ptr.hbm [resolvable:$true] %s63_s20 }
   0x7   :  { %s3005_s21 = smov 256   ;;  %s3006_s22 = smov 16  }
   0x8   :  { %47 = dma.hbm_to_vmem [thread:$0]  %s40_s15, 8192, %s42_s17, [#allocation6], %s3005_s21, %s3005_s21, %s3006_s22  }
   0x9   :  { %s3007_s23 = smov [#allocation8]   ;;  %s3008_s25 = smov 64  }
   0xa   :  { %s65_s24 = sshll.u32 %s3007_s23, 4  ;;  %s3009_s1 = smov 4   ;;  %s66_s24 = int_to_ptr.vmem [resolvable:$true] %s65_s24 }
   0xb   :  { %71 = dma.hbm_to_vmem [thread:$0]  %s64_s20, 4096, %s66_s24, [#allocation9], %s3008_s25, %s3008_s25, %s3009_s1  }
   0xc   :  { %s87_s28 = sshll.u32 %s3152_s5, 4  ;;  %s3010_s29 = smov [#allocation11]   ;;  %s88_s28 = int_to_ptr.hbm [resolvable:$true] %s87_s28 }
   0xd   :  { %s89_s3 = sshll.u32 %s3010_s29, 4  ;;  %s26_s12 = sshll.u32 %s3147_s0, 4  ;;  %s90_s3 = int_to_ptr.vmem [resolvable:$true] %s89_s3  ;;  %s27_s12 = int_to_ptr.hbm [resolvable:$true] %s26_s12 }
   0xe   :  { %95 = dma.hbm_to_vmem [thread:$0]  %s88_s28, 4096, %s90_s3, [#allocation12], %s3005_s21, %s3005_s21, %s3006_s22  }
   0xf   :  { %s3011_s13 = smov [#allocation2]   ;;  %s53_s17 = sshll.u32 %s3149_s2, 4  ;;  %s54_s17 = int_to_ptr.hbm [resolvable:$true] %s53_s17 }
  0x10   :  { %s28_s14 = sshll.u32 %s3011_s13, 4  ;;  %s77_s0 = sshll.u32 %s3151_s4, 4  ;;  %s29_s14 = int_to_ptr.vmem [resolvable:$true] %s28_s14  ;;  %s78_s0 = int_to_ptr.hbm [resolvable:$true] %s77_s0 }
  0x11   :  { %34 = dma.hbm_to_vmem [thread:$0]  %s27_s12, 512, %s29_s14, [#allocation3], %s3005_s21, %s3005_s21, %s3006_s22  }
  0x12   :  { %s3012_s19 = smov [#allocation7]   ;;  %s3013_s23 = smov [#allocation10]  }
  0x13   :  { %s55_s20 = sshll.u32 %s3012_s19, 4  ;;  %s79_s24 = sshll.u32 %s3013_s23, 4  ;;  %s56_s20 = int_to_ptr.vmem [resolvable:$true] %s55_s20  ;;  %s80_s24 = int_to_ptr.vmem [resolvable:$true] %s79_s24 }
  0x14   :  { %58 = dma.hbm_to_vmem [thread:$0]  %s54_s17, 64, %s56_s20, [#allocation6]  }
  0x15   :  { %s102_s2 = sshll.u32 %s3154_s7, 4  ;;  %s3014_s26 = smov [#allocation13]   ;;  %s103_s2 = int_to_ptr.hbm [resolvable:$true] %s102_s2 }
  0x16   :  { %82 = dma.hbm_to_vmem [thread:$0]  %s78_s0, 16, %s80_s24, [#allocation9]  }
  0x17   :  { %s104_s27 = sshll.u32 %s3014_s26, 4  ;;  %s3015_s28 = smov 128   ;;  %s105_s27 = int_to_ptr.vmem [resolvable:$true] %s104_s27 }
  0x18   :  { %s3016_s29 = smov 8  }
  0x19   :  { %110 = dma.hbm_to_vmem [thread:$0]  %s103_s2, 8192, %s105_s27, [#allocation12], %s3015_s28, %s3015_s28, %s3016_s29  }
  0x1a   :  { %2992 = dma.done.wait [#allocation3], 512  }
  0x1b   :  { %2993 = vsyncadd [#allocation3], 4294966784 }
  0x1c   :  { %2994 = dma.done.wait [#allocation6], 8256  }
  0x1d   :  { %2995 = vsyncadd [#allocation6], 4294959040 }
  0x1e   :  { %2996 = dma.done.wait [#allocation9], 4112  }
  0x1f   :  { %2997 = vsyncadd [#allocation9], 4294963184 }
  0x20   :  { %2998 = dma.done.wait [#allocation12], 12288  }
  0x21   :  { %2999 = vsyncadd [#allocation12], 4294955008  ;;  %v1914_v0 = vld [vmem:[#allocation5 + $0xe0] sm:$0xf]  ;;  %v2598_v1 = vld [vmem:[#allocation5 + $0xec] sm:$0xf0] }
  0x22   :  { %v2042_v2 = vld [vmem:[#allocation5 + $0x1e0] sm:$0xf]  ;;  %v1915_v3 = vor.u32 %v2598_v1, %v1914_v0  ;;  %v2630_v4 = vld [vmem:[#allocation5 + $0x1ec] sm:$0xf0]  ;;  %v2596_v5 = vld [vmem:[#allocation5 + $0xe4] sm:$0xf] }
  0x23   :  { %v1916_v6 = vld [vmem:[#allocation5 + $0xf0] sm:$0xf0]  ;;  %v2043_v7 = vor.u32 %v2630_v4, %v2042_v2  ;;  %v2628_v9 = vld [vmem:[#allocation5 + $0x1e4] sm:$0xf]  ;;  %v1898_v11 = vld [vmem:[#allocation5 + $0xc0] sm:$0xf] }
  0x24   :  { %v1919_v8 = vor.u32 %v2596_v5, %v1916_v6  ;;  %v2044_v10 = vld [vmem:[#allocation5 + $0x1f0] sm:$0xf0]  ;;  %541 = vmatpush.bf16.msra.mxu0 %v1915_v3  ;;  %v2594_v13 = vld [vmem:[#allocation5 + $0xcc] sm:$0xf0]  ;;  %v2026_v14 = vld [vmem:[#allocation5 + $0x1c0] sm:$0xf] }
  0x25   :  { %v2047_v12 = vor.u32 %v2628_v9, %v2044_v10  ;;  %v2626_v15 = vld [vmem:[#allocation5 + $0x1cc] sm:$0xf0]  ;;  %555 = vmatpush.bf16.msra.mxu1 %v2043_v7  ;;  %v1899_v16 = vor.u32 %v2594_v13, %v1898_v11  ;;  %v2592_v18 = vld [vmem:[#allocation5 + $0xc4] sm:$0xf]  ;;  %v1900_v19 = vld [vmem:[#allocation5 + $0xd0] sm:$0xf0] }
  0x26   :  { %569 = vmatpush.bf16.msra.mxu2 %v1919_v8  ;;  %v2027_v17 = vor.u32 %v2626_v15, %v2026_v14  ;;  %v2624_v20 = vld [vmem:[#allocation5 + $0x1c4] sm:$0xf]  ;;  %v1903_v21 = vor.u32 %v2592_v18, %v1900_v19  ;;  %v2028_v22 = vld [vmem:[#allocation5 + $0x1d0] sm:$0xf0]  ;;  %v1882_v23 = vld [vmem:[#allocation5 + $0xa0] sm:$0xf] }
  0x27   :  { %583 = vmatpush.bf16.msra.mxu3 %v2047_v12  ;;  %v2590_v24 = vld [vmem:[#allocation5 + $0xac] sm:$0xf0]  ;;  %v2031_v25 = vor.u32 %v2624_v20, %v2028_v22  ;;  %v2010_v26 = vld [vmem:[#allocation5 + $0x1a0] sm:$0xf]  ;;  %v2588_v28 = vld [vmem:[#allocation5 + $0xa4] sm:$0xf] }
  0x28   :  { %v2622_v27 = vld [vmem:[#allocation5 + $0x1ac] sm:$0xf0]  ;;  %542 = vmatpush.bf16.msra.mxu0 %v1899_v16  ;;  %v1883_v29 = vor.u32 %v2590_v24, %v1882_v23  ;;  %v1884_v30 = vld [vmem:[#allocation5 + $0xb0] sm:$0xf0]  ;;  %v2620_v31 = vld [vmem:[#allocation5 + $0x1a4] sm:$0xf] }
  0x29   :  { %v2012_v32 = vld [vmem:[#allocation5 + $0x1b0] sm:$0xf0]  ;;  %556 = vmatpush.bf16.msra.mxu1 %v2027_v17  ;;  %v2011_v33 = vor.u32 %v2622_v27, %v2010_v26  ;;  %v1887_v34 = vor.u32 %v2588_v28, %v1884_v30  ;;  %v1866_v35 = vld [vmem:[#allocation5 + $0x80] sm:$0xf]  ;;  %v2586_v36 = vld [vmem:[#allocation5 + $0x8c] sm:$0xf0] }
  0x2a   :  { %570 = vmatpush.bf16.msra.mxu2 %v1903_v21  ;;  %v1994_v37 = vld [vmem:[#allocation5 + $0x180] sm:$0xf]  ;;  %v2015_v38 = vor.u32 %v2620_v31, %v2012_v32  ;;  %v2618_v39 = vld [vmem:[#allocation5 + $0x18c] sm:$0xf0]  ;;  %v2584_v40 = vld [vmem:[#allocation5 + $0x84] sm:$0xf]  ;;  %v1867_v44 = vor.u32 %v2586_v36, %v1866_v35 }
  0x2b   :  { %584 = vmatpush.bf16.msra.mxu3 %v2031_v25  ;;  %v1868_v41 = vld [vmem:[#allocation5 + $0x90] sm:$0xf0]  ;;  %v2616_v42 = vld [vmem:[#allocation5 + $0x184] sm:$0xf]  ;;  %v1995_v45 = vor.u32 %v2618_v39, %v1994_v37  ;;  %v1850_v47 = vld [vmem:[#allocation5 + $0x60] sm:$0xf] }
  0x2c   :  { %v1996_v43 = vld [vmem:[#allocation5 + $0x190] sm:$0xf0]  ;;  %543 = vmatpush.bf16.msra.mxu0 %v1883_v29  ;;  %v1871_v46 = vor.u32 %v2584_v40, %v1868_v41  ;;  %v2582_v48 = vld [vmem:[#allocation5 + $0x6c] sm:$0xf0]  ;;  %v1978_v49 = vld [vmem:[#allocation5 + $0x160] sm:$0xf] }
  0x2d   :  { %557 = vmatpush.bf16.msra.mxu1 %v2011_v33  ;;  %v1999_v50 = vor.u32 %v2616_v42, %v1996_v43  ;;  %v2614_v51 = vld [vmem:[#allocation5 + $0x16c] sm:$0xf0]  ;;  %v2580_v52 = vld [vmem:[#allocation5 + $0x64] sm:$0xf]  ;;  %v1852_v53 = vld [vmem:[#allocation5 + $0x70] sm:$0xf0]  ;;  %v1851_v56 = vor.u32 %v2582_v48, %v1850_v47 }
  0x2e   :  { %571 = vmatpush.bf16.msra.mxu2 %v1887_v34  ;;  %v2612_v54 = vld [vmem:[#allocation5 + $0x164] sm:$0xf]  ;;  %v1980_v55 = vld [vmem:[#allocation5 + $0x170] sm:$0xf0]  ;;  %v1979_v57 = vor.u32 %v2614_v51, %v1978_v49  ;;  %v1855_v58 = vor.u32 %v2580_v52, %v1852_v53  ;;  %v1834_v59 = vld [vmem:[#allocation5 + $0x40] sm:$0xf] }
  0x2f   :  { %585 = vmatpush.bf16.msra.mxu3 %v2015_v38  ;;  %v2578_v60 = vld [vmem:[#allocation5 + $0x4c] sm:$0xf0]  ;;  %v1962_v61 = vld [vmem:[#allocation5 + $0x140] sm:$0xf]  ;;  %v1983_v62 = vor.u32 %v2612_v54, %v1980_v55  ;;  %v2576_v0 = vld [vmem:[#allocation5 + $0x44] sm:$0xf] }
  0x30   :  { %544 = vmatpush.bf16.msra.mxu0 %v1867_v44  ;;  %v2610_v63 = vld [vmem:[#allocation5 + $0x14c] sm:$0xf0]  ;;  %v1836_v1 = vld [vmem:[#allocation5 + $0x50] sm:$0xf0]  ;;  %v2608_v2 = vld [vmem:[#allocation5 + $0x144] sm:$0xf]  ;;  %v1835_v4 = vor.u32 %v2578_v60, %v1834_v59 }
  0x31   :  { %558 = vmatpush.bf16.msra.mxu1 %v1995_v45  ;;  %v1964_v3 = vld [vmem:[#allocation5 + $0x150] sm:$0xf0]  ;;  %v1963_v5 = vor.u32 %v2610_v63, %v1962_v61  ;;  %v1839_v6 = vor.u32 %v2576_v0, %v1836_v1  ;;  %v1818_v7 = vld [vmem:[#allocation5 + $0x20] sm:$0xf]  ;;  %v2574_v8 = vld [vmem:[#allocation5 + $0x2c] sm:$0xf0] }
  0x32   :  { %572 = vmatpush.bf16.msra.mxu2 %v1871_v46  ;;  %v1946_v9 = vld [vmem:[#allocation5 + $0x120] sm:$0xf]  ;;  %v1967_v10 = vor.u32 %v2608_v2, %v1964_v3  ;;  %v2606_v11 = vld [vmem:[#allocation5 + $0x12c] sm:$0xf0]  ;;  %v2572_v12 = vld [vmem:[#allocation5 + $0x24] sm:$0xf]  ;;  %v1819_v16 = vor.u32 %v2574_v8, %v1818_v7 }
  0x33   :  { %586 = vmatpush.bf16.msra.mxu3 %v1999_v50  ;;  %v1820_v13 = vld [vmem:[#allocation5 + $0x30] sm:$0xf0]  ;;  %v2604_v14 = vld [vmem:[#allocation5 + $0x124] sm:$0xf]  ;;  %v1802_v17 = vld [vmem:[#allocation5] sm:$0xf]  ;;  %v1947_v20 = vor.u32 %v2606_v11, %v1946_v9 }
  0x34   :  { %545 = vmatpush.bf16.msra.mxu0 %v1851_v56  ;;  %v1948_v15 = vld [vmem:[#allocation5 + $0x130] sm:$0xf0]  ;;  %v2570_v18 = vld [vmem:[#allocation5 + $0xc] sm:$0xf0]  ;;  %v1930_v19 = vld [vmem:[#allocation5 + $0x100] sm:$0xf]  ;;  %v1823_v21 = vor.u32 %v2572_v12, %v1820_v13 }
  0x35   :  { %559 = vmatpush.bf16.msra.mxu1 %v1979_v57  ;;  %v2602_v22 = vld [vmem:[#allocation5 + $0x10c] sm:$0xf0]  ;;  %v2568_v23 = vld [vmem:[#allocation5 + $0x4] sm:$0xf]  ;;  %v1804_v24 = vld [vmem:[#allocation5 + $0x10] sm:$0xf0]  ;;  %v1951_v25 = vor.u32 %v2604_v14, %v1948_v15  ;;  %v1803_v32 = vor.u32 %v2570_v18, %v1802_v17 }
  0x36   :  { %573 = vmatpush.bf16.msra.mxu2 %v1855_v58  ;;  %v2600_v26 = vld [vmem:[#allocation5 + $0x104] sm:$0xf]  ;;  %v1932_v27 = vld [vmem:[#allocation5 + $0x110] sm:$0xf0]  ;;  %v1922_v28 = vld [vmem:[#allocation5 + $0xe8] sm:$0xf]  ;;  %v1931_v36 = vor.u32 %v2602_v22, %v1930_v19  ;;  %v1807_v37 = vor.u32 %v2568_v23, %v1804_v24 }
  0x37   :  { %587 = vmatpush.bf16.msra.mxu3 %v1983_v62  ;;  %v2599_v29 = vld [vmem:[#allocation5 + $0xf4] sm:$0xf0]  ;;  %v2050_v30 = vld [vmem:[#allocation5 + $0x1e8] sm:$0xf]  ;;  %v2597_v33 = vld [vmem:[#allocation5 + $0xec] sm:$0xf]  ;;  %v1935_v41 = vor.u32 %v2600_v26, %v1932_v27 }
  0x38   :  { %546 = vmatpush.bf16.msra.mxu0 %v1835_v4  ;;  %v2631_v31 = vld [vmem:[#allocation5 + $0x1f4] sm:$0xf0]  ;;  %v1924_v34 = vld [vmem:[#allocation5 + $0xf8] sm:$0xf0]  ;;  %v2629_v35 = vld [vmem:[#allocation5 + $0x1ec] sm:$0xf]  ;;  %v1923_v42 = vor.u32 %v2599_v29, %v1922_v28 }
  0x39   :  { %560 = vmatpush.bf16.msra.mxu1 %v1963_v5  ;;  %v2052_v38 = vld [vmem:[#allocation5 + $0x1f8] sm:$0xf0]  ;;  %v141_v39 = vld [vmem:[#allocation2] sm:$0xff]  ;;  %v143_v40 = vld [vmem:[#allocation2 + $0x10] sm:$0xff]  ;;  %v2051_v45 = vor.u32 %v2631_v31, %v2050_v30  ;;  %v1927_v46 = vor.u32 %v2597_v33, %v1924_v34  ;;  %s1766_s12 = sshll.u32 %s3156_s9, 4  ;;  %s1779_s17 = sshll.u32 %s3157_s10, 4  ;;  %s1767_s12 = int_to_ptr.hbm [resolvable:$true] %s1766_s12  ;;  %s1780_s17 = int_to_ptr.hbm [resolvable:$true] %s1779_s17 }
  0x3a   :  { %574 = vmatpush.bf16.msra.mxu2 %v1839_v6  ;;  %v142_v43 = vld [vmem:[#allocation2 + $0x8] sm:$0xff]  ;;  %v144_v44 = vld [vmem:[#allocation2 + $0x18] sm:$0xff]  ;;  %v2055_v50 = vor.u32 %v2629_v35, %v2052_v38  ;;  %v3107_v51 = vpack.c.bf16 %v143_v40, %v141_v39 }
  0x3b   :  { %588 = vmatpush.bf16.msra.mxu3 %v1967_v10  ;;  %v1906_v47 = vld [vmem:[#allocation5 + $0xc8] sm:$0xf]  ;;  %v2595_v48 = vld [vmem:[#allocation5 + $0xd4] sm:$0xf0]  ;;  %v2593_v53 = vld [vmem:[#allocation5 + $0xcc] sm:$0xf]  ;;  %v3109_v55 = vpack.c.bf16 %v144_v44, %v142_v43 }
  0x3c   :  { %547 = vmatpush.bf16.msra.mxu0 %v1819_v16  ;;  %v2034_v49 = vld [vmem:[#allocation5 + $0x1c8] sm:$0xf]  ;;  %v2627_v52 = vld [vmem:[#allocation5 + $0x1d4] sm:$0xf0]  ;;  %v1908_v54 = vld [vmem:[#allocation5 + $0xd8] sm:$0xf0]  ;;  %v1907_v58 = vor.u32 %v2595_v48, %v1906_v47 }
  0x3d   :  { %561 = vmatpush.bf16.msra.mxu1 %v1947_v20  ;;  %v2625_v56 = vld [vmem:[#allocation5 + $0x1cc] sm:$0xf]  ;;  %v2036_v57 = vld [vmem:[#allocation5 + $0x1d8] sm:$0xf0]  ;;  %v2035_v59 = vor.u32 %v2627_v52, %v2034_v49  ;;  %v1911_v60 = vor.u32 %v2593_v53, %v1908_v54  ;;  %v1890_v61 = vld [vmem:[#allocation5 + $0xa8] sm:$0xf] }
  0x3e   :  { %575 = vmatpush.bf16.msra.mxu2 %v1823_v21  ;;  %v2591_v62 = vld [vmem:[#allocation5 + $0xb4] sm:$0xf0]  ;;  %v2018_v63 = vld [vmem:[#allocation5 + $0x1a8] sm:$0xf]  ;;  %v2039_v0 = vor.u32 %v2625_v56, %v2036_v57  ;;  %v2589_v2 = vld [vmem:[#allocation5 + $0xac] sm:$0xf] }
  0x3f   :  { %589 = vmatpush.bf16.msra.mxu3 %v1951_v25  ;;  %v2623_v1 = vld [vmem:[#allocation5 + $0x1b4] sm:$0xf0]  ;;  %v1892_v3 = vld [vmem:[#allocation5 + $0xb8] sm:$0xf0]  ;;  %v2621_v4 = vld [vmem:[#allocation5 + $0x1ac] sm:$0xf]  ;;  %v1891_v6 = vor.u32 %v2591_v62, %v1890_v61 }
  0x40   :  { %548 = vmatpush.bf16.msra.mxu0 %v1803_v32  ;;  %v2020_v5 = vld [vmem:[#allocation5 + $0x1b8] sm:$0xf0]  ;;  %v2019_v7 = vor.u32 %v2623_v1, %v2018_v63  ;;  %v1895_v8 = vor.u32 %v2589_v2, %v1892_v3  ;;  %v1874_v9 = vld [vmem:[#allocation5 + $0x88] sm:$0xf]  ;;  %v2587_v10 = vld [vmem:[#allocation5 + $0x94] sm:$0xf0] }
  0x41   :  { %562 = vmatpush.bf16.msra.mxu1 %v1931_v36  ;;  %v2002_v11 = vld [vmem:[#allocation5 + $0x188] sm:$0xf]  ;;  %v2023_v12 = vor.u32 %v2621_v4, %v2020_v5  ;;  %v2619_v13 = vld [vmem:[#allocation5 + $0x194] sm:$0xf0]  ;;  %v2585_v14 = vld [vmem:[#allocation5 + $0x8c] sm:$0xf]  ;;  %v1875_v18 = vor.u32 %v2587_v10, %v1874_v9 }
  0x42   :  { %576 = vmatpush.bf16.msra.mxu2 %v1807_v37  ;;  %v1876_v15 = vld [vmem:[#allocation5 + $0x98] sm:$0xf0]  ;;  %v2617_v16 = vld [vmem:[#allocation5 + $0x18c] sm:$0xf]  ;;  %v2003_v19 = vor.u32 %v2619_v13, %v2002_v11  ;;  %v1858_v21 = vld [vmem:[#allocation5 + $0x68] sm:$0xf] }
  0x43   :  { %590 = vmatpush.bf16.msra.mxu3 %v1935_v41  ;;  %549 = vmatmul.bf16.vlgmr.msra.gmra.mxu0 %v3107_v51  ;;  %v2004_v17 = vld [vmem:[#allocation5 + $0x198] sm:$0xf0]  ;;  %v1879_v20 = vor.u32 %v2585_v14, %v1876_v15  ;;  %v2583_v22 = vld [vmem:[#allocation5 + $0x74] sm:$0xf0]  ;;  %v1986_v23 = vld [vmem:[#allocation5 + $0x168] sm:$0xf] }
  0x44   :  { %597 = vmatpush.bf16.msrb.mxu0 %v1923_v42  ;;  %563 = vmatmul.bf16.vlgmr.msra.gmra.mxu1 %v3109_v55  ;;  %v2007_v24 = vor.u32 %v2617_v16, %v2004_v17  ;;  %v2615_v25 = vld [vmem:[#allocation5 + $0x174] sm:$0xf0]  ;;  %v2581_v26 = vld [vmem:[#allocation5 + $0x6c] sm:$0xf]  ;;  %v1860_v27 = vld [vmem:[#allocation5 + $0x78] sm:$0xf0]  ;;  %v1859_v30 = vor.u32 %v2583_v22, %v1858_v21 }
  0x45   :  { %611 = vmatpush.bf16.msrb.mxu1 %v2051_v45  ;;  %577 = vmatmul.bf16.vlgmr.msra.gmra.mxu2 %v3107_v51  ;;  %v2613_v28 = vld [vmem:[#allocation5 + $0x16c] sm:$0xf]  ;;  %v1988_v29 = vld [vmem:[#allocation5 + $0x178] sm:$0xf0]  ;;  %v1842_v31 = vld [vmem:[#allocation5 + $0x48] sm:$0xf]  ;;  %v1987_v32 = vor.u32 %v2615_v25, %v1986_v23  ;;  %v1863_v33 = vor.u32 %v2581_v26, %v1860_v27 }
  0x46   :  { %625 = vmatpush.bf16.msrb.mxu2 %v1927_v46  ;;  %591 = vmatmul.bf16.vlgmr.msra.gmra.mxu3 %v3109_v55  ;;  %v2579_v34 = vld [vmem:[#allocation5 + $0x54] sm:$0xf0]  ;;  %v1970_v35 = vld [vmem:[#allocation5 + $0x148] sm:$0xf]  ;;  %v1991_v36 = vor.u32 %v2613_v28, %v1988_v29  ;;  %v2577_v38 = vld [vmem:[#allocation5 + $0x4c] sm:$0xf] }
  0x47   :  { %639 = vmatpush.bf16.msrb.mxu3 %v2055_v50  ;;  %v2611_v37 = vld [vmem:[#allocation5 + $0x154] sm:$0xf0]  ;;  %v1844_v39 = vld [vmem:[#allocation5 + $0x58] sm:$0xf0]  ;;  %v2609_v40 = vld [vmem:[#allocation5 + $0x14c] sm:$0xf]  ;;  %v1843_v42 = vor.u32 %v2579_v34, %v1842_v31 }
  0x48   :  { %598 = vmatpush.bf16.msrb.mxu0 %v1907_v58  ;;  %v1972_v41 = vld [vmem:[#allocation5 + $0x158] sm:$0xf0]  ;;  %v1971_v43 = vor.u32 %v2611_v37, %v1970_v35  ;;  %v1847_v44 = vor.u32 %v2577_v38, %v1844_v39  ;;  %v1826_v45 = vld [vmem:[#allocation5 + $0x28] sm:$0xf]  ;;  %v2575_v46 = vld [vmem:[#allocation5 + $0x34] sm:$0xf0] }
  0x49   :  { %612 = vmatpush.bf16.msrb.mxu1 %v2035_v59  ;;  %v1954_v47 = vld [vmem:[#allocation5 + $0x128] sm:$0xf]  ;;  %v1975_v48 = vor.u32 %v2609_v40, %v1972_v41  ;;  %v2607_v49 = vld [vmem:[#allocation5 + $0x134] sm:$0xf0]  ;;  %v2573_v50 = vld [vmem:[#allocation5 + $0x2c] sm:$0xf]  ;;  %v1827_v56 = vor.u32 %v2575_v46, %v1826_v45 }
  0x4a   :  { %626 = vmatpush.bf16.msrb.mxu2 %v1911_v60  ;;  %v1828_v52 = vld [vmem:[#allocation5 + $0x38] sm:$0xf0]  ;;  %v2605_v53 = vld [vmem:[#allocation5 + $0x12c] sm:$0xf]  ;;  %v1955_v57 = vor.u32 %v2607_v49, %v1954_v47  ;;  %v1810_v59 = vld [vmem:[#allocation5 + $0x8] sm:$0xf] }
  0x4b   :  { %640 = vmatpush.bf16.msrb.mxu3 %v2039_v0  ;;  %v1956_v54 = vld [vmem:[#allocation5 + $0x138] sm:$0xf0]  ;;  %v1831_v58 = vor.u32 %v2573_v50, %v1828_v52  ;;  %v2571_v60 = vld [vmem:[#allocation5 + $0x14] sm:$0xf0]  ;;  %v1938_v61 = vld [vmem:[#allocation5 + $0x108] sm:$0xf] }
  0x4c   :  { %599 = vmatpush.bf16.msrb.mxu0 %v1891_v6  ;;  %v1959_v62 = vor.u32 %v2605_v53, %v1956_v54  ;;  %v2603_v63 = vld [vmem:[#allocation5 + $0x114] sm:$0xf0]  ;;  %v2569_v0 = vld [vmem:[#allocation5 + $0xc] sm:$0xf]  ;;  %v1812_v1 = vld [vmem:[#allocation5 + $0x18] sm:$0xf0]  ;;  %v1811_v4 = vor.u32 %v2571_v60, %v1810_v59 }
  0x4d   :  { %613 = vmatpush.bf16.msrb.mxu1 %v2019_v7  ;;  %v2601_v2 = vld [vmem:[#allocation5 + $0x10c] sm:$0xf]  ;;  %v1940_v3 = vld [vmem:[#allocation5 + $0x118] sm:$0xf0]  ;;  %v1939_v5 = vor.u32 %v2603_v63, %v1938_v61  ;;  %v1815_v6 = vor.u32 %v2569_v0, %v1812_v1  ;;  %v2638_v10 = vld [vmem:[#allocation8 + $0x30] sm:$0xff] }
  0x4e   :  { %627 = vmatpush.bf16.msrb.mxu2 %v1895_v8  ;;  %v1943_v7 = vor.u32 %v2601_v2, %v1940_v3  ;;  %v2639_v8 = vld [vmem:[#allocation8 + $0x38] sm:$0xff]  ;;  %v2646_v11 = vld [vmem:[#allocation8 + $0x70] sm:$0xff]  ;;  %v2645_v13 = vld [vmem:[#allocation8 + $0x68] sm:$0xff] }
  0x4f   :  { %641 = vmatpush.bf16.msrb.mxu3 %v2023_v12  ;;  %v2647_v9 = vld [vmem:[#allocation8 + $0x78] sm:$0xff]  ;;  %v2637_v12 = vld [vmem:[#allocation8 + $0x28] sm:$0xff]  ;;  %v2636_v14 = vld [vmem:[#allocation8 + $0x20] sm:$0xff] }
  0x50   :  { %600 = vmatpush.bf16.msrb.mxu0 %v1875_v18  ;;  %v2635_v15 = vld [vmem:[#allocation8 + $0x18] sm:$0xff]  ;;  %v2644_v16 = vld [vmem:[#allocation8 + $0x60] sm:$0xff]  ;;  %v2634_v17 = vld [vmem:[#allocation8 + $0x10] sm:$0xff] }
  0x51   :  { %614 = vmatpush.bf16.msrb.mxu1 %v2003_v19  ;;  %v2643_v18 = vld [vmem:[#allocation8 + $0x58] sm:$0xff]  ;;  %v2633_v19 = vld [vmem:[#allocation8 + $0x8] sm:$0xff]  ;;  %v2654_v22 = vld [vmem:[#allocation8 + $0xb0] sm:$0xff] }
  0x52   :  { %628 = vmatpush.bf16.msrb.mxu2 %v1879_v20  ;;  %v2655_v20 = vld [vmem:[#allocation8 + $0xb8] sm:$0xff]  ;;  %v2641_v21 = vld [vmem:[#allocation8 + $0x48] sm:$0xff]  ;;  %v2640_v23 = vld [vmem:[#allocation8 + $0x40] sm:$0xff] }
  0x53   :  { %642 = vmatpush.bf16.msrb.mxu3 %v2007_v24  ;;  %v2663_v24 = vld [vmem:[#allocation8 + $0xf8] sm:$0xff]  ;;  %v2653_v25 = vld [vmem:[#allocation8 + $0xa8] sm:$0xff]  ;;  %v2662_v26 = vld [vmem:[#allocation8 + $0xf0] sm:$0xff] }
  0x54   :  { %601 = vmatpush.bf16.msrb.mxu0 %v1859_v30  ;;  %v2652_v27 = vld [vmem:[#allocation8 + $0xa0] sm:$0xff]  ;;  %v3119_v28 = vld [vmem:[#allocation7] sm:$0xf]  ;;  %v2661_v29 = vld [vmem:[#allocation8 + $0xe8] sm:$0xff] }
  0x55   :  { %615 = vmatpush.bf16.msrb.mxu1 %v1987_v32  ;;  %v2651_v30 = vld [vmem:[#allocation8 + $0x98] sm:$0xff]  ;;  %v213_v31 = vperm.slane %v3119_v28, 0  ;;  %v2650_v35 = vld [vmem:[#allocation8 + $0x90] sm:$0xff]  ;;  %v214_v37 = vperm.slane %v3119_v28, 1  ;;  %v2649_v41 = vld [vmem:[#allocation8 + $0x88] sm:$0xff]  ;;  %v215_v2 = vperm.slane %v3119_v28, 2 }
  0x56   :  { %629 = vmatpush.bf16.msrb.mxu2 %v1863_v33  ;;  %v2660_v33 = vld [vmem:[#allocation8 + $0xe0] sm:$0xff]  ;;  %v2659_v38 = vld [vmem:[#allocation8 + $0xd8] sm:$0xff]  ;;  %v2658_v45 = vld [vmem:[#allocation8 + $0xd0] sm:$0xff] }
  0x57   :  { %643 = vmatpush.bf16.msrb.mxu3 %v1991_v36  ;;  %v2657_v53 = vld [vmem:[#allocation8 + $0xc8] sm:$0xff] }
  0x58   :  { %602 = vmatpush.bf16.msrb.mxu0 %v1843_v42 }
  0x59   :  { %616 = vmatpush.bf16.msrb.mxu1 %v1971_v43 }
  0x5a   :  { %630 = vmatpush.bf16.msrb.mxu2 %v1847_v44 }
  0x5b   :  { %644 = vmatpush.bf16.msrb.mxu3 %v1975_v48  ;;  %v2648_v48 = vld [vmem:[#allocation8 + $0x80] sm:$0xff] }
  0x5c   :  { %603 = vmatpush.bf16.msrb.mxu0 %v1827_v56 }
  0x5d   :  { %617 = vmatpush.bf16.msrb.mxu1 %v1955_v57 }
  0x5e   :  { %631 = vmatpush.bf16.msrb.mxu2 %v1831_v58 }
  0x5f   :  { %645 = vmatpush.bf16.msrb.mxu3 %v1959_v62  ;;  %v2656_v62 = vld [vmem:[#allocation8 + $0xc0] sm:$0xff] }
  0x60   :  { %604 = vmatpush.bf16.msrb.mxu0 %v1811_v4 }
  0x61   :  { %618 = vmatpush.bf16.msrb.mxu1 %v1939_v5 }
  0x62   :  { %632 = vmatpush.bf16.msrb.mxu2 %v1815_v6  ;;  %v216_v6 = vperm.slane %v3119_v28, 3  ;;  %v2306_v28 = vld [vmem:[#allocation11 + $0xe8] sm:$0xf] }
  0x63   :  { %646 = vmatpush.bf16.msrb.mxu3 %v1943_v7  ;;  %605 = vmatmul.bf16.vlgmr.msrb.gmra.mxu0 %v3107_v51 }
  0x64   :  { %925 = vmatpush.bf16.msra.mxu0 %v2639_v8  ;;  %619 = vmatmul.bf16.vlgmr.msrb.gmra.mxu1 %v3109_v55 }
  0x65   :  { %939 = vmatpush.bf16.msra.mxu1 %v2647_v9  ;;  %633 = vmatmul.bf16.vlgmr.msrb.gmra.mxu2 %v3107_v51  ;;  %v2642_v51 = vld [vmem:[#allocation8 + $0x50] sm:$0xff] }
  0x66   :  { %647 = vmatmul.bf16.vlgmr.msrb.gmra.mxu3 %v3109_v55  ;;  %v2632_v55 = vld [vmem:[#allocation8] sm:$0xff]  ;;  %953 = vmatpush.bf16.msra.mxu2 %v2655_v20 }
  0x67   :  { %967 = vmatpush.bf16.msra.mxu3 %v2663_v24  ;;  %v2694_v24 = vld [vmem:[#allocation11 + $0xec] sm:$0xf0] }
  0x68   :  { %926 = vmatpush.bf16.msra.mxu0 %v2638_v10 }
  0x69   :  { %940 = vmatpush.bf16.msra.mxu1 %v2646_v11 }
  0x6a   :  { %954 = vmatpush.bf16.msra.mxu2 %v2654_v22 }
  0x6b   :  { %968 = vmatpush.bf16.msra.mxu3 %v2662_v26 }
  0x6c   :  { %927 = vmatpush.bf16.msra.mxu0 %v2637_v12 }
  0x6d   :  { %941 = vmatpush.bf16.msra.mxu1 %v2645_v13 }
  0x6e   :  { %955 = vmatpush.bf16.msra.mxu2 %v2653_v25  ;;  %v2692_v25 = vld [vmem:[#allocation11 + $0xe4] sm:$0xf] }
  0x6f   :  { %969 = vmatpush.bf16.msra.mxu3 %v2661_v29  ;;  %v2695_v29 = vld [vmem:[#allocation11 + $0xf4] sm:$0xf0] }
  0x70   :  { %928 = vmatpush.bf16.msra.mxu0 %v2636_v14 }
  0x71   :  { %942 = vmatpush.bf16.msra.mxu1 %v2644_v16 }
  0x72   :  { %956 = vmatpush.bf16.msra.mxu2 %v2652_v27  ;;  %v2300_v27 = vld [vmem:[#allocation11 + $0xf0] sm:$0xf0] }
  0x73   :  { %970 = vmatpush.bf16.msra.mxu3 %v2660_v33  ;;  %v2308_v33 = vld [vmem:[#allocation11 + $0xf8] sm:$0xf0] }
  0x74   :  { %929 = vmatpush.bf16.msra.mxu0 %v2635_v15 }
  0x75   :  { %943 = vmatpush.bf16.msra.mxu1 %v2643_v18 }
  0x76   :  { %957 = vmatpush.bf16.msra.mxu2 %v2651_v30  ;;  %v2303_v30 = vor.u32 %v2692_v25, %v2300_v27  ;;  %v2675_v25 = vld [vmem:[#allocation11 + $0x54] sm:$0xf0] }
  0x77   :  { %971 = vmatpush.bf16.msra.mxu3 %v2659_v38  ;;  %v2284_v38 = vld [vmem:[#allocation11 + $0xd0] sm:$0xf0] }
  0x78   :  { %930 = vmatpush.bf16.msra.mxu0 %v2634_v17 }
  0x79   :  { %944 = vmatpush.bf16.msra.mxu1 %v2642_v51 }
  0x7a   :  { %958 = vmatpush.bf16.msra.mxu2 %v2650_v35 }
  0x7b   :  { %972 = vmatpush.bf16.msra.mxu3 %v2658_v45  ;;  %v2292_v45 = vld [vmem:[#allocation11 + $0xd8] sm:$0xf0] }
  0x7c   :  { %931 = vmatpush.bf16.msra.mxu0 %v2633_v19 }
  0x7d   :  { %945 = vmatpush.bf16.msra.mxu1 %v2641_v21 }
  0x7e   :  { %959 = vmatpush.bf16.msra.mxu2 %v2649_v41  ;;  %v2290_v41 = vld [vmem:[#allocation11 + $0xc8] sm:$0xf] }
  0x7f   :  { %973 = vmatpush.bf16.msra.mxu3 %v2657_v53 }
  0x80   :  { %932 = vmatpush.bf16.msra.mxu0 %v2632_v55 }
  0x81   :  { %946 = vmatpush.bf16.msra.mxu1 %v2640_v23  ;;  %v2298_v23 = vld [vmem:[#allocation11 + $0xe0] sm:$0xf] }
  0x82   :  { %960 = vmatpush.bf16.msra.mxu2 %v2648_v48  ;;  %v2299_v26 = vor.u32 %v2694_v24, %v2298_v23  ;;  %v2220_v23 = vld [vmem:[#allocation11 + $0x50] sm:$0xf0]  ;;  %v2226_v24 = vld [vmem:[#allocation11 + $0x48] sm:$0xf] }
  0x83   :  { %974 = vmatpush.bf16.msra.mxu3 %v2656_v62  ;;  %v2682_v62 = vld [vmem:[#allocation11 + $0x8c] sm:$0xf0]  ;;  %v2227_v27 = vor.u32 %v2675_v25, %v2226_v24 }
  0x84   :  { %1186 = vmatpush.bf16.msrb.mxu0 %v2299_v26  ;;  %v2482_v25 = vld [vmem:[#allocation13 + $0x150] sm:$0xf] }
  0x85   :  { %1200 = vmatpush.bf16.msrb.mxu1 %v2303_v30 }
  0xc0   :  { %v550_v32 = vpop.f32.mrf.mxu0 }
  0xc1   :  { %v564_v34 = vpop.f32.mrf.mxu1  ;;  %v551_v36 = vadd.f32 %v550_v32, %v213_v31  ;;  %v2693_v32 = vld [vmem:[#allocation11 + $0xec] sm:$0xf] }
  0xc2   :  { %v2311_v35 = vor.u32 %v2693_v32, %v2308_v33  ;;  %v2670_v32 = vld [vmem:[#allocation11 + $0x2c] sm:$0xf0]  ;;  %v2668_v33 = vld [vmem:[#allocation11 + $0x24] sm:$0xf] }
  0xc3   :  { %v565_v42 = vadd.f32 %v564_v34, %v551_v36  ;;  %v2282_v34 = vld [vmem:[#allocation11 + $0xc0] sm:$0xf]  ;;  %v2690_v36 = vld [vmem:[#allocation11 + $0xcc] sm:$0xf0] }
  0xc4   :  { %1228 = vmatpush.bf16.msrb.mxu3 %v2311_v35  ;;  %v2204_v35 = vld [vmem:[#allocation11 + $0x30] sm:$0xf0] }
  0xc5   :  { %v653_v49 = vmax.f32 %v565_v42, 0.0  ;;  %v2691_v42 = vld [vmem:[#allocation11 + $0xd4] sm:$0xf0] }
  0xc8   :  { %v578_v39 = vpop.f32.mrf.mxu2  ;;  %v552_v44 = vpop.f32.mrf.mxu0 }
  0xc9   :  { %v592_v40 = vpop.f32.mrf.mxu3  ;;  %v579_v43 = vadd.f32 %v578_v39, %v214_v37  ;;  %v553_v46 = vadd.f32 %v552_v44, %v213_v31  ;;  %v566_v47 = vpop.f32.mrf.mxu1  ;;  %v2307_v31 = vor.u32 %v2695_v29, %v2306_v28  ;;  %v2283_v39 = vor.u32 %v2690_v36, %v2282_v34  ;;  %v2673_v28 = vld [vmem:[#allocation11 + $0x4c] sm:$0xf]  ;;  %v2228_v29 = vld [vmem:[#allocation11 + $0x58] sm:$0xf0]  ;;  %v2210_v36 = vld [vmem:[#allocation11 + $0x28] sm:$0xf] }
  0xca   :  { %v2291_v44 = vor.u32 %v2691_v42, %v2290_v41  ;;  %v2231_v30 = vor.u32 %v2673_v28, %v2228_v29  ;;  %v2212_v41 = vld [vmem:[#allocation11 + $0x38] sm:$0xf0]  ;;  %v2410_v28 = vld [vmem:[#allocation13 + $0xc0] sm:$0xf]  ;;  %v2721_v29 = vld [vmem:[#allocation13 + $0xc4] sm:$0xf0] }
  0xcb   :  { %v567_v50 = vadd.f32 %v566_v47, %v553_v46  ;;  %v593_v52 = vadd.f32 %v592_v40, %v579_v43  ;;  %1214 = vmatpush.bf16.msrb.mxu2 %v2307_v31  ;;  %v2689_v43 = vld [vmem:[#allocation11 + $0xcc] sm:$0xf]  ;;  %v2266_v46 = vld [vmem:[#allocation11 + $0xa0] sm:$0xf]  ;;  %v2686_v47 = vld [vmem:[#allocation11 + $0xac] sm:$0xf0]  ;;  %1187 = vmatpush.bf16.msrb.mxu0 %v2283_v39 }
  0xcc   :  { %v2295_v48 = vor.u32 %v2689_v43, %v2292_v45  ;;  %v2267_v53 = vor.u32 %v2686_v47, %v2266_v46  ;;  %v2202_v31 = vld [vmem:[#allocation11 + $0x20] sm:$0xf]  ;;  %v2664_v45 = vld [vmem:[#allocation11 + $0x4] sm:$0xf]  ;;  %v2188_v47 = vld [vmem:[#allocation11 + $0x10] sm:$0xf0] }
  0xcd   :  { %v657_v54 = vmax.f32 %v567_v50, 0.0  ;;  %v654_v60 = vmax.f32 %v593_v52, 0.0  ;;  %v2268_v50 = vld [vmem:[#allocation11 + $0xb0] sm:$0xf0]  ;;  %v2274_v52 = vld [vmem:[#allocation11 + $0xa8] sm:$0xf]  ;;  %v2203_v34 = vor.u32 %v2670_v32, %v2202_v31 }
  0xce   :  { %1229 = vmatpush.bf16.msrb.mxu3 %v2295_v48  ;;  %v2186_v43 = vld [vmem:[#allocation11] sm:$0xf]  ;;  %v2194_v48 = vld [vmem:[#allocation11 + $0x8] sm:$0xf] }
  0xcf   :  { %v661_v59 = vpack.c.bf16 %v657_v54, %v653_v49  ;;  %v2684_v49 = vld [vmem:[#allocation11 + $0xa4] sm:$0xf]  ;;  %v2687_v54 = vld [vmem:[#allocation11 + $0xb4] sm:$0xf0]  ;;  %1215 = vmatpush.bf16.msrb.mxu2 %v2291_v44  ;;  %1188 = vmatpush.bf16.msrb.mxu0 %v2267_v53  ;;  %v2666_v44 = vld [vmem:[#allocation11 + $0xc] sm:$0xf0] }
  0xd0   :  { %v580_v56 = vpop.f32.mrf.mxu2  ;;  %v2187_v46 = vor.u32 %v2666_v44, %v2186_v43  ;;  %v2665_v53 = vld [vmem:[#allocation11 + $0xc] sm:$0xf]  ;;  %v2703_v43 = vld [vmem:[#allocation13 + $0x34] sm:$0xf0]  ;;  %v2402_v44 = vld [vmem:[#allocation13 + $0xb0] sm:$0xf] }
  0xd1   :  { %v581_v57 = vadd.f32 %v580_v56, %v214_v37  ;;  %v594_v58 = vpop.f32.mrf.mxu3  ;;  %933 = vmatmul.bf16.vlgmr.msra.gmra.mxu0 %v661_v59  ;;  %v2688_v37 = vld [vmem:[#allocation11 + $0xc4] sm:$0xf]  ;;  %v2685_v56 = vld [vmem:[#allocation11 + $0xac] sm:$0xf]  ;;  %v2275_v59 = vor.u32 %v2687_v54, %v2274_v52  ;;  %v2196_v54 = vld [vmem:[#allocation11 + $0x18] sm:$0xf0] }
  0xd2   :  { %v2287_v40 = vor.u32 %v2688_v37, %v2284_v38  ;;  %v2671_v37 = vld [vmem:[#allocation11 + $0x34] sm:$0xf0]  ;;  %v2207_v38 = vor.u32 %v2668_v33, %v2204_v35 }
  0xd3   :  { %v595_v61 = vadd.f32 %v594_v58, %v581_v57  ;;  %v2276_v57 = vld [vmem:[#allocation11 + $0xb8] sm:$0xf0]  ;;  %v2271_v58 = vor.u32 %v2684_v49, %v2268_v50  ;;  %1216 = vmatpush.bf16.msrb.mxu2 %v2275_v59  ;;  %v2211_v39 = vor.u32 %v2671_v37, %v2210_v36  ;;  %v2667_v49 = vld [vmem:[#allocation11 + $0x14] sm:$0xf0]  ;;  %v2191_v50 = vor.u32 %v2664_v45, %v2188_v47  ;;  %v2434_v59 = vld [vmem:[#allocation13 + $0xf0] sm:$0xf] }
  0xd4   :  { %1201 = vmatpush.bf16.msrb.mxu1 %v2287_v40  ;;  %v2669_v40 = vld [vmem:[#allocation11 + $0x2c] sm:$0xf]  ;;  %v2195_v52 = vor.u32 %v2667_v49, %v2194_v48  ;;  %v2737_v37 = vld [vmem:[#allocation13 + $0x144] sm:$0xf0]  ;;  %v2719_v45 = vld [vmem:[#allocation13 + $0xb4] sm:$0xf0] }
  0xd5   :  { %v658_v63 = vmax.f32 %v595_v61, 0.0  ;;  %v2250_v61 = vld [vmem:[#allocation11 + $0x80] sm:$0xf]  ;;  %v2215_v42 = vor.u32 %v2669_v40, %v2212_v41  ;;  %v2411_v41 = vor.u32 %v2721_v29, %v2410_v28  ;;  %v2466_v48 = vld [vmem:[#allocation13 + $0x130] sm:$0xf] }
  0xd6   :  { %v2710_v29 = vld [vmem:[#allocation13 + $0x74] sm:$0xf] }
  0xd7   :  { %v662_v0 = vpack.c.bf16 %v658_v63, %v654_v60  ;;  %v2279_v60 = vor.u32 %v2685_v56, %v2276_v57  ;;  %v2680_v63 = vld [vmem:[#allocation11 + $0x84] sm:$0xf]  ;;  %v2199_v56 = vor.u32 %v2665_v53, %v2196_v54  ;;  %v2370_v57 = vld [vmem:[#allocation13 + $0x70] sm:$0xf]  ;;  %v2751_v54 = vld [vmem:[#allocation13 + $0x1b4] sm:$0xf0] }
  0xd8   :  { %1202 = vmatpush.bf16.msrb.mxu1 %v2271_v58  ;;  %v2711_v58 = vld [vmem:[#allocation13 + $0x74] sm:$0xf0]  ;;  %v2530_v53 = vld [vmem:[#allocation13 + $0x1b0] sm:$0xf] }
  0xd9   :  { %947 = vmatmul.bf16.vlgmr.msra.gmra.mxu1 %v662_v0  ;;  %1230 = vmatpush.bf16.msrb.mxu3 %v2279_v60  ;;  %v2251_v0 = vor.u32 %v2682_v62, %v2250_v61  ;;  %v2371_v60 = vor.u32 %v2711_v58, %v2370_v57  ;;  %v2727_v61 = vld [vmem:[#allocation13 + $0xf4] sm:$0xf0]  ;;  %v2362_v62 = vld [vmem:[#allocation13 + $0x60] sm:$0xf]  ;;  %v2701_v58 = vld [vmem:[#allocation13 + $0x24] sm:$0xf0] }
  0xda   :  { %v2330_v57 = vld [vmem:[#allocation13 + $0x20] sm:$0xf] }
  0xdb   :  { %1189 = vmatpush.bf16.msrb.mxu0 %v2251_v0  ;;  %v2435_v0 = vor.u32 %v2727_v61, %v2434_v59  ;;  %v2717_v61 = vld [vmem:[#allocation13 + $0xa4] sm:$0xf0] }
  0xe0   :  { %v606_v1 = vpop.f32.mrf.mxu0 }
  0xe1   :  { %v620_v3 = vpop.f32.mrf.mxu1  ;;  %v607_v4 = vadd.f32 %v606_v1, %v215_v2  ;;  %v2252_v1 = vld [vmem:[#allocation11 + $0x90] sm:$0xf0] }
  0xe3   :  { %v621_v9 = vadd.f32 %v620_v3, %v607_v4  ;;  %v2683_v3 = vld [vmem:[#allocation11 + $0x94] sm:$0xf0]  ;;  %v2255_v4 = vor.u32 %v2680_v63, %v2252_v1  ;;  %v2709_v63 = vld [vmem:[#allocation13 + $0x64] sm:$0xf0]  ;;  %v2426_v1 = vld [vmem:[#allocation13 + $0xe0] sm:$0xf] }
  0xe5   :  { %v655_v14 = vmax.f32 %v621_v9, 0.0  ;;  %1203 = vmatpush.bf16.msrb.mxu1 %v2255_v4  ;;  %v2363_v4 = vor.u32 %v2709_v63, %v2362_v62 }
  0xe8   :  { %v634_v5 = vpop.f32.mrf.mxu2  ;;  %v608_v8 = vpop.f32.mrf.mxu0 }
  0xe9   :  { %v648_v7 = vpop.f32.mrf.mxu3  ;;  %v609_v10 = vadd.f32 %v608_v8, %v215_v2  ;;  %v622_v11 = vpop.f32.mrf.mxu1  ;;  %v635_v13 = vadd.f32 %v634_v5, %v216_v6  ;;  %v2258_v2 = vld [vmem:[#allocation11 + $0x88] sm:$0xf]  ;;  %v2234_v8 = vld [vmem:[#allocation11 + $0x60] sm:$0xf] }
  0xea   :  { %v2259_v5 = vor.u32 %v2683_v3, %v2258_v2  ;;  %v2725_v2 = vld [vmem:[#allocation13 + $0xe4] sm:$0xf0]  ;;  %v2498_v3 = vld [vmem:[#allocation13 + $0x170] sm:$0xf] }
  0xeb   :  { %v623_v12 = vadd.f32 %v622_v11, %v609_v10  ;;  %v649_v18 = vadd.f32 %v648_v7, %v635_v13  ;;  %v2260_v7 = vld [vmem:[#allocation11 + $0x98] sm:$0xf0]  ;;  %v2678_v10 = vld [vmem:[#allocation11 + $0x6c] sm:$0xf0]  ;;  %v2676_v11 = vld [vmem:[#allocation11 + $0x64] sm:$0xf] }
  0xec   :  { %1217 = vmatpush.bf16.msrb.mxu2 %v2259_v5  ;;  %v2235_v13 = vor.u32 %v2678_v10, %v2234_v8  ;;  %v2743_v5 = vld [vmem:[#allocation13 + $0x174] sm:$0xf0]  ;;  %v2427_v8 = vor.u32 %v2725_v2, %v2426_v1  ;;  %v2531_v1 = vor.u32 %v2751_v54, %v2530_v53  ;;  %v2458_v2 = vld [vmem:[#allocation13 + $0x120] sm:$0xf]  ;;  %v2742_v54 = vld [vmem:[#allocation13 + $0x174] sm:$0xf] }
  0xed   :  { %v659_v15 = vmax.f32 %v623_v12, 0.0  ;;  %v656_v20 = vmax.f32 %v649_v18, 0.0  ;;  %v2236_v12 = vld [vmem:[#allocation11 + $0x70] sm:$0xf0] }
  0xee   :  { %1190 = vmatpush.bf16.msrb.mxu0 %v2235_v13  ;;  %v2418_v13 = vld [vmem:[#allocation13 + $0xd0] sm:$0xf] }
  0xef   :  { %v663_v16 = vpack.c.bf16 %v659_v15, %v655_v14  ;;  %v2239_v14 = vor.u32 %v2676_v11, %v2236_v12  ;;  %v2242_v15 = vld [vmem:[#allocation11 + $0x68] sm:$0xf]  ;;  %v2354_v11 = vld [vmem:[#allocation13 + $0x50] sm:$0xf]  ;;  %v2707_v12 = vld [vmem:[#allocation13 + $0x54] sm:$0xf0] }
  0xf0   :  { %v636_v17 = vpop.f32.mrf.mxu2 }
  0xf1   :  { %v637_v19 = vadd.f32 %v636_v17, %v216_v6  ;;  %v650_v51 = vpop.f32.mrf.mxu3  ;;  %961 = vmatmul.bf16.vlgmr.msra.gmra.mxu2 %v663_v16  ;;  %v2681_v6 = vld [vmem:[#allocation11 + $0x8c] sm:$0xf]  ;;  %v2679_v16 = vld [vmem:[#allocation11 + $0x74] sm:$0xf0]  ;;  %1204 = vmatpush.bf16.msrb.mxu1 %v2239_v14 }
  0xf2   :  { %v2263_v9 = vor.u32 %v2681_v6, %v2260_v7  ;;  %v2677_v17 = vld [vmem:[#allocation11 + $0x6c] sm:$0xf]  ;;  %v2243_v18 = vor.u32 %v2679_v16, %v2242_v15  ;;  %v2562_v6 = vld [vmem:[#allocation13 + $0x1f0] sm:$0xf]  ;;  %v2759_v7 = vld [vmem:[#allocation13 + $0x1f4] sm:$0xf0] }
  0xf3   :  { %v651_v55 = vadd.f32 %v650_v51, %v637_v19  ;;  %v2244_v19 = vld [vmem:[#allocation11 + $0x78] sm:$0xf0]  ;;  %v2563_v10 = vor.u32 %v2759_v7, %v2562_v6  ;;  %v2723_v14 = vld [vmem:[#allocation13 + $0xd4] sm:$0xf0]  ;;  %v2490_v15 = vld [vmem:[#allocation13 + $0x160] sm:$0xf] }
  0xf4   :  { %1231 = vmatpush.bf16.msrb.mxu3 %v2263_v9  ;;  %v2247_v51 = vor.u32 %v2677_v17, %v2244_v19  ;;  %1218 = vmatpush.bf16.msrb.mxu2 %v2243_v18  ;;  %v2499_v9 = vor.u32 %v2743_v5, %v2498_v3  ;;  %v2741_v16 = vld [vmem:[#allocation13 + $0x164] sm:$0xf0]  ;;  %v2554_v18 = vld [vmem:[#allocation13 + $0x1e0] sm:$0xf]  ;;  %v2419_v24 = vor.u32 %v2723_v14, %v2418_v13  ;;  %v2386_v13 = vld [vmem:[#allocation13 + $0x90] sm:$0xf] }
  0xf5   :  { %v660_v21 = vmax.f32 %v651_v55, 0.0  ;;  %v2218_v55 = vld [vmem:[#allocation11 + $0x40] sm:$0xf]  ;;  %v2491_v17 = vor.u32 %v2741_v16, %v2490_v15  ;;  %v2757_v19 = vld [vmem:[#allocation13 + $0x1e4] sm:$0xf0] }
  0xf6   :  { %v2733_v5 = vld [vmem:[#allocation13 + $0x124] sm:$0xf0]  ;;  %v2522_v6 = vld [vmem:[#allocation13 + $0x1a0] sm:$0xf]  ;;  %v2715_v14 = vld [vmem:[#allocation13 + $0x94] sm:$0xf0] }
  0xf7   :  { %v664_v22 = vpack.c.bf16 %v660_v21, %v656_v20  ;;  %v2674_v20 = vld [vmem:[#allocation11 + $0x4c] sm:$0xf0]  ;;  %v2672_v21 = vld [vmem:[#allocation11 + $0x44] sm:$0xf]  ;;  %v2749_v7 = vld [vmem:[#allocation13 + $0x1a4] sm:$0xf0]  ;;  %v2459_v16 = vor.u32 %v2733_v5, %v2458_v2 }
  0xf8   :  { %1232 = vmatpush.bf16.msrb.mxu3 %v2247_v51  ;;  %v2223_v26 = vor.u32 %v2672_v21, %v2220_v23  ;;  %1219 = vmatpush.bf16.msrb.mxu2 %v2227_v27  ;;  %v3125_v51 = vld [vmem:[#allocation10] ss:$0 sm:$0xff]  ;;  %v2346_v21 = vld [vmem:[#allocation13 + $0x40] sm:$0xf]  ;;  %v2546_v27 = vld [vmem:[#allocation13 + $0x1d0] sm:$0xf] }
  0xf9   :  { %975 = vmatmul.bf16.vlgmr.msra.gmra.mxu3 %v664_v22  ;;  %v2219_v22 = vor.u32 %v2674_v20, %v2218_v55  ;;  %v2355_v55 = vor.u32 %v2707_v12, %v2354_v11  ;;  %v2555_v20 = vor.u32 %v2757_v19, %v2554_v18  ;;  %v2699_v11 = vld [vmem:[#allocation13 + $0x14] sm:$0xf0]  ;;  %v2756_v5 = vld [vmem:[#allocation13 + $0x1e4] sm:$0xf] }
  0xfa   :  { %1205 = vmatpush.bf16.msrb.mxu1 %v2223_v26  ;;  %v2739_v26 = vld [vmem:[#allocation13 + $0x154] sm:$0xf0] }
  0xfb   :  { %1191 = vmatpush.bf16.msrb.mxu0 %v2219_v22  ;;  %v2705_v22 = vld [vmem:[#allocation13 + $0x44] sm:$0xf0]  ;;  %v2483_v32 = vor.u32 %v2739_v26, %v2482_v25 }
  0xfc   :  { %1233 = vmatpush.bf16.msrb.mxu3 %v2231_v30  ;;  %1220 = vmatpush.bf16.msrb.mxu2 %v2211_v39  ;;  %v2755_v30 = vld [vmem:[#allocation13 + $0x1d4] sm:$0xf0]  ;;  %v2347_v36 = vor.u32 %v2705_v22, %v2346_v21  ;;  %v2753_v39 = vld [vmem:[#allocation13 + $0x1c4] sm:$0xf0]  ;;  %v2314_v21 = vld [vmem:[#allocation13] sm:$0xf] }
  0xfd   :  { %v2547_v33 = vor.u32 %v2755_v30, %v2546_v27  ;;  %v2372_v30 = vld [vmem:[#allocation13 + $0x78] sm:$0xf0] }
  0xfe   :  { %1206 = vmatpush.bf16.msrb.mxu1 %v2207_v38  ;;  %v2538_v38 = vld [vmem:[#allocation13 + $0x1c0] sm:$0xf] }
  0xff   :  { %1192 = vmatpush.bf16.msrb.mxu0 %v2203_v34  ;;  %v2474_v34 = vld [vmem:[#allocation13 + $0x140] sm:$0xf]  ;;  %v2539_v47 = vor.u32 %v2753_v39, %v2538_v38  ;;  %v2514_v38 = vld [vmem:[#allocation13 + $0x190] sm:$0xf]  ;;  %v2747_v39 = vld [vmem:[#allocation13 + $0x194] sm:$0xf0] }
 0x100   :  { %1234 = vmatpush.bf16.msrb.mxu3 %v2215_v42  ;;  %1221 = vmatpush.bf16.msrb.mxu2 %v2195_v52  ;;  %v2338_v42 = vld [vmem:[#allocation13 + $0x30] sm:$0xf]  ;;  %v2735_v52 = vld [vmem:[#allocation13 + $0x134] sm:$0xf0] }
 0x102   :  { %1207 = vmatpush.bf16.msrb.mxu1 %v2191_v50  ;;  %v2339_v50 = vor.u32 %v2703_v43, %v2338_v42  ;;  %v2364_v42 = vld [vmem:[#allocation13 + $0x68] sm:$0xf0]  ;;  %v2724_v43 = vld [vmem:[#allocation13 + $0xe4] sm:$0xf] }
 0x103   :  { %1193 = vmatpush.bf16.msrb.mxu0 %v2187_v46  ;;  %v2475_v46 = vor.u32 %v2737_v37, %v2474_v34  ;;  %v2450_v34 = vld [vmem:[#allocation13 + $0x110] sm:$0xf] }
 0x104   :  { %1235 = vmatpush.bf16.msrb.mxu3 %v2199_v56  ;;  %1672 = vmatpush.bf16.msra.mxu2 %v2499_v9  ;;  %v2403_v56 = vor.u32 %v2719_v45, %v2402_v44  ;;  %v2428_v45 = vld [vmem:[#allocation13 + $0xe8] sm:$0xf0] }
 0x106   :  { %1658 = vmatpush.bf16.msra.mxu1 %v2435_v0  ;;  %v2467_v0 = vor.u32 %v2735_v52, %v2466_v48  ;;  %v2431_v48 = vor.u32 %v2724_v43, %v2428_v45  ;;  %v2745_v52 = vld [vmem:[#allocation13 + $0x184] sm:$0xf0]  ;;  %v2698_v43 = vld [vmem:[#allocation13 + $0x14] sm:$0xf] }
 0x107   :  { %1644 = vmatpush.bf16.msra.mxu0 %v2371_v60  ;;  %v2394_v60 = vld [vmem:[#allocation13 + $0xa0] sm:$0xf]  ;;  %v2714_v45 = vld [vmem:[#allocation13 + $0x94] sm:$0xf] }
 0x108   :  { %1686 = vmatpush.bf16.msra.mxu3 %v2563_v10  ;;  %1673 = vmatpush.bf16.msra.mxu2 %v2491_v17  ;;  %v2395_v9 = vor.u32 %v2717_v61, %v2394_v60  ;;  %v2322_v10 = vld [vmem:[#allocation13 + $0x10] sm:$0xf]  ;;  %v2523_v17 = vor.u32 %v2749_v7, %v2522_v6  ;;  %v2706_v60 = vld [vmem:[#allocation13 + $0x54] sm:$0xf]  ;;  %v2556_v7 = vld [vmem:[#allocation13 + $0x1e8] sm:$0xf0] }
 0x109   :  { %v2323_v19 = vor.u32 %v2699_v11, %v2322_v10  ;;  %v2348_v10 = vld [vmem:[#allocation13 + $0x48] sm:$0xf0]  ;;  %v2720_v11 = vld [vmem:[#allocation13 + $0xc4] sm:$0xf] }
 0x10a   :  { %1659 = vmatpush.bf16.msra.mxu1 %v2427_v8 }
 0x10b   :  { %1645 = vmatpush.bf16.msra.mxu0 %v2363_v4  ;;  %v2331_v4 = vor.u32 %v2701_v58, %v2330_v57  ;;  %v2758_v57 = vld [vmem:[#allocation13 + $0x1f4] sm:$0xf] }
 0x10c   :  { %1687 = vmatpush.bf16.msra.mxu3 %v2555_v20  ;;  %1674 = vmatpush.bf16.msra.mxu2 %v2483_v32  ;;  %v2375_v32 = vor.u32 %v2710_v29, %v2372_v30  ;;  %v2540_v29 = vld [vmem:[#allocation13 + $0x1c8] sm:$0xf0] }
 0x10e   :  { %1660 = vmatpush.bf16.msra.mxu1 %v2419_v24  ;;  %v2713_v24 = vld [vmem:[#allocation13 + $0x84] sm:$0xf0] }
 0x10f   :  { %1646 = vmatpush.bf16.msra.mxu0 %v2355_v55  ;;  %v2387_v55 = vor.u32 %v2715_v14, %v2386_v13  ;;  %v2412_v13 = vld [vmem:[#allocation13 + $0xc8] sm:$0xf0] }
 0x110   :  { %1688 = vmatpush.bf16.msra.mxu3 %v2547_v33  ;;  %1675 = vmatpush.bf16.msra.mxu2 %v2475_v46  ;;  %v2436_v33 = vld [vmem:[#allocation13 + $0xf8] sm:$0xf0]  ;;  %v2442_v46 = vld [vmem:[#allocation13 + $0x100] sm:$0xf]  ;;  %v2415_v14 = vor.u32 %v2720_v11, %v2412_v13 }
 0x112   :  { %1661 = vmatpush.bf16.msra.mxu1 %v2411_v41  ;;  %v2708_v41 = vld [vmem:[#allocation13 + $0x64] sm:$0xf] }
 0x113   :  { %1647 = vmatpush.bf16.msra.mxu0 %v2347_v36  ;;  %v2367_v44 = vor.u32 %v2708_v41, %v2364_v42  ;;  %v2532_v41 = vld [vmem:[#allocation13 + $0x1b8] sm:$0xf0] }
 0x114   :  { %1689 = vmatpush.bf16.msra.mxu3 %v2539_v47  ;;  %1676 = vmatpush.bf16.msra.mxu2 %v2467_v0  ;;  %v2729_v47 = vld [vmem:[#allocation13 + $0x104] sm:$0xf0]  ;;  %v2420_v0 = vld [vmem:[#allocation13 + $0xd8] sm:$0xf0] }
 0x116   :  { %1662 = vmatpush.bf16.msra.mxu1 %v2403_v56  ;;  %v2500_v56 = vld [vmem:[#allocation13 + $0x178] sm:$0xf0] }
 0x117   :  { %1648 = vmatpush.bf16.msra.mxu0 %v2339_v50  ;;  %v2506_v50 = vld [vmem:[#allocation13 + $0x180] sm:$0xf]  ;;  %v2503_v58 = vor.u32 %v2742_v54, %v2500_v56  ;;  %v2524_v54 = vld [vmem:[#allocation13 + $0x1a8] sm:$0xf0]  ;;  %v2696_v56 = vld [vmem:[#allocation13 + $0x4] sm:$0xf] }
 0x118   :  { %1690 = vmatpush.bf16.msra.mxu3 %v2531_v1  ;;  %1677 = vmatpush.bf16.msra.mxu2 %v2459_v16  ;;  %v2507_v53 = vor.u32 %v2745_v52, %v2506_v50  ;;  %v2484_v16 = vld [vmem:[#allocation13 + $0x158] sm:$0xf0] }
 0x11a   :  { %1663 = vmatpush.bf16.msra.mxu1 %v2395_v9  ;;  %v2704_v9 = vld [vmem:[#allocation13 + $0x44] sm:$0xf] }
 0x11b   :  { %1649 = vmatpush.bf16.msra.mxu0 %v2331_v4  ;;  %v2492_v4 = vld [vmem:[#allocation13 + $0x168] sm:$0xf0] }
 0x11c   :  { %1691 = vmatpush.bf16.msra.mxu3 %v2523_v17  ;;  %v2754_v17 = vld [vmem:[#allocation13 + $0x1d4] sm:$0xf] }
 0x11e   :  { %1664 = vmatpush.bf16.msra.mxu1 %v2387_v55 }
 0x11f   :  { %1650 = vmatpush.bf16.msra.mxu0 %v2323_v19  ;;  %v2548_v19 = vld [vmem:[#allocation13 + $0x1d8] sm:$0xf0] }
 0x120   :  { %v2551_v55 = vor.u32 %v2754_v17, %v2548_v19 }
 0x14e   :  { %v934_v23 = vpop.f32.mrf.mxu0 }
 0x14f   :  { %v935_v35 = vadd.f32 %v3125_v51, %v934_v23  ;;  %v2697_v23 = vld [vmem:[#allocation13 + $0x4] sm:$0xf0] }
 0x150   :  { %v2315_v27 = vor.u32 %v2697_v23, %v2314_v21  ;;  %v2340_v21 = vld [vmem:[#allocation13 + $0x38] sm:$0xf0] }
 0x152   :  { %1651 = vmatpush.bf16.msra.mxu0 %v2315_v27  ;;  %v2752_v27 = vld [vmem:[#allocation13 + $0x1c4] sm:$0xf] }
 0x153   :  { %v2543_v30 = vor.u32 %v2752_v27, %v2540_v29 }
 0x156   :  { %v948_v31 = vpop.f32.mrf.mxu1  ;;  %v936_v62 = vpop.f32.mrf.mxu0 }
 0x157   :  { %v949_v49 = vadd.f32 %v948_v31, %v935_v35  ;;  %v937_v12 = vadd.f32 %v3125_v51, %v936_v62  ;;  %v2378_v51 = vld [vmem:[#allocation13 + $0x80] sm:$0xf]  ;;  %v2726_v31 = vld [vmem:[#allocation13 + $0xf4] sm:$0xf]  ;;  %v2731_v35 = vld [vmem:[#allocation13 + $0x114] sm:$0xf0] }
 0x158   :  { %v2379_v28 = vor.u32 %v2713_v24, %v2378_v51  ;;  %v2439_v36 = vor.u32 %v2726_v31, %v2436_v33  ;;  %v2451_v37 = vor.u32 %v2731_v35, %v2450_v34  ;;  %v2356_v62 = vld [vmem:[#allocation13 + $0x58] sm:$0xf0]  ;;  %v2700_v31 = vld [vmem:[#allocation13 + $0x24] sm:$0xf]  ;;  %v2396_v35 = vld [vmem:[#allocation13 + $0xa8] sm:$0xf0] }
 0x159   :  { %v2359_v1 = vor.u32 %v2706_v60, %v2356_v62  ;;  %v2404_v51 = vld [vmem:[#allocation13 + $0xb8] sm:$0xf0]  ;;  %v2716_v33 = vld [vmem:[#allocation13 + $0xa4] sm:$0xf]  ;;  %v2380_v60 = vld [vmem:[#allocation13 + $0x88] sm:$0xf0] }
 0x15a   :  { %1665 = vmatpush.bf16.msra.mxu1 %v2379_v28  ;;  %1678 = vmatpush.bf16.msra.mxu2 %v2451_v37  ;;  %v2734_v37 = vld [vmem:[#allocation13 + $0x134] sm:$0xf] }
 0x15e   :  { %v950_v8 = vpop.f32.mrf.mxu1 }
 0x15f   :  { %v951_v18 = vadd.f32 %v950_v8, %v937_v12  ;;  %v2559_v8 = vor.u32 %v2756_v5, %v2556_v7  ;;  %v2351_v12 = vor.u32 %v2704_v9, %v2348_v10  ;;  %v2728_v5 = vld [vmem:[#allocation13 + $0x104] sm:$0xf] }
 0x160   :  { %v2744_v7 = vld [vmem:[#allocation13 + $0x184] sm:$0xf] }
 0x174   :  { %v962_v40 = vpop.f32.mrf.mxu2 }
 0x175   :  { %v963_v59 = vadd.f32 %v962_v40, %v949_v49  ;;  %v2515_v40 = vor.u32 %v2747_v39, %v2514_v38  ;;  %v2443_v49 = vor.u32 %v2729_v47, %v2442_v46  ;;  %v2468_v38 = vld [vmem:[#allocation13 + $0x138] sm:$0xf0]  ;;  %v2750_v39 = vld [vmem:[#allocation13 + $0x1b4] sm:$0xf] }
 0x176   :  { %v2535_v42 = vor.u32 %v2750_v39, %v2532_v41  ;;  %v2388_v47 = vld [vmem:[#allocation13 + $0x98] sm:$0xf0] }
 0x177   :  { %1692 = vmatpush.bf16.msra.mxu3 %v2515_v40  ;;  %1679 = vmatpush.bf16.msra.mxu2 %v2443_v49  ;;  %v2471_v40 = vor.u32 %v2734_v37, %v2468_v38  ;;  %v2460_v49 = vld [vmem:[#allocation13 + $0x128] sm:$0xf0]  ;;  %v2391_v50 = vor.u32 %v2714_v45, %v2388_v47 }
 0x17b   :  { %1693 = vmatpush.bf16.msra.mxu3 %v2507_v53  ;;  %v2748_v53 = vld [vmem:[#allocation13 + $0x1a4] sm:$0xf] }
 0x17c   :  { %v976_v63 = vpop.f32.mrf.mxu3  ;;  %v964_v15 = vpop.f32.mrf.mxu2 }
 0x17d   :  { %v977_v3 = vadd.f32 %v976_v63, %v963_v59  ;;  %v965_v20 = vadd.f32 %v964_v15, %v951_v18  ;;  %v2564_v59 = vld [vmem:[#allocation13 + $0x1f8] sm:$0xf0]  ;;  %v2722_v63 = vld [vmem:[#allocation13 + $0xd4] sm:$0xf] }
 0x17e   :  { %v2567_v61 = vor.u32 %v2758_v57, %v2564_v59  ;;  %v2423_v2 = vor.u32 %v2722_v63, %v2420_v0  ;;  %v2738_v15 = vld [vmem:[#allocation13 + $0x154] sm:$0xf]  ;;  %v2527_v57 = vor.u32 %v2748_v53, %v2524_v54  ;;  %v2712_v59 = vld [vmem:[#allocation13 + $0x84] sm:$0xf]  ;;  %v2452_v0 = vld [vmem:[#allocation13 + $0x118] sm:$0xf0] }
 0x17f   :  { %981 = vst [vmem:[#allocation14] sm:$0xff] %v977_v3  ;;  %v2487_v18 = vor.u32 %v2738_v15, %v2484_v16  ;;  %v2383_v62 = vor.u32 %v2712_v59, %v2380_v60  ;;  %v2730_v63 = vld [vmem:[#allocation13 + $0x114] sm:$0xf] }
 0x184   :  { %v978_v22 = vpop.f32.mrf.mxu3 }
 0x185   :  { %v979_v25 = vadd.f32 %v978_v22, %v965_v20  ;;  %v2702_v20 = vld [vmem:[#allocation13 + $0x34] sm:$0xf] }
 0x186   :  { %v2718_v22 = vld [vmem:[#allocation13 + $0xb4] sm:$0xf]  ;;  %v2343_v23 = vor.u32 %v2702_v20, %v2340_v21 }
 0x187   :  { %982 = vst [vmem:[#allocation14 + $0x8] sm:$0xff] %v979_v25  ;;  %v983_v26 = vpack.c.bf16 %v979_v25, %v977_v3  ;;  %v2740_v3 = vld [vmem:[#allocation13 + $0x164] sm:$0xf]  ;;  %v2407_v24 = vor.u32 %v2718_v22, %v2404_v51 }
 0x188   :  { %v2495_v6 = vor.u32 %v2740_v3, %v2492_v4  ;;  %v2736_v25 = vld [vmem:[#allocation13 + $0x144] sm:$0xf]  ;;  %v2455_v3 = vor.u32 %v2730_v63, %v2452_v0 }
 0x189   :  { %1194 = vmatmul.bf16.vlgmr.msrb.gmra.mxu0 %v983_v26  ;;  %1208 = vmatmul.bf16.vlgmr.msrb.gmra.mxu1 %v983_v26 }
 0x18a   :  { %1222 = vmatmul.bf16.vlgmr.msrb.gmra.mxu2 %v983_v26  ;;  %1236 = vmatmul.bf16.vlgmr.msrb.gmra.mxu3 %v983_v26  ;;  %v2476_v26 = vld [vmem:[#allocation13 + $0x148] sm:$0xf0] }
 0x18b   :  { %1700 = vmatpush.bf16.msrb.mxu0 %v2375_v32  ;;  %1714 = vmatpush.bf16.msrb.mxu1 %v2439_v36  ;;  %v2479_v28 = vor.u32 %v2736_v25, %v2476_v26  ;;  %v2332_v32 = vld [vmem:[#allocation13 + $0x28] sm:$0xf0]  ;;  %v2399_v36 = vor.u32 %v2716_v33, %v2396_v35 }
 0x18c   :  { %1728 = vmatpush.bf16.msrb.mxu2 %v2503_v58  ;;  %1742 = vmatpush.bf16.msrb.mxu3 %v2567_v61  ;;  %v2335_v34 = vor.u32 %v2700_v31, %v2332_v32  ;;  %v2316_v58 = vld [vmem:[#allocation13 + $0x8] sm:$0xf0] }
 0x18d   :  { %v2319_v61 = vor.u32 %v2696_v56, %v2316_v58 }
 0x18f   :  { %1701 = vmatpush.bf16.msrb.mxu0 %v2367_v44  ;;  %1715 = vmatpush.bf16.msrb.mxu1 %v2431_v48  ;;  %v2324_v44 = vld [vmem:[#allocation13 + $0x18] sm:$0xf0]  ;;  %v2732_v48 = vld [vmem:[#allocation13 + $0x124] sm:$0xf] }
 0x190   :  { %1729 = vmatpush.bf16.msrb.mxu2 %v2495_v6  ;;  %1743 = vmatpush.bf16.msrb.mxu3 %v2559_v8  ;;  %v2327_v46 = vor.u32 %v2698_v43, %v2324_v44  ;;  %v2463_v52 = vor.u32 %v2732_v48, %v2460_v49  ;;  %v2444_v6 = vld [vmem:[#allocation13 + $0x108] sm:$0xf0]  ;;  %v1016_v8 = vld [vmem:[%s3153_s6] sm:$0xf]  ;;  %s3017_s6 = smov [#allocation14]  }
 0x191   :  { %v2447_v11 = vor.u32 %v2728_v5, %v2444_v6  ;;  %v1019_v15 = vperm.slane %v1016_v8, 1  ;;  %v1021_v51 = vperm.slane %v1016_v8, 3  ;;  %s1764_s3 = sshll.u32 %s3017_s6, 4  ;;  %v1318_v43 = vld [vmem:[%s3155_s8] sm:$0x3]  ;;  %s3018_s8 = smov [#allocation15]   ;;  %s1765_s3 = int_to_ptr.vmem [resolvable:$true] %s1764_s3 }
 0x192   :  { %1772 = dma.vmem_to_hbm [thread:$0]  %s1765_s3, 256, %s1767_s12, [#allocation4], %s3015_s28, %s3015_s28, %s3016_s29   ;;  %v1320_v44 = vperm.slane %v1318_v43, 0  ;;  %v1321_v59 = vperm.slane %v1318_v43, 1 }
 0x193   :  { %1702 = vmatpush.bf16.msrb.mxu0 %v2359_v1  ;;  %1716 = vmatpush.bf16.msrb.mxu1 %v2423_v2  ;;  %v2746_v1 = vld [vmem:[#allocation13 + $0x194] sm:$0xf]  ;;  %v2516_v2 = vld [vmem:[#allocation13 + $0x198] sm:$0xf0]  ;;  %s1777_s9 = sshll.u32 %s3018_s8, 4  ;;  %s1778_s9 = int_to_ptr.vmem [resolvable:$true] %s1777_s9 }
 0x194   :  { %1730 = vmatpush.bf16.msrb.mxu2 %v2487_v18  ;;  %1744 = vmatpush.bf16.msrb.mxu3 %v2551_v55  ;;  %v2519_v4 = vor.u32 %v2746_v1, %v2516_v2 }
 0x197   :  { %1703 = vmatpush.bf16.msrb.mxu0 %v2351_v12  ;;  %1717 = vmatpush.bf16.msrb.mxu1 %v2415_v14  ;;  %v2508_v12 = vld [vmem:[#allocation13 + $0x188] sm:$0xf0]  ;;  %v1018_v14 = vperm.slane %v1016_v8, 0 }
 0x198   :  { %1731 = vmatpush.bf16.msrb.mxu2 %v2479_v28  ;;  %1745 = vmatpush.bf16.msrb.mxu3 %v2543_v30  ;;  %v2511_v13 = vor.u32 %v2744_v7, %v2508_v12 }
 0x19b   :  { %1704 = vmatpush.bf16.msrb.mxu0 %v2343_v23  ;;  %1718 = vmatpush.bf16.msrb.mxu1 %v2407_v24  ;;  %v1020_v23 = vperm.slane %v1016_v8, 2 }
 0x19c   :  { %1732 = vmatpush.bf16.msrb.mxu2 %v2471_v40  ;;  %1746 = vmatpush.bf16.msrb.mxu3 %v2535_v42 }
 0x19f   :  { %1705 = vmatpush.bf16.msrb.mxu0 %v2335_v34  ;;  %1719 = vmatpush.bf16.msrb.mxu1 %v2399_v36 }
 0x1a0   :  { %1733 = vmatpush.bf16.msrb.mxu2 %v2463_v52  ;;  %1747 = vmatpush.bf16.msrb.mxu3 %v2527_v57 }
 0x1a3   :  { %1706 = vmatpush.bf16.msrb.mxu0 %v2327_v46  ;;  %1720 = vmatpush.bf16.msrb.mxu1 %v2391_v50 }
 0x1a4   :  { %1734 = vmatpush.bf16.msrb.mxu2 %v2455_v3  ;;  %1748 = vmatpush.bf16.msrb.mxu3 %v2519_v4 }
 0x1a7   :  { %1707 = vmatpush.bf16.msrb.mxu0 %v2319_v61  ;;  %1721 = vmatpush.bf16.msrb.mxu1 %v2383_v62 }
 0x1a8   :  { %1735 = vmatpush.bf16.msrb.mxu2 %v2447_v11  ;;  %1749 = vmatpush.bf16.msrb.mxu3 %v2511_v13 }
 0x206   :  { %v1195_v9 = vpop.f32.mrf.mxu0  ;;  %v1209_v10 = vpop.f32.mrf.mxu1 }
 0x207   :  { %v1196_v16 = vadd.f32 %v1195_v9, %v1018_v14  ;;  %v1210_v17 = vadd.f32 %v1209_v10, %v1019_v15 }
 0x209   :  { %v1242_v24 = vmax.f32 %v1196_v16, 0.0  ;;  %v1243_v25 = vmax.f32 %v1210_v17, 0.0 }
 0x20d   :  { %v1223_v18 = vpop.f32.mrf.mxu2  ;;  %v1237_v19 = vpop.f32.mrf.mxu3 }
 0x20e   :  { %v1197_v55 = vpop.f32.mrf.mxu0  ;;  %v1211_v20 = vpop.f32.mrf.mxu1  ;;  %v1224_v30 = vadd.f32 %v1223_v18, %v1020_v23  ;;  %v1238_v31 = vadd.f32 %v1237_v19, %v1021_v51 }
 0x20f   :  { %v1198_v21 = vadd.f32 %v1197_v55, %v1018_v14  ;;  %v1212_v22 = vadd.f32 %v1211_v20, %v1019_v15 }
 0x210   :  { %v1244_v36 = vmax.f32 %v1224_v30, 0.0  ;;  %v1245_v37 = vmax.f32 %v1238_v31, 0.0 }
 0x211   :  { %v1246_v26 = vmax.f32 %v1198_v21, 0.0  ;;  %v1247_v27 = vmax.f32 %v1212_v22, 0.0 }
 0x213   :  { %v1250_v28 = vpack.c.bf16 %v1246_v26, %v1242_v24  ;;  %v1251_v29 = vpack.c.bf16 %v1247_v27, %v1243_v25 }
 0x215   :  { %v1225_v32 = vpop.f32.mrf.mxu2  ;;  %v1239_v33 = vpop.f32.mrf.mxu3  ;;  %1652 = vmatmul.bf16.vlgmr.msra.gmra.mxu0 %v1250_v28  ;;  %1666 = vmatmul.bf16.vlgmr.msra.gmra.mxu1 %v1251_v29 }
 0x216   :  { %v1226_v34 = vadd.f32 %v1225_v32, %v1020_v23  ;;  %v1240_v35 = vadd.f32 %v1239_v33, %v1021_v51 }
 0x218   :  { %v1248_v38 = vmax.f32 %v1226_v34, 0.0  ;;  %v1249_v39 = vmax.f32 %v1240_v35, 0.0 }
 0x21a   :  { %v1252_v40 = vpack.c.bf16 %v1248_v38, %v1244_v36  ;;  %v1253_v41 = vpack.c.bf16 %v1249_v39, %v1245_v37 }
 0x21c   :  { %1680 = vmatmul.bf16.vlgmr.msra.gmra.mxu2 %v1252_v40  ;;  %1694 = vmatmul.bf16.vlgmr.msra.gmra.mxu3 %v1253_v41 }
 0x225   :  { %1708 = vmatmul.bf16.vlgmr.msrb.gmra.mxu0 %v1250_v28  ;;  %1722 = vmatmul.bf16.vlgmr.msrb.gmra.mxu1 %v1251_v29 }
 0x22c   :  { %1736 = vmatmul.bf16.vlgmr.msrb.gmra.mxu2 %v1252_v40  ;;  %1750 = vmatmul.bf16.vlgmr.msrb.gmra.mxu3 %v1253_v41 }
 0x292   :  { %v1653_v42 = vpop.f32.mrf.mxu0  ;;  %v1667_v45 = vpop.f32.mrf.mxu1 }
 0x293   :  { %v1654_v46 = vadd.f32 %v1653_v42, %v1320_v44 }
 0x295   :  { %v1668_v48 = vadd.f32 %v1667_v45, %v1654_v46 }
 0x29a   :  { %v1655_v47 = vpop.f32.mrf.mxu0  ;;  %v1669_v53 = vpop.f32.mrf.mxu1 }
 0x29b   :  { %v1656_v54 = vadd.f32 %v1655_v47, %v1320_v44 }
 0x29d   :  { %v1670_v58 = vadd.f32 %v1669_v53, %v1656_v54 }
 0x29f   :  { %v1681_v49 = vpop.f32.mrf.mxu2  ;;  %v1695_v50 = vpop.f32.mrf.mxu3 }
 0x2a0   :  { %v1682_v52 = vadd.f32 %v1681_v49, %v1668_v48 }
 0x2a2   :  { %v1696_v56 = vadd.f32 %v1695_v50, %v1682_v52  ;;  %v1709_v57 = vpop.f32.mrf.mxu0  ;;  %v1723_v1 = vpop.f32.mrf.mxu1 }
 0x2a3   :  { %v1710_v63 = vadd.f32 %v1709_v57, %v1321_v59 }
 0x2a4   :  { %1756 = vst [vmem:[#allocation15] sm:$0xff] %v1696_v56 }
 0x2a5   :  { %v1724_v2 = vadd.f32 %v1723_v1, %v1710_v63 }
 0x2a7   :  { %v1683_v60 = vpop.f32.mrf.mxu2  ;;  %v1697_v61 = vpop.f32.mrf.mxu3 }
 0x2a8   :  { %v1684_v62 = vadd.f32 %v1683_v60, %v1670_v58 }
 0x2aa   :  { %v1698_v0 = vadd.f32 %v1697_v61, %v1684_v62  ;;  %v1711_v3 = vpop.f32.mrf.mxu0  ;;  %v1725_v9 = vpop.f32.mrf.mxu1 }
 0x2ab   :  { %v1712_v7 = vadd.f32 %v1711_v3, %v1321_v59 }
 0x2ac   :  { %1758 = vst [vmem:[#allocation15 + $0x10] sm:$0xff] %v1698_v0 }
 0x2ad   :  { %v1726_v10 = vadd.f32 %v1725_v9, %v1712_v7 }
 0x2af   :  { %v1737_v4 = vpop.f32.mrf.mxu2  ;;  %v1751_v5 = vpop.f32.mrf.mxu3 }
 0x2b0   :  { %v1738_v6 = vadd.f32 %v1737_v4, %v1724_v2 }
 0x2b2   :  { %v1752_v8 = vadd.f32 %v1751_v5, %v1738_v6 }
 0x2b4   :  { %1757 = vst [vmem:[#allocation15 + $0x8] sm:$0xff] %v1752_v8 }
 0x2b7   :  { %v1739_v11 = vpop.f32.mrf.mxu2  ;;  %v1753_v13 = vpop.f32.mrf.mxu3 }
 0x2b8   :  { %v1740_v12 = vadd.f32 %v1739_v11, %v1726_v10 }
 0x2ba   :  { %v1754_v14 = vadd.f32 %v1753_v13, %v1740_v12 }
 0x2bc   :  { %1759 = vst [vmem:[#allocation15 + $0x18] sm:$0xff] %v1754_v14 }
 0x2bd   :  { %1785 = dma.vmem_to_hbm [thread:$0]  %s1778_s9, 512, %s1780_s17, [#allocation16], %s3005_s21, %s3005_s21, %s3006_s22  }
 0x2be   :  { %3000 = dma.done.wait [#allocation4], 256  }
 0x2bf   :  { %3001 = vsyncadd [#allocation4], 4294967040 }
 0x2c0   :  { %3002 = dma.done.wait [#allocation16], 512  }
 0x2c1   :  { %3003 = vsyncadd [#allocation16], 4294966784 }
 0x2c2   :  { %1794 = vsyncpa [#allocation3], 1 }
 0x2c3   :  { %1795 = vsyncpa [#allocation6], 1 }
 0x2c4   :  { %1796 = vsyncpa [#allocation9], 1 }
 0x2c5   :  { %1797 = vsyncpa [#allocation12], 1 }
 0x2c6   :  { %1798 = vsyncpa [#allocation4], 1 }
 0x2c7   :  { %1799 = vsyncpa [#allocation16], 1 }

// kernel: tpu_custom_call.1
= control target key start
LH: loop header
LB: loop body
LE: loop exit
PB: predicated region body
PF: predicated region fallthrough
CT: control target
= control target key end

     0   :  { %16 = vsyncpa [#allocation3], 0  ;;  %s3147_s0 = inlined_call_operand.hbm [shape: f32[16,256], index: 0, kind: input, shape index: {}]   ;;  %s3148_s1 = inlined_call_operand.hbm [shape: bf16[256,512], index: 1, kind: input, shape index: {}]   ;;  %s3149_s2 = inlined_call_operand.hbm [shape: f32[1,512], index: 2, kind: input, shape index: {}]   ;;  %s3150_s3 = inlined_call_operand.hbm [shape: bf16[512,128], index: 3, kind: input, shape index: {}]   ;;  %s3151_s4 = inlined_call_operand.hbm [shape: f32[1,128], index: 4, kind: input, shape index: {}]   ;;  %s3152_s5 = inlined_call_operand.hbm [shape: bf16[128,512], index: 5, kind: input, shape index: {}]   ;;  %s3153_s6 = inlined_call_operand.vmem [shape: f32[1,512], index: 6, kind: input, shape index: {}]   ;;  %s3154_s7 = inlined_call_operand.hbm [shape: bf16[512,256], index: 7, kind: input, shape index: {}]   ;;  %s3155_s8 = inlined_call_operand.vmem [shape: f32[1,256], index: 8, kind: input, shape index: {}]   ;;  %s3156_s9 = inlined_call_operand.hbm [shape: f32[16,128], index: 9, kind: output, shape index: {0}]   ;;  %s3157_s10 = inlined_call_operand.hbm [shape: f32[16,256], index: 10, kind: output, shape index: {1}]  }
   0x1   :  { %17 = vsyncpa [#allocation6], 0 }
   0x2   :  { %18 = vsyncpa [#allocation9], 0 }
   0x3   :  { %19 = vsyncpa [#allocation12], 0 }
   0x4   :  { %20 = vsyncpa [#allocation4], 0 }
   0x5   :  { %21 = vsyncpa [#allocation16], 0  ;;  %s39_s15 = sshll.u32 %s3148_s1, 4  ;;  %s3004_s16 = smov [#allocation5]   ;;  %s40_s15 = int_to_ptr.hbm [resolvable:$true] %s39_s15 }
   0x6   :  { %s41_s17 = sshll.u32 %s3004_s16, 4  ;;  %s63_s20 = sshll.u32 %s3150_s3, 4  ;;  %s42_s17 = int_to_ptr.vmem [resolvable:$true] %s41_s17  ;;  %s64_s20 = int_to_ptr.hbm [resolvable:$true] %s63_s20 }
   0x7   :  { %s3005_s21 = smov 256   ;;  %s3006_s22 = smov 16  }
   0x8   :  { %47 = dma.hbm_to_vmem [thread:$0]  %s40_s15, 8192, %s42_s17, [#allocation6], %s3005_s21, %s3005_s21, %s3006_s22  }
   0x9   :  { %s3007_s23 = smov [#allocation8]   ;;  %s3008_s25 = smov 64  }
   0xa   :  { %s65_s24 = sshll.u32 %s3007_s23, 4  ;;  %s3009_s1 = smov 4   ;;  %s66_s24 = int_to_ptr.vmem [resolvable:$true] %s65_s24 }
   0xb   :  { %71 = dma.hbm_to_vmem [thread:$0]  %s64_s20, 4096, %s66_s24, [#allocation9], %s3008_s25, %s3008_s25, %s3009_s1  }
   0xc   :  { %s87_s28 = sshll.u32 %s3152_s5, 4  ;;  %s3010_s29 = smov [#allocation11]   ;;  %s88_s28 = int_to_ptr.hbm [resolvable:$true] %s87_s28 }
   0xd   :  { %s89_s3 = sshll.u32 %s3010_s29, 4  ;;  %s26_s12 = sshll.u32 %s3147_s0, 4  ;;  %s90_s3 = int_to_ptr.vmem [resolvable:$true] %s89_s3  ;;  %s27_s12 = int_to_ptr.hbm [resolvable:$true] %s26_s12 }
   0xe   :  { %95 = dma.hbm_to_vmem [thread:$0]  %s88_s28, 4096, %s90_s3, [#allocation12], %s3005_s21, %s3005_s21, %s3006_s22  }
   0xf   :  { %s3011_s13 = smov [#allocation2]   ;;  %s53_s17 = sshll.u32 %s3149_s2, 4  ;;  %s54_s17 = int_to_ptr.hbm [resolvable:$true] %s53_s17 }
  0x10   :  { %s28_s14 = sshll.u32 %s3011_s13, 4  ;;  %s77_s0 = sshll.u32 %s3151_s4, 4  ;;  %s29_s14 = int_to_ptr.vmem [resolvable:$true] %s28_s14  ;;  %s78_s0 = int_to_ptr.hbm [resolvable:$true] %s77_s0 }
  0x11   :  { %34 = dma.hbm_to_vmem [thread:$0]  %s27_s12, 512, %s29_s14, [#allocation3], %s3005_s21, %s3005_s21, %s3006_s22  }
  0x12   :  { %s3012_s19 = smov [#allocation7]   ;;  %s3013_s23 = smov [#allocation10]  }
  0x13   :  { %s55_s20 = sshll.u32 %s3012_s19, 4  ;;  %s79_s24 = sshll.u32 %s3013_s23, 4  ;;  %s56_s20 = int_to_ptr.vmem [resolvable:$true] %s55_s20  ;;  %s80_s24 = int_to_ptr.vmem [resolvable:$true] %s79_s24 }
  0x14   :  { %58 = dma.hbm_to_vmem [thread:$0]  %s54_s17, 64, %s56_s20, [#allocation6]  }
  0x15   :  { %s102_s2 = sshll.u32 %s3154_s7, 4  ;;  %s3014_s26 = smov [#allocation13]   ;;  %s103_s2 = int_to_ptr.hbm [resolvable:$true] %s102_s2 }
  0x16   :  { %82 = dma.hbm_to_vmem [thread:$0]  %s78_s0, 16, %s80_s24, [#allocation9]  }
  0x17   :  { %s104_s27 = sshll.u32 %s3014_s26, 4  ;;  %s3015_s28 = smov 128   ;;  %s105_s27 = int_to_ptr.vmem [resolvable:$true] %s104_s27 }
  0x18   :  { %s3016_s29 = smov 8  }
  0x19   :  { %110 = dma.hbm_to_vmem [thread:$0]  %s103_s2, 8192, %s105_s27, [#allocation12], %s3015_s28, %s3015_s28, %s3016_s29  }
  0x1a   :  { %2992 = dma.done.wait [#allocation3], 512  }
  0x1b   :  { %2993 = vsyncadd [#allocation3], 4294966784 }
  0x1c   :  { %2994 = dma.done.wait [#allocation6], 8256  }
  0x1d   :  { %2995 = vsyncadd [#allocation6], 4294959040 }
  0x1e   :  { %2996 = dma.done.wait [#allocation9], 4112  }
  0x1f   :  { %2997 = vsyncadd [#allocation9], 4294963184 }
  0x20   :  { %2998 = dma.done.wait [#allocation12], 12288  }
  0x21   :  { %2999 = vsyncadd [#allocation12], 4294955008  ;;  %v1914_v0 = vld [vmem:[#allocation5 + $0xe0] sm:$0xf]  ;;  %v2598_v1 = vld [vmem:[#allocation5 + $0xec] sm:$0xf0] }
  0x22   :  { %v2042_v2 = vld [vmem:[#allocation5 + $0x1e0] sm:$0xf]  ;;  %v1915_v3 = vor.u32 %v2598_v1, %v1914_v0  ;;  %v2630_v4 = vld [vmem:[#allocation5 + $0x1ec] sm:$0xf0]  ;;  %v2596_v5 = vld [vmem:[#allocation5 + $0xe4] sm:$0xf] }
  0x23   :  { %v1916_v6 = vld [vmem:[#allocation5 + $0xf0] sm:$0xf0]  ;;  %v2043_v7 = vor.u32 %v2630_v4, %v2042_v2  ;;  %v2628_v9 = vld [vmem:[#allocation5 + $0x1e4] sm:$0xf]  ;;  %v1898_v11 = vld [vmem:[#allocation5 + $0xc0] sm:$0xf] }
  0x24   :  { %v1919_v8 = vor.u32 %v2596_v5, %v1916_v6  ;;  %v2044_v10 = vld [vmem:[#allocation5 + $0x1f0] sm:$0xf0]  ;;  %541 = vmatpush.bf16.msra.mxu0 %v1915_v3  ;;  %v2594_v13 = vld [vmem:[#allocation5 + $0xcc] sm:$0xf0]  ;;  %v2026_v14 = vld [vmem:[#allocation5 + $0x1c0] sm:$0xf] }
  0x25   :  { %v2047_v12 = vor.u32 %v2628_v9, %v2044_v10  ;;  %v2626_v15 = vld [vmem:[#allocation5 + $0x1cc] sm:$0xf0]  ;;  %555 = vmatpush.bf16.msra.mxu1 %v2043_v7  ;;  %v1899_v16 = vor.u32 %v2594_v13, %v1898_v11  ;;  %v2592_v18 = vld [vmem:[#allocation5 + $0xc4] sm:$0xf]  ;;  %v1900_v19 = vld [vmem:[#allocation5 + $0xd0] sm:$0xf0] }
  0x26   :  { %569 = vmatpush.bf16.msra.mxu2 %v1919_v8  ;;  %v2027_v17 = vor.u32 %v2626_v15, %v2026_v14  ;;  %v2624_v20 = vld [vmem:[#allocation5 + $0x1c4] sm:$0xf]  ;;  %v1903_v21 = vor.u32 %v2592_v18, %v1900_v19  ;;  %v2028_v22 = vld [vmem:[#allocation5 + $0x1d0] sm:$0xf0]  ;;  %v1882_v23 = vld [vmem:[#allocation5 + $0xa0] sm:$0xf] }
  0x27   :  { %583 = vmatpush.bf16.msra.mxu3 %v2047_v12  ;;  %v2590_v24 = vld [vmem:[#allocation5 + $0xac] sm:$0xf0]  ;;  %v2031_v25 = vor.u32 %v2624_v20, %v2028_v22  ;;  %v2010_v26 = vld [vmem:[#allocation5 + $0x1a0] sm:$0xf]  ;;  %v2588_v28 = vld [vmem:[#allocation5 + $0xa4] sm:$0xf] }
  0x28   :  { %v2622_v27 = vld [vmem:[#allocation5 + $0x1ac] sm:$0xf0]  ;;  %542 = vmatpush.bf16.msra.mxu0 %v1899_v16  ;;  %v1883_v29 = vor.u32 %v2590_v24, %v1882_v23  ;;  %v1884_v30 = vld [vmem:[#allocation5 + $0xb0] sm:$0xf0]  ;;  %v2620_v31 = vld [vmem:[#allocation5 + $0x1a4] sm:$0xf] }
  0x29   :  { %v2012_v32 = vld [vmem:[#allocation5 + $0x1b0] sm:$0xf0]  ;;  %556 = vmatpush.bf16.msra.mxu1 %v2027_v17  ;;  %v2011_v33 = vor.u32 %v2622_v27, %v2010_v26  ;;  %v1887_v34 = vor.u32 %v2588_v28, %v1884_v30  ;;  %v1866_v35 = vld [vmem:[#allocation5 + $0x80] sm:$0xf]  ;;  %v2586_v36 = vld [vmem:[#allocation5 + $0x8c] sm:$0xf0] }
  0x2a   :  { %570 = vmatpush.bf16.msra.mxu2 %v1903_v21  ;;  %v1994_v37 = vld [vmem:[#allocation5 + $0x180] sm:$0xf]  ;;  %v2015_v38 = vor.u32 %v2620_v31, %v2012_v32  ;;  %v2618_v39 = vld [vmem:[#allocation5 + $0x18c] sm:$0xf0]  ;;  %v2584_v40 = vld [vmem:[#allocation5 + $0x84] sm:$0xf]  ;;  %v1867_v44 = vor.u32 %v2586_v36, %v1866_v35 }
  0x2b   :  { %584 = vmatpush.bf16.msra.mxu3 %v2031_v25  ;;  %v1868_v41 = vld [vmem:[#allocation5 + $0x90] sm:$0xf0]  ;;  %v2616_v42 = vld [vmem:[#allocation5 + $0x184] sm:$0xf]  ;;  %v1995_v45 = vor.u32 %v2618_v39, %v1994_v37  ;;  %v1850_v47 = vld [vmem:[#allocation5 + $0x60] sm:$0xf] }
  0x2c   :  { %v1996_v43 = vld [vmem:[#allocation5 + $0x190] sm:$0xf0]  ;;  %543 = vmatpush.bf16.msra.mxu0 %v1883_v29  ;;  %v1871_v46 = vor.u32 %v2584_v40, %v1868_v41  ;;  %v2582_v48 = vld [vmem:[#allocation5 + $0x6c] sm:$0xf0]  ;;  %v1978_v49 = vld [vmem:[#allocation5 + $0x160] sm:$0xf] }
  0x2d   :  { %557 = vmatpush.bf16.msra.mxu1 %v2011_v33  ;;  %v1999_v50 = vor.u32 %v2616_v42, %v1996_v43  ;;  %v2614_v51 = vld [vmem:[#allocation5 + $0x16c] sm:$0xf0]  ;;  %v2580_v52 = vld [vmem:[#allocation5 + $0x64] sm:$0xf]  ;;  %v1852_v53 = vld [vmem:[#allocation5 + $0x70] sm:$0xf0]  ;;  %v1851_v56 = vor.u32 %v2582_v48, %v1850_v47 }
  0x2e   :  { %571 = vmatpush.bf16.msra.mxu2 %v1887_v34  ;;  %v2612_v54 = vld [vmem:[#allocation5 + $0x164] sm:$0xf]  ;;  %v1980_v55 = vld [vmem:[#allocation5 + $0x170] sm:$0xf0]  ;;  %v1979_v57 = vor.u32 %v2614_v51, %v1978_v49  ;;  %v1855_v58 = vor.u32 %v2580_v52, %v1852_v53  ;;  %v1834_v59 = vld [vmem:[#allocation5 + $0x40] sm:$0xf] }
  0x2f   :  { %585 = vmatpush.bf16.msra.mxu3 %v2015_v38  ;;  %v2578_v60 = vld [vmem:[#allocation5 + $0x4c] sm:$0xf0]  ;;  %v1962_v61 = vld [vmem:[#allocation5 + $0x140] sm:$0xf]  ;;  %v1983_v62 = vor.u32 %v2612_v54, %v1980_v55  ;;  %v2576_v0 = vld [vmem:[#allocation5 + $0x44] sm:$0xf] }
  0x30   :  { %544 = vmatpush.bf16.msra.mxu0 %v1867_v44  ;;  %v2610_v63 = vld [vmem:[#allocation5 + $0x14c] sm:$0xf0]  ;;  %v1836_v1 = vld [vmem:[#allocation5 + $0x50] sm:$0xf0]  ;;  %v2608_v2 = vld [vmem:[#allocation5 + $0x144] sm:$0xf]  ;;  %v1835_v4 = vor.u32 %v2578_v60, %v1834_v59 }
  0x31   :  { %558 = vmatpush.bf16.msra.mxu1 %v1995_v45  ;;  %v1964_v3 = vld [vmem:[#allocation5 + $0x150] sm:$0xf0]  ;;  %v1963_v5 = vor.u32 %v2610_v63, %v1962_v61  ;;  %v1839_v6 = vor.u32 %v2576_v0, %v1836_v1  ;;  %v1818_v7 = vld [vmem:[#allocation5 + $0x20] sm:$0xf]  ;;  %v2574_v8 = vld [vmem:[#allocation5 + $0x2c] sm:$0xf0] }
  0x32   :  { %572 = vmatpush.bf16.msra.mxu2 %v1871_v46  ;;  %v1946_v9 = vld [vmem:[#allocation5 + $0x120] sm:$0xf]  ;;  %v1967_v10 = vor.u32 %v2608_v2, %v1964_v3  ;;  %v2606_v11 = vld [vmem:[#allocation5 + $0x12c] sm:$0xf0]  ;;  %v2572_v12 = vld [vmem:[#allocation5 + $0x24] sm:$0xf]  ;;  %v1819_v16 = vor.u32 %v2574_v8, %v1818_v7 }
  0x33   :  { %586 = vmatpush.bf16.msra.mxu3 %v1999_v50  ;;  %v1820_v13 = vld [vmem:[#allocation5 + $0x30] sm:$0xf0]  ;;  %v2604_v14 = vld [vmem:[#allocation5 + $0x124] sm:$0xf]  ;;  %v1802_v17 = vld [vmem:[#allocation5] sm:$0xf]  ;;  %v1947_v20 = vor.u32 %v2606_v11, %v1946_v9 }
  0x34   :  { %545 = vmatpush.bf16.msra.mxu0 %v1851_v56  ;;  %v1948_v15 = vld [vmem:[#allocation5 + $0x130] sm:$0xf0]  ;;  %v2570_v18 = vld [vmem:[#allocation5 + $0xc] sm:$0xf0]  ;;  %v1930_v19 = vld [vmem:[#allocation5 + $0x100] sm:$0xf]  ;;  %v1823_v21 = vor.u32 %v2572_v12, %v1820_v13 }
  0x35   :  { %559 = vmatpush.bf16.msra.mxu1 %v1979_v57  ;;  %v2602_v22 = vld [vmem:[#allocation5 + $0x10c] sm:$0xf0]  ;;  %v2568_v23 = vld [vmem:[#allocation5 + $0x4] sm:$0xf]  ;;  %v1804_v24 = vld [vmem:[#allocation5 + $0x10] sm:$0xf0]  ;;  %v1951_v25 = vor.u32 %v2604_v14, %v1948_v15  ;;  %v1803_v32 = vor.u32 %v2570_v18, %v1802_v17 }
  0x36   :  { %573 = vmatpush.bf16.msra.mxu2 %v1855_v58  ;;  %v2600_v26 = vld [vmem:[#allocation5 + $0x104] sm:$0xf]  ;;  %v1932_v27 = vld [vmem:[#allocation5 + $0x110] sm:$0xf0]  ;;  %v1922_v28 = vld [vmem:[#allocation5 + $0xe8] sm:$0xf]  ;;  %v1931_v36 = vor.u32 %v2602_v22, %v1930_v19  ;;  %v1807_v37 = vor.u32 %v2568_v23, %v1804_v24 }
  0x37   :  { %587 = vmatpush.bf16.msra.mxu3 %v1983_v62  ;;  %v2599_v29 = vld [vmem:[#allocation5 + $0xf4] sm:$0xf0]  ;;  %v2050_v30 = vld [vmem:[#allocation5 + $0x1e8] sm:$0xf]  ;;  %v2597_v33 = vld [vmem:[#allocation5 + $0xec] sm:$0xf]  ;;  %v1935_v41 = vor.u32 %v2600_v26, %v1932_v27 }
  0x38   :  { %546 = vmatpush.bf16.msra.mxu0 %v1835_v4  ;;  %v2631_v31 = vld [vmem:[#allocation5 + $0x1f4] sm:$0xf0]  ;;  %v1924_v34 = vld [vmem:[#allocation5 + $0xf8] sm:$0xf0]  ;;  %v2629_v35 = vld [vmem:[#allocation5 + $0x1ec] sm:$0xf]  ;;  %v1923_v42 = vor.u32 %v2599_v29, %v1922_v28 }
  0x39   :  { %560 = vmatpush.bf16.msra.mxu1 %v1963_v5  ;;  %v2052_v38 = vld [vmem:[#allocation5 + $0x1f8] sm:$0xf0]  ;;  %v141_v39 = vld [vmem:[#allocation2] sm:$0xff]  ;;  %v143_v40 = vld [vmem:[#allocation2 + $0x10] sm:$0xff]  ;;  %v2051_v45 = vor.u32 %v2631_v31, %v2050_v30  ;;  %v1927_v46 = vor.u32 %v2597_v33, %v1924_v34  ;;  %s1766_s12 = sshll.u32 %s3156_s9, 4  ;;  %s1779_s17 = sshll.u32 %s3157_s10, 4  ;;  %s1767_s12 = int_to_ptr.hbm [resolvable:$true] %s1766_s12  ;;  %s1780_s17 = int_to_ptr.hbm [resolvable:$true] %s1779_s17 }
  0x3a   :  { %574 = vmatpush.bf16.msra.mxu2 %v1839_v6  ;;  %v142_v43 = vld [vmem:[#allocation2 + $0x8] sm:$0xff]  ;;  %v144_v44 = vld [vmem:[#allocation2 + $0x18] sm:$0xff]  ;;  %v2055_v50 = vor.u32 %v2629_v35, %v2052_v38  ;;  %v3107_v51 = vpack.c.bf16 %v143_v40, %v141_v39 }
  0x3b   :  { %588 = vmatpush.bf16.msra.mxu3 %v1967_v10  ;;  %v1906_v47 = vld [vmem:[#allocation5 + $0xc8] sm:$0xf]  ;;  %v2595_v48 = vld [vmem:[#allocation5 + $0xd4] sm:$0xf0]  ;;  %v2593_v53 = vld [vmem:[#allocation5 + $0xcc] sm:$0xf]  ;;  %v3109_v55 = vpack.c.bf16 %v144_v44, %v142_v43 }
  0x3c   :  { %547 = vmatpush.bf16.msra.mxu0 %v1819_v16  ;;  %v2034_v49 = vld [vmem:[#allocation5 + $0x1c8] sm:$0xf]  ;;  %v2627_v52 = vld [vmem:[#allocation5 + $0x1d4] sm:$0xf0]  ;;  %v1908_v54 = vld [vmem:[#allocation5 + $0xd8] sm:$0xf0]  ;;  %v1907_v58 = vor.u32 %v2595_v48, %v1906_v47 }
  0x3d   :  { %561 = vmatpush.bf16.msra.mxu1 %v1947_v20  ;;  %v2625_v56 = vld [vmem:[#allocation5 + $0x1cc] sm:$0xf]  ;;  %v2036_v57 = vld [vmem:[#allocation5 + $0x1d8] sm:$0xf0]  ;;  %v2035_v59 = vor.u32 %v2627_v52, %v2034_v49  ;;  %v1911_v60 = vor.u32 %v2593_v53, %v1908_v54  ;;  %v1890_v61 = vld [vmem:[#allocation5 + $0xa8] sm:$0xf] }
  0x3e   :  { %575 = vmatpush.bf16.msra.mxu2 %v1823_v21  ;;  %v2591_v62 = vld [vmem:[#allocation5 + $0xb4] sm:$0xf0]  ;;  %v2018_v63 = vld [vmem:[#allocation5 + $0x1a8] sm:$0xf]  ;;  %v2039_v0 = vor.u32 %v2625_v56, %v2036_v57  ;;  %v2589_v2 = vld [vmem:[#allocation5 + $0xac] sm:$0xf] }
  0x3f   :  { %589 = vmatpush.bf16.msra.mxu3 %v1951_v25  ;;  %v2623_v1 = vld [vmem:[#allocation5 + $0x1b4] sm:$0xf0]  ;;  %v1892_v3 = vld [vmem:[#allocation5 + $0xb8] sm:$0xf0]  ;;  %v2621_v4 = vld [vmem:[#allocation5 + $0x1ac] sm:$0xf]  ;;  %v1891_v6 = vor.u32 %v2591_v62, %v1890_v61 }
  0x40   :  { %548 = vmatpush.bf16.msra.mxu0 %v1803_v32  ;;  %v2020_v5 = vld [vmem:[#allocation5 + $0x1b8] sm:$0xf0]  ;;  %v2019_v7 = vor.u32 %v2623_v1, %v2018_v63  ;;  %v1895_v8 = vor.u32 %v2589_v2, %v1892_v3  ;;  %v1874_v9 = vld [vmem:[#allocation5 + $0x88] sm:$0xf]  ;;  %v2587_v10 = vld [vmem:[#allocation5 + $0x94] sm:$0xf0] }
  0x41   :  { %562 = vmatpush.bf16.msra.mxu1 %v1931_v36  ;;  %v2002_v11 = vld [vmem:[#allocation5 + $0x188] sm:$0xf]  ;;  %v2023_v12 = vor.u32 %v2621_v4, %v2020_v5  ;;  %v2619_v13 = vld [vmem:[#allocation5 + $0x194] sm:$0xf0]  ;;  %v2585_v14 = vld [vmem:[#allocation5 + $0x8c] sm:$0xf]  ;;  %v1875_v18 = vor.u32 %v2587_v10, %v1874_v9 }
  0x42   :  { %576 = vmatpush.bf16.msra.mxu2 %v1807_v37  ;;  %v1876_v15 = vld [vmem:[#allocation5 + $0x98] sm:$0xf0]  ;;  %v2617_v16 = vld [vmem:[#allocation5 + $0x18c] sm:$0xf]  ;;  %v2003_v19 = vor.u32 %v2619_v13, %v2002_v11  ;;  %v1858_v21 = vld [vmem:[#allocation5 + $0x68] sm:$0xf] }
  0x43   :  { %590 = vmatpush.bf16.msra.mxu3 %v1935_v41  ;;  %549 = vmatmul.bf16.vlgmr.msra.gmra.mxu0 %v3107_v51  ;;  %v2004_v17 = vld [vmem:[#allocation5 + $0x198] sm:$0xf0]  ;;  %v1879_v20 = vor.u32 %v2585_v14, %v1876_v15  ;;  %v2583_v22 = vld [vmem:[#allocation5 + $0x74] sm:$0xf0]  ;;  %v1986_v23 = vld [vmem:[#allocation5 + $0x168] sm:$0xf] }
  0x44   :  { %597 = vmatpush.bf16.msrb.mxu0 %v1923_v42  ;;  %563 = vmatmul.bf16.vlgmr.msra.gmra.mxu1 %v3109_v55  ;;  %v2007_v24 = vor.u32 %v2617_v16, %v2004_v17  ;;  %v2615_v25 = vld [vmem:[#allocation5 + $0x174] sm:$0xf0]  ;;  %v2581_v26 = vld [vmem:[#allocation5 + $0x6c] sm:$0xf]  ;;  %v1860_v27 = vld [vmem:[#allocation5 + $0x78] sm:$0xf0]  ;;  %v1859_v30 = vor.u32 %v2583_v22, %v1858_v21 }
  0x45   :  { %611 = vmatpush.bf16.msrb.mxu1 %v2051_v45  ;;  %577 = vmatmul.bf16.vlgmr.msra.gmra.mxu2 %v3107_v51  ;;  %v2613_v28 = vld [vmem:[#allocation5 + $0x16c] sm:$0xf]  ;;  %v1988_v29 = vld [vmem:[#allocation5 + $0x178] sm:$0xf0]  ;;  %v1842_v31 = vld [vmem:[#allocation5 + $0x48] sm:$0xf]  ;;  %v1987_v32 = vor.u32 %v2615_v25, %v1986_v23  ;;  %v1863_v33 = vor.u32 %v2581_v26, %v1860_v27 }
  0x46   :  { %625 = vmatpush.bf16.msrb.mxu2 %v1927_v46  ;;  %591 = vmatmul.bf16.vlgmr.msra.gmra.mxu3 %v3109_v55  ;;  %v2579_v34 = vld [vmem:[#allocation5 + $0x54] sm:$0xf0]  ;;  %v1970_v35 = vld [vmem:[#allocation5 + $0x148] sm:$0xf]  ;;  %v1991_v36 = vor.u32 %v2613_v28, %v1988_v29  ;;  %v2577_v38 = vld [vmem:[#allocation5 + $0x4c] sm:$0xf] }
  0x47   :  { %639 = vmatpush.bf16.msrb.mxu3 %v2055_v50  ;;  %v2611_v37 = vld [vmem:[#allocation5 + $0x154] sm:$0xf0]  ;;  %v1844_v39 = vld [vmem:[#allocation5 + $0x58] sm:$0xf0]  ;;  %v2609_v40 = vld [vmem:[#allocation5 + $0x14c] sm:$0xf]  ;;  %v1843_v42 = vor.u32 %v2579_v34, %v1842_v31 }
  0x48   :  { %598 = vmatpush.bf16.msrb.mxu0 %v1907_v58  ;;  %v1972_v41 = vld [vmem:[#allocation5 + $0x158] sm:$0xf0]  ;;  %v1971_v43 = vor.u32 %v2611_v37, %v1970_v35  ;;  %v1847_v44 = vor.u32 %v2577_v38, %v1844_v39  ;;  %v1826_v45 = vld [vmem:[#allocation5 + $0x28] sm:$0xf]  ;;  %v2575_v46 = vld [vmem:[#allocation5 + $0x34] sm:$0xf0] }
  0x49   :  { %612 = vmatpush.bf16.msrb.mxu1 %v2035_v59  ;;  %v1954_v47 = vld [vmem:[#allocation5 + $0x128] sm:$0xf]  ;;  %v1975_v48 = vor.u32 %v2609_v40, %v1972_v41  ;;  %v2607_v49 = vld [vmem:[#allocation5 + $0x134] sm:$0xf0]  ;;  %v2573_v50 = vld [vmem:[#allocation5 + $0x2c] sm:$0xf]  ;;  %v1827_v56 = vor.u32 %v2575_v46, %v1826_v45 }
  0x4a   :  { %626 = vmatpush.bf16.msrb.mxu2 %v1911_v60  ;;  %v1828_v52 = vld [vmem:[#allocation5 + $0x38] sm:$0xf0]  ;;  %v2605_v53 = vld [vmem:[#allocation5 + $0x12c] sm:$0xf]  ;;  %v1955_v57 = vor.u32 %v2607_v49, %v1954_v47  ;;  %v1810_v59 = vld [vmem:[#allocation5 + $0x8] sm:$0xf] }
  0x4b   :  { %640 = vmatpush.bf16.msrb.mxu3 %v2039_v0  ;;  %v1956_v54 = vld [vmem:[#allocation5 + $0x138] sm:$0xf0]  ;;  %v1831_v58 = vor.u32 %v2573_v50, %v1828_v52  ;;  %v2571_v60 = vld [vmem:[#allocation5 + $0x14] sm:$0xf0]  ;;  %v1938_v61 = vld [vmem:[#allocation5 + $0x108] sm:$0xf] }
  0x4c   :  { %599 = vmatpush.bf16.msrb.mxu0 %v1891_v6  ;;  %v1959_v62 = vor.u32 %v2605_v53, %v1956_v54  ;;  %v2603_v63 = vld [vmem:[#allocation5 + $0x114] sm:$0xf0]  ;;  %v2569_v0 = vld [vmem:[#allocation5 + $0xc] sm:$0xf]  ;;  %v1812_v1 = vld [vmem:[#allocation5 + $0x18] sm:$0xf0]  ;;  %v1811_v4 = vor.u32 %v2571_v60, %v1810_v59 }
  0x4d   :  { %613 = vmatpush.bf16.msrb.mxu1 %v2019_v7  ;;  %v2601_v2 = vld [vmem:[#allocation5 + $0x10c] sm:$0xf]  ;;  %v1940_v3 = vld [vmem:[#allocation5 + $0x118] sm:$0xf0]  ;;  %v1939_v5 = vor.u32 %v2603_v63, %v1938_v61  ;;  %v1815_v6 = vor.u32 %v2569_v0, %v1812_v1  ;;  %v2638_v10 = vld [vmem:[#allocation8 + $0x30] sm:$0xff] }
  0x4e   :  { %627 = vmatpush.bf16.msrb.mxu2 %v1895_v8  ;;  %v1943_v7 = vor.u32 %v2601_v2, %v1940_v3  ;;  %v2639_v8 = vld [vmem:[#allocation8 + $0x38] sm:$0xff]  ;;  %v2646_v11 = vld [vmem:[#allocation8 + $0x70] sm:$0xff]  ;;  %v2645_v13 = vld [vmem:[#allocation8 + $0x68] sm:$0xff] }
  0x4f   :  { %641 = vmatpush.bf16.msrb.mxu3 %v2023_v12  ;;  %v2647_v9 = vld [vmem:[#allocation8 + $0x78] sm:$0xff]  ;;  %v2637_v12 = vld [vmem:[#allocation8 + $0x28] sm:$0xff]  ;;  %v2636_v14 = vld [vmem:[#allocation8 + $0x20] sm:$0xff] }
  0x50   :  { %600 = vmatpush.bf16.msrb.mxu0 %v1875_v18  ;;  %v2635_v15 = vld [vmem:[#allocation8 + $0x18] sm:$0xff]  ;;  %v2644_v16 = vld [vmem:[#allocation8 + $0x60] sm:$0xff]  ;;  %v2634_v17 = vld [vmem:[#allocation8 + $0x10] sm:$0xff] }
  0x51   :  { %614 = vmatpush.bf16.msrb.mxu1 %v2003_v19  ;;  %v2643_v18 = vld [vmem:[#allocation8 + $0x58] sm:$0xff]  ;;  %v2633_v19 = vld [vmem:[#allocation8 + $0x8] sm:$0xff]  ;;  %v2654_v22 = vld [vmem:[#allocation8 + $0xb0] sm:$0xff] }
  0x52   :  { %628 = vmatpush.bf16.msrb.mxu2 %v1879_v20  ;;  %v2655_v20 = vld [vmem:[#allocation8 + $0xb8] sm:$0xff]  ;;  %v2641_v21 = vld [vmem:[#allocation8 + $0x48] sm:$0xff]  ;;  %v2640_v23 = vld [vmem:[#allocation8 + $0x40] sm:$0xff] }
  0x53   :  { %642 = vmatpush.bf16.msrb.mxu3 %v2007_v24  ;;  %v2663_v24 = vld [vmem:[#allocation8 + $0xf8] sm:$0xff]  ;;  %v2653_v25 = vld [vmem:[#allocation8 + $0xa8] sm:$0xff]  ;;  %v2662_v26 = vld [vmem:[#allocation8 + $0xf0] sm:$0xff] }
  0x54   :  { %601 = vmatpush.bf16.msrb.mxu0 %v1859_v30  ;;  %v2652_v27 = vld [vmem:[#allocation8 + $0xa0] sm:$0xff]  ;;  %v3119_v28 = vld [vmem:[#allocation7] sm:$0xf]  ;;  %v2661_v29 = vld [vmem:[#allocation8 + $0xe8] sm:$0xff] }
  0x55   :  { %615 = vmatpush.bf16.msrb.mxu1 %v1987_v32  ;;  %v2651_v30 = vld [vmem:[#allocation8 + $0x98] sm:$0xff]  ;;  %v213_v31 = vperm.slane %v3119_v28, 0  ;;  %v2650_v35 = vld [vmem:[#allocation8 + $0x90] sm:$0xff]  ;;  %v214_v37 = vperm.slane %v3119_v28, 1  ;;  %v2649_v41 = vld [vmem:[#allocation8 + $0x88] sm:$0xff]  ;;  %v215_v2 = vperm.slane %v3119_v28, 2 }
  0x56   :  { %629 = vmatpush.bf16.msrb.mxu2 %v1863_v33  ;;  %v2660_v33 = vld [vmem:[#allocation8 + $0xe0] sm:$0xff]  ;;  %v2659_v38 = vld [vmem:[#allocation8 + $0xd8] sm:$0xff]  ;;  %v2658_v45 = vld [vmem:[#allocation8 + $0xd0] sm:$0xff] }
  0x57   :  { %643 = vmatpush.bf16.msrb.mxu3 %v1991_v36  ;;  %v2657_v53 = vld [vmem:[#allocation8 + $0xc8] sm:$0xff] }
  0x58   :  { %602 = vmatpush.bf16.msrb.mxu0 %v1843_v42 }
  0x59   :  { %616 = vmatpush.bf16.msrb.mxu1 %v1971_v43 }
  0x5a   :  { %630 = vmatpush.bf16.msrb.mxu2 %v1847_v44 }
  0x5b   :  { %644 = vmatpush.bf16.msrb.mxu3 %v1975_v48  ;;  %v2648_v48 = vld [vmem:[#allocation8 + $0x80] sm:$0xff] }
  0x5c   :  { %603 = vmatpush.bf16.msrb.mxu0 %v1827_v56 }
  0x5d   :  { %617 = vmatpush.bf16.msrb.mxu1 %v1955_v57 }
  0x5e   :  { %631 = vmatpush.bf16.msrb.mxu2 %v1831_v58 }
  0x5f   :  { %645 = vmatpush.bf16.msrb.mxu3 %v1959_v62  ;;  %v2656_v62 = vld [vmem:[#allocation8 + $0xc0] sm:$0xff] }
  0x60   :  { %604 = vmatpush.bf16.msrb.mxu0 %v1811_v4 }
  0x61   :  { %618 = vmatpush.bf16.msrb.mxu1 %v1939_v5 }
  0x62   :  { %632 = vmatpush.bf16.msrb.mxu2 %v1815_v6  ;;  %v216_v6 = vperm.slane %v3119_v28, 3  ;;  %v2306_v28 = vld [vmem:[#allocation11 + $0xe8] sm:$0xf] }
  0x63   :  { %646 = vmatpush.bf16.msrb.mxu3 %v1943_v7  ;;  %605 = vmatmul.bf16.vlgmr.msrb.gmra.mxu0 %v3107_v51 }
  0x64   :  { %925 = vmatpush.bf16.msra.mxu0 %v2639_v8  ;;  %619 = vmatmul.bf16.vlgmr.msrb.gmra.mxu1 %v3109_v55 }
  0x65   :  { %939 = vmatpush.bf16.msra.mxu1 %v2647_v9  ;;  %633 = vmatmul.bf16.vlgmr.msrb.gmra.mxu2 %v3107_v51  ;;  %v2642_v51 = vld [vmem:[#allocation8 + $0x50] sm:$0xff] }
  0x66   :  { %647 = vmatmul.bf16.vlgmr.msrb.gmra.mxu3 %v3109_v55  ;;  %v2632_v55 = vld [vmem:[#allocation8] sm:$0xff]  ;;  %953 = vmatpush.bf16.msra.mxu2 %v2655_v20 }
  0x67   :  { %967 = vmatpush.bf16.msra.mxu3 %v2663_v24  ;;  %v2694_v24 = vld [vmem:[#allocation11 + $0xec] sm:$0xf0] }
  0x68   :  { %926 = vmatpush.bf16.msra.mxu0 %v2638_v10 }
  0x69   :  { %940 = vmatpush.bf16.msra.mxu1 %v2646_v11 }
  0x6a   :  { %954 = vmatpush.bf16.msra.mxu2 %v2654_v22 }
  0x6b   :  { %968 = vmatpush.bf16.msra.mxu3 %v2662_v26 }
  0x6c   :  { %927 = vmatpush.bf16.msra.mxu0 %v2637_v12 }
  0x6d   :  { %941 = vmatpush.bf16.msra.mxu1 %v2645_v13 }
  0x6e   :  { %955 = vmatpush.bf16.msra.mxu2 %v2653_v25  ;;  %v2692_v25 = vld [vmem:[#allocation11 + $0xe4] sm:$0xf] }
  0x6f   :  { %969 = vmatpush.bf16.msra.mxu3 %v2661_v29  ;;  %v2695_v29 = vld [vmem:[#allocation11 + $0xf4] sm:$0xf0] }
  0x70   :  { %928 = vmatpush.bf16.msra.mxu0 %v2636_v14 }
  0x71   :  { %942 = vmatpush.bf16.msra.mxu1 %v2644_v16 }
  0x72   :  { %956 = vmatpush.bf16.msra.mxu2 %v2652_v27  ;;  %v2300_v27 = vld [vmem:[#allocation11 + $0xf0] sm:$0xf0] }
  0x73   :  { %970 = vmatpush.bf16.msra.mxu3 %v2660_v33  ;;  %v2308_v33 = vld [vmem:[#allocation11 + $0xf8] sm:$0xf0] }
  0x74   :  { %929 = vmatpush.bf16.msra.mxu0 %v2635_v15 }
  0x75   :  { %943 = vmatpush.bf16.msra.mxu1 %v2643_v18 }
  0x76   :  { %957 = vmatpush.bf16.msra.mxu2 %v2651_v30  ;;  %v2303_v30 = vor.u32 %v2692_v25, %v2300_v27  ;;  %v2675_v25 = vld [vmem:[#allocation11 + $0x54] sm:$0xf0] }
  0x77   :  { %971 = vmatpush.bf16.msra.mxu3 %v2659_v38  ;;  %v2284_v38 = vld [vmem:[#allocation11 + $0xd0] sm:$0xf0] }
  0x78   :  { %930 = vmatpush.bf16.msra.mxu0 %v2634_v17 }
  0x79   :  { %944 = vmatpush.bf16.msra.mxu1 %v2642_v51 }
  0x7a   :  { %958 = vmatpush.bf16.msra.mxu2 %v2650_v35 }
  0x7b   :  { %972 = vmatpush.bf16.msra.mxu3 %v2658_v45  ;;  %v2292_v45 = vld [vmem:[#allocation11 + $0xd8] sm:$0xf0] }
  0x7c   :  { %931 = vmatpush.bf16.msra.mxu0 %v2633_v19 }
  0x7d   :  { %945 = vmatpush.bf16.msra.mxu1 %v2641_v21 }
  0x7e   :  { %959 = vmatpush.bf16.msra.mxu2 %v2649_v41  ;;  %v2290_v41 = vld [vmem:[#allocation11 + $0xc8] sm:$0xf] }
  0x7f   :  { %973 = vmatpush.bf16.msra.mxu3 %v2657_v53 }
  0x80   :  { %932 = vmatpush.bf16.msra.mxu0 %v2632_v55 }
  0x81   :  { %946 = vmatpush.bf16.msra.mxu1 %v2640_v23  ;;  %v2298_v23 = vld [vmem:[#allocation11 + $0xe0] sm:$0xf] }
  0x82   :  { %960 = vmatpush.bf16.msra.mxu2 %v2648_v48  ;;  %v2299_v26 = vor.u32 %v2694_v24, %v2298_v23  ;;  %v2220_v23 = vld [vmem:[#allocation11 + $0x50] sm:$0xf0]  ;;  %v2226_v24 = vld [vmem:[#allocation11 + $0x48] sm:$0xf] }
  0x83   :  { %974 = vmatpush.bf16.msra.mxu3 %v2656_v62  ;;  %v2682_v62 = vld [vmem:[#allocation11 + $0x8c] sm:$0xf0]  ;;  %v2227_v27 = vor.u32 %v2675_v25, %v2226_v24 }
  0x84   :  { %1186 = vmatpush.bf16.msrb.mxu0 %v2299_v26  ;;  %v2482_v25 = vld [vmem:[#allocation13 + $0x150] sm:$0xf] }
  0x85   :  { %1200 = vmatpush.bf16.msrb.mxu1 %v2303_v30 }
  0xc0   :  { %v550_v32 = vpop.f32.mrf.mxu0 }
  0xc1   :  { %v564_v34 = vpop.f32.mrf.mxu1  ;;  %v551_v36 = vadd.f32 %v550_v32, %v213_v31  ;;  %v2693_v32 = vld [vmem:[#allocation11 + $0xec] sm:$0xf] }
  0xc2   :  { %v2311_v35 = vor.u32 %v2693_v32, %v2308_v33  ;;  %v2670_v32 = vld [vmem:[#allocation11 + $0x2c] sm:$0xf0]  ;;  %v2668_v33 = vld [vmem:[#allocation11 + $0x24] sm:$0xf] }
  0xc3   :  { %v565_v42 = vadd.f32 %v564_v34, %v551_v36  ;;  %v2282_v34 = vld [vmem:[#allocation11 + $0xc0] sm:$0xf]  ;;  %v2690_v36 = vld [vmem:[#allocation11 + $0xcc] sm:$0xf0] }
  0xc4   :  { %1228 = vmatpush.bf16.msrb.mxu3 %v2311_v35  ;;  %v2204_v35 = vld [vmem:[#allocation11 + $0x30] sm:$0xf0] }
  0xc5   :  { %v653_v49 = vmax.f32 %v565_v42, 0.0  ;;  %v2691_v42 = vld [vmem:[#allocation11 + $0xd4] sm:$0xf0] }
  0xc8   :  { %v578_v39 = vpop.f32.mrf.mxu2  ;;  %v552_v44 = vpop.f32.mrf.mxu0 }
  0xc9   :  { %v592_v40 = vpop.f32.mrf.mxu3  ;;  %v579_v43 = vadd.f32 %v578_v39, %v214_v37  ;;  %v553_v46 = vadd.f32 %v552_v44, %v213_v31  ;;  %v566_v47 = vpop.f32.mrf.mxu1  ;;  %v2307_v31 = vor.u32 %v2695_v29, %v2306_v28  ;;  %v2283_v39 = vor.u32 %v2690_v36, %v2282_v34  ;;  %v2673_v28 = vld [vmem:[#allocation11 + $0x4c] sm:$0xf]  ;;  %v2228_v29 = vld [vmem:[#allocation11 + $0x58] sm:$0xf0]  ;;  %v2210_v36 = vld [vmem:[#allocation11 + $0x28] sm:$0xf] }
  0xca   :  { %v2291_v44 = vor.u32 %v2691_v42, %v2290_v41  ;;  %v2231_v30 = vor.u32 %v2673_v28, %v2228_v29  ;;  %v2212_v41 = vld [vmem:[#allocation11 + $0x38] sm:$0xf0]  ;;  %v2410_v28 = vld [vmem:[#allocation13 + $0xc0] sm:$0xf]  ;;  %v2721_v29 = vld [vmem:[#allocation13 + $0xc4] sm:$0xf0] }
  0xcb   :  { %v567_v50 = vadd.f32 %v566_v47, %v553_v46  ;;  %v593_v52 = vadd.f32 %v592_v40, %v579_v43  ;;  %1214 = vmatpush.bf16.msrb.mxu2 %v2307_v31  ;;  %v2689_v43 = vld [vmem:[#allocation11 + $0xcc] sm:$0xf]  ;;  %v2266_v46 = vld [vmem:[#allocation11 + $0xa0] sm:$0xf]  ;;  %v2686_v47 = vld [vmem:[#allocation11 + $0xac] sm:$0xf0]  ;;  %1187 = vmatpush.bf16.msrb.mxu0 %v2283_v39 }
  0xcc   :  { %v2295_v48 = vor.u32 %v2689_v43, %v2292_v45  ;;  %v2267_v53 = vor.u32 %v2686_v47, %v2266_v46  ;;  %v2202_v31 = vld [vmem:[#allocation11 + $0x20] sm:$0xf]  ;;  %v2664_v45 = vld [vmem:[#allocation11 + $0x4] sm:$0xf]  ;;  %v2188_v47 = vld [vmem:[#allocation11 + $0x10] sm:$0xf0] }
  0xcd   :  { %v657_v54 = vmax.f32 %v567_v50, 0.0  ;;  %v654_v60 = vmax.f32 %v593_v52, 0.0  ;;  %v2268_v50 = vld [vmem:[#allocation11 + $0xb0] sm:$0xf0]  ;;  %v2274_v52 = vld [vmem:[#allocation11 + $0xa8] sm:$0xf]  ;;  %v2203_v34 = vor.u32 %v2670_v32, %v2202_v31 }
  0xce   :  { %1229 = vmatpush.bf16.msrb.mxu3 %v2295_v48  ;;  %v2186_v43 = vld [vmem:[#allocation11] sm:$0xf]  ;;  %v2194_v48 = vld [vmem:[#allocation11 + $0x8] sm:$0xf] }
  0xcf   :  { %v661_v59 = vpack.c.bf16 %v657_v54, %v653_v49  ;;  %v2684_v49 = vld [vmem:[#allocation11 + $0xa4] sm:$0xf]  ;;  %v2687_v54 = vld [vmem:[#allocation11 + $0xb4] sm:$0xf0]  ;;  %1215 = vmatpush.bf16.msrb.mxu2 %v2291_v44  ;;  %1188 = vmatpush.bf16.msrb.mxu0 %v2267_v53  ;;  %v2666_v44 = vld [vmem:[#allocation11 + $0xc] sm:$0xf0] }
  0xd0   :  { %v580_v56 = vpop.f32.mrf.mxu2  ;;  %v2187_v46 = vor.u32 %v2666_v44, %v2186_v43  ;;  %v2665_v53 = vld [vmem:[#allocation11 + $0xc] sm:$0xf]  ;;  %v2703_v43 = vld [vmem:[#allocation13 + $0x34] sm:$0xf0]  ;;  %v2402_v44 = vld [vmem:[#allocation13 + $0xb0] sm:$0xf] }
  0xd1   :  { %v581_v57 = vadd.f32 %v580_v56, %v214_v37  ;;  %v594_v58 = vpop.f32.mrf.mxu3  ;;  %933 = vmatmul.bf16.vlgmr.msra.gmra.mxu0 %v661_v59  ;;  %v2688_v37 = vld [vmem:[#allocation11 + $0xc4] sm:$0xf]  ;;  %v2685_v56 = vld [vmem:[#allocation11 + $0xac] sm:$0xf]  ;;  %v2275_v59 = vor.u32 %v2687_v54, %v2274_v52  ;;  %v2196_v54 = vld [vmem:[#allocation11 + $0x18] sm:$0xf0] }
  0xd2   :  { %v2287_v40 = vor.u32 %v2688_v37, %v2284_v38  ;;  %v2671_v37 = vld [vmem:[#allocation11 + $0x34] sm:$0xf0]  ;;  %v2207_v38 = vor.u32 %v2668_v33, %v2204_v35 }
  0xd3   :  { %v595_v61 = vadd.f32 %v594_v58, %v581_v57  ;;  %v2276_v57 = vld [vmem:[#allocation11 + $0xb8] sm:$0xf0]  ;;  %v2271_v58 = vor.u32 %v2684_v49, %v2268_v50  ;;  %1216 = vmatpush.bf16.msrb.mxu2 %v2275_v59  ;;  %v2211_v39 = vor.u32 %v2671_v37, %v2210_v36  ;;  %v2667_v49 = vld [vmem:[#allocation11 + $0x14] sm:$0xf0]  ;;  %v2191_v50 = vor.u32 %v2664_v45, %v2188_v47  ;;  %v2434_v59 = vld [vmem:[#allocation13 + $0xf0] sm:$0xf] }
  0xd4   :  { %1201 = vmatpush.bf16.msrb.mxu1 %v2287_v40  ;;  %v2669_v40 = vld [vmem:[#allocation11 + $0x2c] sm:$0xf]  ;;  %v2195_v52 = vor.u32 %v2667_v49, %v2194_v48  ;;  %v2737_v37 = vld [vmem:[#allocation13 + $0x144] sm:$0xf0]  ;;  %v2719_v45 = vld [vmem:[#allocation13 + $0xb4] sm:$0xf0] }
  0xd5   :  { %v658_v63 = vmax.f32 %v595_v61, 0.0  ;;  %v2250_v61 = vld [vmem:[#allocation11 + $0x80] sm:$0xf]  ;;  %v2215_v42 = vor.u32 %v2669_v40, %v2212_v41  ;;  %v2411_v41 = vor.u32 %v2721_v29, %v2410_v28  ;;  %v2466_v48 = vld [vmem:[#allocation13 + $0x130] sm:$0xf] }
  0xd6   :  { %v2710_v29 = vld [vmem:[#allocation13 + $0x74] sm:$0xf] }
  0xd7   :  { %v662_v0 = vpack.c.bf16 %v658_v63, %v654_v60  ;;  %v2279_v60 = vor.u32 %v2685_v56, %v2276_v57  ;;  %v2680_v63 = vld [vmem:[#allocation11 + $0x84] sm:$0xf]  ;;  %v2199_v56 = vor.u32 %v2665_v53, %v2196_v54  ;;  %v2370_v57 = vld [vmem:[#allocation13 + $0x70] sm:$0xf]  ;;  %v2751_v54 = vld [vmem:[#allocation13 + $0x1b4] sm:$0xf0] }
  0xd8   :  { %1202 = vmatpush.bf16.msrb.mxu1 %v2271_v58  ;;  %v2711_v58 = vld [vmem:[#allocation13 + $0x74] sm:$0xf0]  ;;  %v2530_v53 = vld [vmem:[#allocation13 + $0x1b0] sm:$0xf] }
  0xd9   :  { %947 = vmatmul.bf16.vlgmr.msra.gmra.mxu1 %v662_v0  ;;  %1230 = vmatpush.bf16.msrb.mxu3 %v2279_v60  ;;  %v2251_v0 = vor.u32 %v2682_v62, %v2250_v61  ;;  %v2371_v60 = vor.u32 %v2711_v58, %v2370_v57  ;;  %v2727_v61 = vld [vmem:[#allocation13 + $0xf4] sm:$0xf0]  ;;  %v2362_v62 = vld [vmem:[#allocation13 + $0x60] sm:$0xf]  ;;  %v2701_v58 = vld [vmem:[#allocation13 + $0x24] sm:$0xf0] }
  0xda   :  { %v2330_v57 = vld [vmem:[#allocation13 + $0x20] sm:$0xf] }
  0xdb   :  { %1189 = vmatpush.bf16.msrb.mxu0 %v2251_v0  ;;  %v2435_v0 = vor.u32 %v2727_v61, %v2434_v59  ;;  %v2717_v61 = vld [vmem:[#allocation13 + $0xa4] sm:$0xf0] }
  0xe0   :  { %v606_v1 = vpop.f32.mrf.mxu0 }
  0xe1   :  { %v620_v3 = vpop.f32.mrf.mxu1  ;;  %v607_v4 = vadd.f32 %v606_v1, %v215_v2  ;;  %v2252_v1 = vld [vmem:[#allocation11 + $0x90] sm:$0xf0] }
  0xe3   :  { %v621_v9 = vadd.f32 %v620_v3, %v607_v4  ;;  %v2683_v3 = vld [vmem:[#allocation11 + $0x94] sm:$0xf0]  ;;  %v2255_v4 = vor.u32 %v2680_v63, %v2252_v1  ;;  %v2709_v63 = vld [vmem:[#allocation13 + $0x64] sm:$0xf0]  ;;  %v2426_v1 = vld [vmem:[#allocation13 + $0xe0] sm:$0xf] }
  0xe5   :  { %v655_v14 = vmax.f32 %v621_v9, 0.0  ;;  %1203 = vmatpush.bf16.msrb.mxu1 %v2255_v4  ;;  %v2363_v4 = vor.u32 %v2709_v63, %v2362_v62 }
  0xe8   :  { %v634_v5 = vpop.f32.mrf.mxu2  ;;  %v608_v8 = vpop.f32.mrf.mxu0 }
  0xe9   :  { %v648_v7 = vpop.f32.mrf.mxu3  ;;  %v609_v10 = vadd.f32 %v608_v8, %v215_v2  ;;  %v622_v11 = vpop.f32.mrf.mxu1  ;;  %v635_v13 = vadd.f32 %v634_v5, %v216_v6  ;;  %v2258_v2 = vld [vmem:[#allocation11 + $0x88] sm:$0xf]  ;;  %v2234_v8 = vld [vmem:[#allocation11 + $0x60] sm:$0xf] }
  0xea   :  { %v2259_v5 = vor.u32 %v2683_v3, %v2258_v2  ;;  %v2725_v2 = vld [vmem:[#allocation13 + $0xe4] sm:$0xf0]  ;;  %v2498_v3 = vld [vmem:[#allocation13 + $0x170] sm:$0xf] }
  0xeb   :  { %v623_v12 = vadd.f32 %v622_v11, %v609_v10  ;;  %v649_v18 = vadd.f32 %v648_v7, %v635_v13  ;;  %v2260_v7 = vld [vmem:[#allocation11 + $0x98] sm:$0xf0]  ;;  %v2678_v10 = vld [vmem:[#allocation11 + $0x6c] sm:$0xf0]  ;;  %v2676_v11 = vld [vmem:[#allocation11 + $0x64] sm:$0xf] }
  0xec   :  { %1217 = vmatpush.bf16.msrb.mxu2 %v2259_v5  ;;  %v2235_v13 = vor.u32 %v2678_v10, %v2234_v8  ;;  %v2743_v5 = vld [vmem:[#allocation13 + $0x174] sm:$0xf0]  ;;  %v2427_v8 = vor.u32 %v2725_v2, %v2426_v1  ;;  %v2531_v1 = vor.u32 %v2751_v54, %v2530_v53  ;;  %v2458_v2 = vld [vmem:[#allocation13 + $0x120] sm:$0xf]  ;;  %v2742_v54 = vld [vmem:[#allocation13 + $0x174] sm:$0xf] }
  0xed   :  { %v659_v15 = vmax.f32 %v623_v12, 0.0  ;;  %v656_v20 = vmax.f32 %v649_v18, 0.0  ;;  %v2236_v12 = vld [vmem:[#allocation11 + $0x70] sm:$0xf0] }
  0xee   :  { %1190 = vmatpush.bf16.msrb.mxu0 %v2235_v13  ;;  %v2418_v13 = vld [vmem:[#allocation13 + $0xd0] sm:$0xf] }
  0xef   :  { %v663_v16 = vpack.c.bf16 %v659_v15, %v655_v14  ;;  %v2239_v14 = vor.u32 %v2676_v11, %v2236_v12  ;;  %v2242_v15 = vld [vmem:[#allocation11 + $0x68] sm:$0xf]  ;;  %v2354_v11 = vld [vmem:[#allocation13 + $0x50] sm:$0xf]  ;;  %v2707_v12 = vld [vmem:[#allocation13 + $0x54] sm:$0xf0] }
  0xf0   :  { %v636_v17 = vpop.f32.mrf.mxu2 }
  0xf1   :  { %v637_v19 = vadd.f32 %v636_v17, %v216_v6  ;;  %v650_v51 = vpop.f32.mrf.mxu3  ;;  %961 = vmatmul.bf16.vlgmr.msra.gmra.mxu2 %v663_v16  ;;  %v2681_v6 = vld [vmem:[#allocation11 + $0x8c] sm:$0xf]  ;;  %v2679_v16 = vld [vmem:[#allocation11 + $0x74] sm:$0xf0]  ;;  %1204 = vmatpush.bf16.msrb.mxu1 %v2239_v14 }
  0xf2   :  { %v2263_v9 = vor.u32 %v2681_v6, %v2260_v7  ;;  %v2677_v17 = vld [vmem:[#allocation11 + $0x6c] sm:$0xf]  ;;  %v2243_v18 = vor.u32 %v2679_v16, %v2242_v15  ;;  %v2562_v6 = vld [vmem:[#allocation13 + $0x1f0] sm:$0xf]  ;;  %v2759_v7 = vld [vmem:[#allocation13 + $0x1f4] sm:$0xf0] }
  0xf3   :  { %v651_v55 = vadd.f32 %v650_v51, %v637_v19  ;;  %v2244_v19 = vld [vmem:[#allocation11 + $0x78] sm:$0xf0]  ;;  %v2563_v10 = vor.u32 %v2759_v7, %v2562_v6  ;;  %v2723_v14 = vld [vmem:[#allocation13 + $0xd4] sm:$0xf0]  ;;  %v2490_v15 = vld [vmem:[#allocation13 + $0x160] sm:$0xf] }
  0xf4   :  { %1231 = vmatpush.bf16.msrb.mxu3 %v2263_v9  ;;  %v2247_v51 = vor.u32 %v2677_v17, %v2244_v19  ;;  %1218 = vmatpush.bf16.msrb.mxu2 %v2243_v18  ;;  %v2499_v9 = vor.u32 %v2743_v5, %v2498_v3  ;;  %v2741_v16 = vld [vmem:[#allocation13 + $0x164] sm:$0xf0]  ;;  %v2554_v18 = vld [vmem:[#allocation13 + $0x1e0] sm:$0xf]  ;;  %v2419_v24 = vor.u32 %v2723_v14, %v2418_v13  ;;  %v2386_v13 = vld [vmem:[#allocation13 + $0x90] sm:$0xf] }
  0xf5   :  { %v660_v21 = vmax.f32 %v651_v55, 0.0  ;;  %v2218_v55 = vld [vmem:[#allocation11 + $0x40] sm:$0xf]  ;;  %v2491_v17 = vor.u32 %v2741_v16, %v2490_v15  ;;  %v2757_v19 = vld [vmem:[#allocation13 + $0x1e4] sm:$0xf0] }
  0xf6   :  { %v2733_v5 = vld [vmem:[#allocation13 + $0x124] sm:$0xf0]  ;;  %v2522_v6 = vld [vmem:[#allocation13 + $0x1a0] sm:$0xf]  ;;  %v2715_v14 = vld [vmem:[#allocation13 + $0x94] sm:$0xf0] }
  0xf7   :  { %v664_v22 = vpack.c.bf16 %v660_v21, %v656_v20  ;;  %v2674_v20 = vld [vmem:[#allocation11 + $0x4c] sm:$0xf0]  ;;  %v2672_v21 = vld [vmem:[#allocation11 + $0x44] sm:$0xf]  ;;  %v2749_v7 = vld [vmem:[#allocation13 + $0x1a4] sm:$0xf0]  ;;  %v2459_v16 = vor.u32 %v2733_v5, %v2458_v2 }
  0xf8   :  { %1232 = vmatpush.bf16.msrb.mxu3 %v2247_v51  ;;  %v2223_v26 = vor.u32 %v2672_v21, %v2220_v23  ;;  %1219 = vmatpush.bf16.msrb.mxu2 %v2227_v27  ;;  %v3125_v51 = vld [vmem:[#allocation10] ss:$0 sm:$0xff]  ;;  %v2346_v21 = vld [vmem:[#allocation13 + $0x40] sm:$0xf]  ;;  %v2546_v27 = vld [vmem:[#allocation13 + $0x1d0] sm:$0xf] }
  0xf9   :  { %975 = vmatmul.bf16.vlgmr.msra.gmra.mxu3 %v664_v22  ;;  %v2219_v22 = vor.u32 %v2674_v20, %v2218_v55  ;;  %v2355_v55 = vor.u32 %v2707_v12, %v2354_v11  ;;  %v2555_v20 = vor.u32 %v2757_v19, %v2554_v18  ;;  %v2699_v11 = vld [vmem:[#allocation13 + $0x14] sm:$0xf0]  ;;  %v2756_v5 = vld [vmem:[#allocation13 + $0x1e4] sm:$0xf] }
  0xfa   :  { %1205 = vmatpush.bf16.msrb.mxu1 %v2223_v26  ;;  %v2739_v26 = vld [vmem:[#allocation13 + $0x154] sm:$0xf0] }
  0xfb   :  { %1191 = vmatpush.bf16.msrb.mxu0 %v2219_v22  ;;  %v2705_v22 = vld [vmem:[#allocation13 + $0x44] sm:$0xf0]  ;;  %v2483_v32 = vor.u32 %v2739_v26, %v2482_v25 }
  0xfc   :  { %1233 = vmatpush.bf16.msrb.mxu3 %v2231_v30  ;;  %1220 = vmatpush.bf16.msrb.mxu2 %v2211_v39  ;;  %v2755_v30 = vld [vmem:[#allocation13 + $0x1d4] sm:$0xf0]  ;;  %v2347_v36 = vor.u32 %v2705_v22, %v2346_v21  ;;  %v2753_v39 = vld [vmem:[#allocation13 + $0x1c4] sm:$0xf0]  ;;  %v2314_v21 = vld [vmem:[#allocation13] sm:$0xf] }
  0xfd   :  { %v2547_v33 = vor.u32 %v2755_v30, %v2546_v27  ;;  %v2372_v30 = vld [vmem:[#allocation13 + $0x78] sm:$0xf0] }
  0xfe   :  { %1206 = vmatpush.bf16.msrb.mxu1 %v2207_v38  ;;  %v2538_v38 = vld [vmem:[#allocation13 + $0x1c0] sm:$0xf] }
  0xff   :  { %1192 = vmatpush.bf16.msrb.mxu0 %v2203_v34  ;;  %v2474_v34 = vld [vmem:[#allocation13 + $0x140] sm:$0xf]  ;;  %v2539_v47 = vor.u32 %v2753_v39, %v2538_v38  ;;  %v2514_v38 = vld [vmem:[#allocation13 + $0x190] sm:$0xf]  ;;  %v2747_v39 = vld [vmem:[#allocation13 + $0x194] sm:$0xf0] }
 0x100   :  { %1234 = vmatpush.bf16.msrb.mxu3 %v2215_v42  ;;  %1221 = vmatpush.bf16.msrb.mxu2 %v2195_v52  ;;  %v2338_v42 = vld [vmem:[#allocation13 + $0x30] sm:$0xf]  ;;  %v2735_v52 = vld [vmem:[#allocation13 + $0x134] sm:$0xf0] }
 0x102   :  { %1207 = vmatpush.bf16.msrb.mxu1 %v2191_v50  ;;  %v2339_v50 = vor.u32 %v2703_v43, %v2338_v42  ;;  %v2364_v42 = vld [vmem:[#allocation13 + $0x68] sm:$0xf0]  ;;  %v2724_v43 = vld [vmem:[#allocation13 + $0xe4] sm:$0xf] }
 0x103   :  { %1193 = vmatpush.bf16.msrb.mxu0 %v2187_v46  ;;  %v2475_v46 = vor.u32 %v2737_v37, %v2474_v34  ;;  %v2450_v34 = vld [vmem:[#allocation13 + $0x110] sm:$0xf] }
 0x104   :  { %1235 = vmatpush.bf16.msrb.mxu3 %v2199_v56  ;;  %1672 = vmatpush.bf16.msra.mxu2 %v2499_v9  ;;  %v2403_v56 = vor.u32 %v2719_v45, %v2402_v44  ;;  %v2428_v45 = vld [vmem:[#allocation13 + $0xe8] sm:$0xf0] }
 0x106   :  { %1658 = vmatpush.bf16.msra.mxu1 %v2435_v0  ;;  %v2467_v0 = vor.u32 %v2735_v52, %v2466_v48  ;;  %v2431_v48 = vor.u32 %v2724_v43, %v2428_v45  ;;  %v2745_v52 = vld [vmem:[#allocation13 + $0x184] sm:$0xf0]  ;;  %v2698_v43 = vld [vmem:[#allocation13 + $0x14] sm:$0xf] }
 0x107   :  { %1644 = vmatpush.bf16.msra.mxu0 %v2371_v60  ;;  %v2394_v60 = vld [vmem:[#allocation13 + $0xa0] sm:$0xf]  ;;  %v2714_v45 = vld [vmem:[#allocation13 + $0x94] sm:$0xf] }
 0x108   :  { %1686 = vmatpush.bf16.msra.mxu3 %v2563_v10  ;;  %1673 = vmatpush.bf16.msra.mxu2 %v2491_v17  ;;  %v2395_v9 = vor.u32 %v2717_v61, %v2394_v60  ;;  %v2322_v10 = vld [vmem:[#allocation13 + $0x10] sm:$0xf]  ;;  %v2523_v17 = vor.u32 %v2749_v7, %v2522_v6  ;;  %v2706_v60 = vld [vmem:[#allocation13 + $0x54] sm:$0xf]  ;;  %v2556_v7 = vld [vmem:[#allocation13 + $0x1e8] sm:$0xf0] }
 0x109   :  { %v2323_v19 = vor.u32 %v2699_v11, %v2322_v10  ;;  %v2348_v10 = vld [vmem:[#allocation13 + $0x48] sm:$0xf0]  ;;  %v2720_v11 = vld [vmem:[#allocation13 + $0xc4] sm:$0xf] }
 0x10a   :  { %1659 = vmatpush.bf16.msra.mxu1 %v2427_v8 }
 0x10b   :  { %1645 = vmatpush.bf16.msra.mxu0 %v2363_v4  ;;  %v2331_v4 = vor.u32 %v2701_v58, %v2330_v57  ;;  %v2758_v57 = vld [vmem:[#allocation13 + $0x1f4] sm:$0xf] }
 0x10c   :  { %1687 = vmatpush.bf16.msra.mxu3 %v2555_v20  ;;  %1674 = vmatpush.bf16.msra.mxu2 %v2483_v32  ;;  %v2375_v32 = vor.u32 %v2710_v29, %v2372_v30  ;;  %v2540_v29 = vld [vmem:[#allocation13 + $0x1c8] sm:$0xf0] }
 0x10e   :  { %1660 = vmatpush.bf16.msra.mxu1 %v2419_v24  ;;  %v2713_v24 = vld [vmem:[#allocation13 + $0x84] sm:$0xf0] }
 0x10f   :  { %1646 = vmatpush.bf16.msra.mxu0 %v2355_v55  ;;  %v2387_v55 = vor.u32 %v2715_v14, %v2386_v13  ;;  %v2412_v13 = vld [vmem:[#allocation13 + $0xc8] sm:$0xf0] }
 0x110   :  { %1688 = vmatpush.bf16.msra.mxu3 %v2547_v33  ;;  %1675 = vmatpush.bf16.msra.mxu2 %v2475_v46  ;;  %v2436_v33 = vld [vmem:[#allocation13 + $0xf8] sm:$0xf0]  ;;  %v2442_v46 = vld [vmem:[#allocation13 + $0x100] sm:$0xf]  ;;  %v2415_v14 = vor.u32 %v2720_v11, %v2412_v13 }
 0x112   :  { %1661 = vmatpush.bf16.msra.mxu1 %v2411_v41  ;;  %v2708_v41 = vld [vmem:[#allocation13 + $0x64] sm:$0xf] }
 0x113   :  { %1647 = vmatpush.bf16.msra.mxu0 %v2347_v36  ;;  %v2367_v44 = vor.u32 %v2708_v41, %v2364_v42  ;;  %v2532_v41 = vld [vmem:[#allocation13 + $0x1b8] sm:$0xf0] }
 0x114   :  { %1689 = vmatpush.bf16.msra.mxu3 %v2539_v47  ;;  %1676 = vmatpush.bf16.msra.mxu2 %v2467_v0  ;;  %v2729_v47 = vld [vmem:[#allocation13 + $0x104] sm:$0xf0]  ;;  %v2420_v0 = vld [vmem:[#allocation13 + $0xd8] sm:$0xf0] }
 0x116   :  { %1662 = vmatpush.bf16.msra.mxu1 %v2403_v56  ;;  %v2500_v56 = vld [vmem:[#allocation13 + $0x178] sm:$0xf0] }
 0x117   :  { %1648 = vmatpush.bf16.msra.mxu0 %v2339_v50  ;;  %v2506_v50 = vld [vmem:[#allocation13 + $0x180] sm:$0xf]  ;;  %v2503_v58 = vor.u32 %v2742_v54, %v2500_v56  ;;  %v2524_v54 = vld [vmem:[#allocation13 + $0x1a8] sm:$0xf0]  ;;  %v2696_v56 = vld [vmem:[#allocation13 + $0x4] sm:$0xf] }
 0x118   :  { %1690 = vmatpush.bf16.msra.mxu3 %v2531_v1  ;;  %1677 = vmatpush.bf16.msra.mxu2 %v2459_v16  ;;  %v2507_v53 = vor.u32 %v2745_v52, %v2506_v50  ;;  %v2484_v16 = vld [vmem:[#allocation13 + $0x158] sm:$0xf0] }
 0x11a   :  { %1663 = vmatpush.bf16.msra.mxu1 %v2395_v9  ;;  %v2704_v9 = vld [vmem:[#allocation13 + $0x44] sm:$0xf] }
 0x11b   :  { %1649 = vmatpush.bf16.msra.mxu0 %v2331_v4  ;;  %v2492_v4 = vld [vmem:[#allocation13 + $0x168] sm:$0xf0] }
 0x11c   :  { %1691 = vmatpush.bf16.msra.mxu3 %v2523_v17  ;;  %v2754_v17 = vld [vmem:[#allocation13 + $0x1d4] sm:$0xf] }
 0x11e   :  { %1664 = vmatpush.bf16.msra.mxu1 %v2387_v55 }
 0x11f   :  { %1650 = vmatpush.bf16.msra.mxu0 %v2323_v19  ;;  %v2548_v19 = vld [vmem:[#allocation13 + $0x1d8] sm:$0xf0] }
 0x120   :  { %v2551_v55 = vor.u32 %v2754_v17, %v2548_v19 }
 0x14e   :  { %v934_v23 = vpop.f32.mrf.mxu0 }
 0x14f   :  { %v935_v35 = vadd.f32 %v3125_v51, %v934_v23  ;;  %v2697_v23 = vld [vmem:[#allocation13 + $0x4] sm:$0xf0] }
 0x150   :  { %v2315_v27 = vor.u32 %v2697_v23, %v2314_v21  ;;  %v2340_v21 = vld [vmem:[#allocation13 + $0x38] sm:$0xf0] }
 0x152   :  { %1651 = vmatpush.bf16.msra.mxu0 %v2315_v27  ;;  %v2752_v27 = vld [vmem:[#allocation13 + $0x1c4] sm:$0xf] }
 0x153   :  { %v2543_v30 = vor.u32 %v2752_v27, %v2540_v29 }
 0x156   :  { %v948_v31 = vpop.f32.mrf.mxu1  ;;  %v936_v62 = vpop.f32.mrf.mxu0 }
 0x157   :  { %v949_v49 = vadd.f32 %v948_v31, %v935_v35  ;;  %v937_v12 = vadd.f32 %v3125_v51, %v936_v62  ;;  %v2378_v51 = vld [vmem:[#allocation13 + $0x80] sm:$0xf]  ;;  %v2726_v31 = vld [vmem:[#allocation13 + $0xf4] sm:$0xf]  ;;  %v2731_v35 = vld [vmem:[#allocation13 + $0x114] sm:$0xf0] }
 0x158   :  { %v2379_v28 = vor.u32 %v2713_v24, %v2378_v51  ;;  %v2439_v36 = vor.u32 %v2726_v31, %v2436_v33  ;;  %v2451_v37 = vor.u32 %v2731_v35, %v2450_v34  ;;  %v2356_v62 = vld [vmem:[#allocation13 + $0x58] sm:$0xf0]  ;;  %v2700_v31 = vld [vmem:[#allocation13 + $0x24] sm:$0xf]  ;;  %v2396_v35 = vld [vmem:[#allocation13 + $0xa8] sm:$0xf0] }
 0x159   :  { %v2359_v1 = vor.u32 %v2706_v60, %v2356_v62  ;;  %v2404_v51 = vld [vmem:[#allocation13 + $0xb8] sm:$0xf0]  ;;  %v2716_v33 = vld [vmem:[#allocation13 + $0xa4] sm:$0xf]  ;;  %v2380_v60 = vld [vmem:[#allocation13 + $0x88] sm:$0xf0] }
 0x15a   :  { %1665 = vmatpush.bf16.msra.mxu1 %v2379_v28  ;;  %1678 = vmatpush.bf16.msra.mxu2 %v2451_v37  ;;  %v2734_v37 = vld [vmem:[#allocation13 + $0x134] sm:$0xf] }
 0x15e   :  { %v950_v8 = vpop.f32.mrf.mxu1 }
 0x15f   :  { %v951_v18 = vadd.f32 %v950_v8, %v937_v12  ;;  %v2559_v8 = vor.u32 %v2756_v5, %v2556_v7  ;;  %v2351_v12 = vor.u32 %v2704_v9, %v2348_v10  ;;  %v2728_v5 = vld [vmem:[#allocation13 + $0x104] sm:$0xf] }
 0x160   :  { %v2744_v7 = vld [vmem:[#allocation13 + $0x184] sm:$0xf] }
 0x174   :  { %v962_v40 = vpop.f32.mrf.mxu2 }
 0x175   :  { %v963_v59 = vadd.f32 %v962_v40, %v949_v49  ;;  %v2515_v40 = vor.u32 %v2747_v39, %v2514_v38  ;;  %v2443_v49 = vor.u32 %v2729_v47, %v2442_v46  ;;  %v2468_v38 = vld [vmem:[#allocation13 + $0x138] sm:$0xf0]  ;;  %v2750_v39 = vld [vmem:[#allocation13 + $0x1b4] sm:$0xf] }
 0x176   :  { %v2535_v42 = vor.u32 %v2750_v39, %v2532_v41  ;;  %v2388_v47 = vld [vmem:[#allocation13 + $0x98] sm:$0xf0] }
 0x177   :  { %1692 = vmatpush.bf16.msra.mxu3 %v2515_v40  ;;  %1679 = vmatpush.bf16.msra.mxu2 %v2443_v49  ;;  %v2471_v40 = vor.u32 %v2734_v37, %v2468_v38  ;;  %v2460_v49 = vld [vmem:[#allocation13 + $0x128] sm:$0xf0]  ;;  %v2391_v50 = vor.u32 %v2714_v45, %v2388_v47 }
 0x17b   :  { %1693 = vmatpush.bf16.msra.mxu3 %v2507_v53  ;;  %v2748_v53 = vld [vmem:[#allocation13 + $0x1a4] sm:$0xf] }
 0x17c   :  { %v976_v63 = vpop.f32.mrf.mxu3  ;;  %v964_v15 = vpop.f32.mrf.mxu2 }
 0x17d   :  { %v977_v3 = vadd.f32 %v976_v63, %v963_v59  ;;  %v965_v20 = vadd.f32 %v964_v15, %v951_v18  ;;  %v2564_v59 = vld [vmem:[#allocation13 + $0x1f8] sm:$0xf0]  ;;  %v2722_v63 = vld [vmem:[#allocation13 + $0xd4] sm:$0xf] }
 0x17e   :  { %v2567_v61 = vor.u32 %v2758_v57, %v2564_v59  ;;  %v2423_v2 = vor.u32 %v2722_v63, %v2420_v0  ;;  %v2738_v15 = vld [vmem:[#allocation13 + $0x154] sm:$0xf]  ;;  %v2527_v57 = vor.u32 %v2748_v53, %v2524_v54  ;;  %v2712_v59 = vld [vmem:[#allocation13 + $0x84] sm:$0xf]  ;;  %v2452_v0 = vld [vmem:[#allocation13 + $0x118] sm:$0xf0] }
 0x17f   :  { %981 = vst [vmem:[#allocation14] sm:$0xff] %v977_v3  ;;  %v2487_v18 = vor.u32 %v2738_v15, %v2484_v16  ;;  %v2383_v62 = vor.u32 %v2712_v59, %v2380_v60  ;;  %v2730_v63 = vld [vmem:[#allocation13 + $0x114] sm:$0xf] }
 0x184   :  { %v978_v22 = vpop.f32.mrf.mxu3 }
 0x185   :  { %v979_v25 = vadd.f32 %v978_v22, %v965_v20  ;;  %v2702_v20 = vld [vmem:[#allocation13 + $0x34] sm:$0xf] }
 0x186   :  { %v2718_v22 = vld [vmem:[#allocation13 + $0xb4] sm:$0xf]  ;;  %v2343_v23 = vor.u32 %v2702_v20, %v2340_v21 }
 0x187   :  { %982 = vst [vmem:[#allocation14 + $0x8] sm:$0xff] %v979_v25  ;;  %v983_v26 = vpack.c.bf16 %v979_v25, %v977_v3  ;;  %v2740_v3 = vld [vmem:[#allocation13 + $0x164] sm:$0xf]  ;;  %v2407_v24 = vor.u32 %v2718_v22, %v2404_v51 }
 0x188   :  { %v2495_v6 = vor.u32 %v2740_v3, %v2492_v4  ;;  %v2736_v25 = vld [vmem:[#allocation13 + $0x144] sm:$0xf]  ;;  %v2455_v3 = vor.u32 %v2730_v63, %v2452_v0 }
 0x189   :  { %1194 = vmatmul.bf16.vlgmr.msrb.gmra.mxu0 %v983_v26  ;;  %1208 = vmatmul.bf16.vlgmr.msrb.gmra.mxu1 %v983_v26 }
 0x18a   :  { %1222 = vmatmul.bf16.vlgmr.msrb.gmra.mxu2 %v983_v26  ;;  %1236 = vmatmul.bf16.vlgmr.msrb.gmra.mxu3 %v983_v26  ;;  %v2476_v26 = vld [vmem:[#allocation13 + $0x148] sm:$0xf0] }
 0x18b   :  { %1700 = vmatpush.bf16.msrb.mxu0 %v2375_v32  ;;  %1714 = vmatpush.bf16.msrb.mxu1 %v2439_v36  ;;  %v2479_v28 = vor.u32 %v2736_v25, %v2476_v26  ;;  %v2332_v32 = vld [vmem:[#allocation13 + $0x28] sm:$0xf0]  ;;  %v2399_v36 = vor.u32 %v2716_v33, %v2396_v35 }
 0x18c   :  { %1728 = vmatpush.bf16.msrb.mxu2 %v2503_v58  ;;  %1742 = vmatpush.bf16.msrb.mxu3 %v2567_v61  ;;  %v2335_v34 = vor.u32 %v2700_v31, %v2332_v32  ;;  %v2316_v58 = vld [vmem:[#allocation13 + $0x8] sm:$0xf0] }
 0x18d   :  { %v2319_v61 = vor.u32 %v2696_v56, %v2316_v58 }
 0x18f   :  { %1701 = vmatpush.bf16.msrb.mxu0 %v2367_v44  ;;  %1715 = vmatpush.bf16.msrb.mxu1 %v2431_v48  ;;  %v2324_v44 = vld [vmem:[#allocation13 + $0x18] sm:$0xf0]  ;;  %v2732_v48 = vld [vmem:[#allocation13 + $0x124] sm:$0xf] }
 0x190   :  { %1729 = vmatpush.bf16.msrb.mxu2 %v2495_v6  ;;  %1743 = vmatpush.bf16.msrb.mxu3 %v2559_v8  ;;  %v2327_v46 = vor.u32 %v2698_v43, %v2324_v44  ;;  %v2463_v52 = vor.u32 %v2732_v48, %v2460_v49  ;;  %v2444_v6 = vld [vmem:[#allocation13 + $0x108] sm:$0xf0]  ;;  %v1016_v8 = vld [vmem:[%s3153_s6] sm:$0xf]  ;;  %s3017_s6 = smov [#allocation14]  }
 0x191   :  { %v2447_v11 = vor.u32 %v2728_v5, %v2444_v6  ;;  %v1019_v15 = vperm.slane %v1016_v8, 1  ;;  %v1021_v51 = vperm.slane %v1016_v8, 3  ;;  %s1764_s3 = sshll.u32 %s3017_s6, 4  ;;  %v1318_v43 = vld [vmem:[%s3155_s8] sm:$0x3]  ;;  %s3018_s8 = smov [#allocation15]   ;;  %s1765_s3 = int_to_ptr.vmem [resolvable:$true] %s1764_s3 }
 0x192   :  { %1772 = dma.vmem_to_hbm [thread:$0]  %s1765_s3, 256, %s1767_s12, [#allocation4], %s3015_s28, %s3015_s28, %s3016_s29   ;;  %v1320_v44 = vperm.slane %v1318_v43, 0  ;;  %v1321_v59 = vperm.slane %v1318_v43, 1 }
 0x193   :  { %1702 = vmatpush.bf16.msrb.mxu0 %v2359_v1  ;;  %1716 = vmatpush.bf16.msrb.mxu1 %v2423_v2  ;;  %v2746_v1 = vld [vmem:[#allocation13 + $0x194] sm:$0xf]  ;;  %v2516_v2 = vld [vmem:[#allocation13 + $0x198] sm:$0xf0]  ;;  %s1777_s9 = sshll.u32 %s3018_s8, 4  ;;  %s1778_s9 = int_to_ptr.vmem [resolvable:$true] %s1777_s9 }
 0x194   :  { %1730 = vmatpush.bf16.msrb.mxu2 %v2487_v18  ;;  %1744 = vmatpush.bf16.msrb.mxu3 %v2551_v55  ;;  %v2519_v4 = vor.u32 %v2746_v1, %v2516_v2 }
 0x197   :  { %1703 = vmatpush.bf16.msrb.mxu0 %v2351_v12  ;;  %1717 = vmatpush.bf16.msrb.mxu1 %v2415_v14  ;;  %v2508_v12 = vld [vmem:[#allocation13 + $0x188] sm:$0xf0]  ;;  %v1018_v14 = vperm.slane %v1016_v8, 0 }
 0x198   :  { %1731 = vmatpush.bf16.msrb.mxu2 %v2479_v28  ;;  %1745 = vmatpush.bf16.msrb.mxu3 %v2543_v30  ;;  %v2511_v13 = vor.u32 %v2744_v7, %v2508_v12 }
 0x19b   :  { %1704 = vmatpush.bf16.msrb.mxu0 %v2343_v23  ;;  %1718 = vmatpush.bf16.msrb.mxu1 %v2407_v24  ;;  %v1020_v23 = vperm.slane %v1016_v8, 2 }
 0x19c   :  { %1732 = vmatpush.bf16.msrb.mxu2 %v2471_v40  ;;  %1746 = vmatpush.bf16.msrb.mxu3 %v2535_v42 }
 0x19f   :  { %1705 = vmatpush.bf16.msrb.mxu0 %v2335_v34  ;;  %1719 = vmatpush.bf16.msrb.mxu1 %v2399_v36 }
 0x1a0   :  { %1733 = vmatpush.bf16.msrb.mxu2 %v2463_v52  ;;  %1747 = vmatpush.bf16.msrb.mxu3 %v2527_v57 }
 0x1a3   :  { %1706 = vmatpush.bf16.msrb.mxu0 %v2327_v46  ;;  %1720 = vmatpush.bf16.msrb.mxu1 %v2391_v50 }
 0x1a4   :  { %1734 = vmatpush.bf16.msrb.mxu2 %v2455_v3  ;;  %1748 = vmatpush.bf16.msrb.mxu3 %v2519_v4 }
 0x1a7   :  { %1707 = vmatpush.bf16.msrb.mxu0 %v2319_v61  ;;  %1721 = vmatpush.bf16.msrb.mxu1 %v2383_v62 }
 0x1a8   :  { %1735 = vmatpush.bf16.msrb.mxu2 %v2447_v11  ;;  %1749 = vmatpush.bf16.msrb.mxu3 %v2511_v13 }
 0x206   :  { %v1195_v9 = vpop.f32.mrf.mxu0  ;;  %v1209_v10 = vpop.f32.mrf.mxu1 }
 0x207   :  { %v1196_v16 = vadd.f32 %v1195_v9, %v1018_v14  ;;  %v1210_v17 = vadd.f32 %v1209_v10, %v1019_v15 }
 0x209   :  { %v1242_v24 = vmax.f32 %v1196_v16, 0.0  ;;  %v1243_v25 = vmax.f32 %v1210_v17, 0.0 }
 0x20d   :  { %v1223_v18 = vpop.f32.mrf.mxu2  ;;  %v1237_v19 = vpop.f32.mrf.mxu3 }
 0x20e   :  { %v1197_v55 = vpop.f32.mrf.mxu0  ;;  %v1211_v20 = vpop.f32.mrf.mxu1  ;;  %v1224_v30 = vadd.f32 %v1223_v18, %v1020_v23  ;;  %v1238_v31 = vadd.f32 %v1237_v19, %v1021_v51 }
 0x20f   :  { %v1198_v21 = vadd.f32 %v1197_v55, %v1018_v14  ;;  %v1212_v22 = vadd.f32 %v1211_v20, %v1019_v15 }
 0x210   :  { %v1244_v36 = vmax.f32 %v1224_v30, 0.0  ;;  %v1245_v37 = vmax.f32 %v1238_v31, 0.0 }
 0x211   :  { %v1246_v26 = vmax.f32 %v1198_v21, 0.0  ;;  %v1247_v27 = vmax.f32 %v1212_v22, 0.0 }
 0x213   :  { %v1250_v28 = vpack.c.bf16 %v1246_v26, %v1242_v24  ;;  %v1251_v29 = vpack.c.bf16 %v1247_v27, %v1243_v25 }
 0x215   :  { %v1225_v32 = vpop.f32.mrf.mxu2  ;;  %v1239_v33 = vpop.f32.mrf.mxu3  ;;  %1652 = vmatmul.bf16.vlgmr.msra.gmra.mxu0 %v1250_v28  ;;  %1666 = vmatmul.bf16.vlgmr.msra.gmra.mxu1 %v1251_v29 }
 0x216   :  { %v1226_v34 = vadd.f32 %v1225_v32, %v1020_v23  ;;  %v1240_v35 = vadd.f32 %v1239_v33, %v1021_v51 }
 0x218   :  { %v1248_v38 = vmax.f32 %v1226_v34, 0.0  ;;  %v1249_v39 = vmax.f32 %v1240_v35, 0.0 }
 0x21a   :  { %v1252_v40 = vpack.c.bf16 %v1248_v38, %v1244_v36  ;;  %v1253_v41 = vpack.c.bf16 %v1249_v39, %v1245_v37 }
 0x21c   :  { %1680 = vmatmul.bf16.vlgmr.msra.gmra.mxu2 %v1252_v40  ;;  %1694 = vmatmul.bf16.vlgmr.msra.gmra.mxu3 %v1253_v41 }
 0x225   :  { %1708 = vmatmul.bf16.vlgmr.msrb.gmra.mxu0 %v1250_v28  ;;  %1722 = vmatmul.bf16.vlgmr.msrb.gmra.mxu1 %v1251_v29 }
 0x22c   :  { %1736 = vmatmul.bf16.vlgmr.msrb.gmra.mxu2 %v1252_v40  ;;  %1750 = vmatmul.bf16.vlgmr.msrb.gmra.mxu3 %v1253_v41 }
 0x292   :  { %v1653_v42 = vpop.f32.mrf.mxu0  ;;  %v1667_v45 = vpop.f32.mrf.mxu1 }
 0x293   :  { %v1654_v46 = vadd.f32 %v1653_v42, %v1320_v44 }
 0x295   :  { %v1668_v48 = vadd.f32 %v1667_v45, %v1654_v46 }
 0x29a   :  { %v1655_v47 = vpop.f32.mrf.mxu0  ;;  %v1669_v53 = vpop.f32.mrf.mxu1 }
 0x29b   :  { %v1656_v54 = vadd.f32 %v1655_v47, %v1320_v44 }
 0x29d   :  { %v1670_v58 = vadd.f32 %v1669_v53, %v1656_v54 }
 0x29f   :  { %v1681_v49 = vpop.f32.mrf.mxu2  ;;  %v1695_v50 = vpop.f32.mrf.mxu3 }
 0x2a0   :  { %v1682_v52 = vadd.f32 %v1681_v49, %v1668_v48 }
 0x2a2   :  { %v1696_v56 = vadd.f32 %v1695_v50, %v1682_v52  ;;  %v1709_v57 = vpop.f32.mrf.mxu0  ;;  %v1723_v1 = vpop.f32.mrf.mxu1 }
 0x2a3   :  { %v1710_v63 = vadd.f32 %v1709_v57, %v1321_v59 }
 0x2a4   :  { %1756 = vst [vmem:[#allocation15] sm:$0xff] %v1696_v56 }
 0x2a5   :  { %v1724_v2 = vadd.f32 %v1723_v1, %v1710_v63 }
 0x2a7   :  { %v1683_v60 = vpop.f32.mrf.mxu2  ;;  %v1697_v61 = vpop.f32.mrf.mxu3 }
 0x2a8   :  { %v1684_v62 = vadd.f32 %v1683_v60, %v1670_v58 }
 0x2aa   :  { %v1698_v0 = vadd.f32 %v1697_v61, %v1684_v62  ;;  %v1711_v3 = vpop.f32.mrf.mxu0  ;;  %v1725_v9 = vpop.f32.mrf.mxu1 }
 0x2ab   :  { %v1712_v7 = vadd.f32 %v1711_v3, %v1321_v59 }
 0x2ac   :  { %1758 = vst [vmem:[#allocation15 + $0x10] sm:$0xff] %v1698_v0 }
 0x2ad   :  { %v1726_v10 = vadd.f32 %v1725_v9, %v1712_v7 }
 0x2af   :  { %v1737_v4 = vpop.f32.mrf.mxu2  ;;  %v1751_v5 = vpop.f32.mrf.mxu3 }
 0x2b0   :  { %v1738_v6 = vadd.f32 %v1737_v4, %v1724_v2 }
 0x2b2   :  { %v1752_v8 = vadd.f32 %v1751_v5, %v1738_v6 }
 0x2b4   :  { %1757 = vst [vmem:[#allocation15 + $0x8] sm:$0xff] %v1752_v8 }
 0x2b7   :  { %v1739_v11 = vpop.f32.mrf.mxu2  ;;  %v1753_v13 = vpop.f32.mrf.mxu3 }
 0x2b8   :  { %v1740_v12 = vadd.f32 %v1739_v11, %v1726_v10 }
 0x2ba   :  { %v1754_v14 = vadd.f32 %v1753_v13, %v1740_v12 }
 0x2bc   :  { %1759 = vst [vmem:[#allocation15 + $0x18] sm:$0xff] %v1754_v14 }
 0x2bd   :  { %1785 = dma.vmem_to_hbm [thread:$0]  %s1778_s9, 512, %s1780_s17, [#allocation16], %s3005_s21, %s3005_s21, %s3006_s22  }
 0x2be   :  { %3000 = dma.done.wait [#allocation4], 256  }
 0x2bf   :  { %3001 = vsyncadd [#allocation4], 4294967040 }
 0x2c0   :  { %3002 = dma.done.wait [#allocation16], 512  }
 0x2c1   :  { %3003 = vsyncadd [#allocation16], 4294966784 }
 0x2c2   :  { %1794 = vsyncpa [#allocation3], 1 }
 0x2c3   :  { %1795 = vsyncpa [#allocation6], 1 }
 0x2c4   :  { %1796 = vsyncpa [#allocation9], 1 }
 0x2c5   :  { %1797 = vsyncpa [#allocation12], 1 }
 0x2c6   :  { %1798 = vsyncpa [#allocation4], 1 }
 0x2c7   :  { %1799 = vsyncpa [#allocation16], 1 }

</bundles_post_ra>
